<compile_context>
chip_gen: v7x
topology: tpu7x:2x2x1
jax: 0.10.0
libtpu: 0.0.40
codegen_flags: <defaults>
</compile_context>

<pallas_src>
import functools

import jax
import jax.numpy as jnp
from jax.experimental import pallas as pl
from jax.experimental.pallas import tpu as pltpu


# ----------------------------- helpers --------------------------------------

def _round_up(x, m):
    return (x + m - 1) // m * m


def _pick_tile(total, target, multiple=1):
    """Largest divisor of `total` that is <= target and a multiple of `multiple`.

    Falls back to `total` (a full-extent block is always a legal BlockSpec)."""
    target = max(int(target), 1)
    for d in range(min(total, target), 0, -1):
        if total % d == 0 and d % multiple == 0:
            return d
    return total


# ----------------------------- Pallas kernels -------------------------------

def _conv_mm_bias_kernel(a_ref, w_ref, b_ref, o_ref):
    # a: (TM, K) bf16 im2col tile, w: (K, Cout) bf16 (VMEM-resident),
    # b: (1, Cout) f32  ->  o: (TM, Cout) f32  (pre-ReLU conv output)
    acc = jnp.dot(a_ref[...], w_ref[...], preferred_element_type=jnp.float32)
    o_ref[...] = acc + b_ref[...]


def _relu_maxpool_kernel(x_ref, o_ref):
    # x: (TR, 2, Wo, 2*C) pre-ReLU rows (2x2 window = leading vertical tap +
    # horizontal tap folded into the lane dim)  ->  o: (TR, Wo, C)
    x = jnp.maximum(x_ref[...], 0.0)                       # fused ReLU
    v = jnp.maximum(x[:, 0, :, :], x[:, 1, :, :])          # vertical 2-tap max
    c = o_ref.shape[-1]
    o_ref[...] = jnp.maximum(v[:, :, :c], v[:, :, c:])     # horizontal 2-tap max


def _gram_kernel(f_ref, o_ref, *, scale):
    # f: (TP, C) pixel tile of F; o: (C, C) resident accumulator, G = scale * F^T F
    @pl.when(pl.program_id(0) == 0)
    def _():
        o_ref[...] = jnp.zeros_like(o_ref)
    f = f_ref[...]
    g = jax.lax.dot_general(f, f, (((0,), (0,)), ((), ())),
                            preferred_element_type=jnp.float32)
    o_ref[...] += g * jnp.float32(scale)


# ----------------------------- op wrappers -----------------------------------

def conv3x3(x_nhwc, w_oihw, bias, *, relu_input=False):
    """3x3 same conv, stride 1 (Conv2d(..., 3, padding=1)); optional fused input ReLU."""
    N, H, W, Cin = x_nhwc.shape
    Cout = w_oihw.shape[0]
    x = jnp.maximum(x_nhwc, 0.0) if relu_input else x_nhwc   # ReLU fused into im2col glue
    xp = jnp.pad(x, ((0, 0), (1, 1), (1, 1), (0, 0)))
    # im2col glue (XLA fuses pad/slice/concat/cast); tap order dy-major, dx, then ci.
    # TODO(synk): fold the 9-tap gather into the kernel (halo'd row blocks) to drop the
    # 9x im2col HBM slab entirely; bf16 halves its traffic for now.
    patches = jnp.concatenate(
        [xp[:, dy:dy + H, dx:dx + W, :] for dy in range(3) for dx in range(3)],
        axis=-1)
    M, K = N * H * W, 9 * Cin
    Kp = _round_up(K, 8)                      # sublane-align K (conv1: 27 -> 32)
    a = patches.reshape(M, K)
    wm = jnp.transpose(w_oihw, (2, 3, 1, 0)).reshape(K, Cout)
    if Kp != K:
        a = jnp.pad(a, ((0, 0), (0, Kp - K)))
        wm = jnp.pad(wm, ((0, Kp - K), (0, 0)))
    a = a.astype(jnp.bfloat16)                # bf16 MXU inputs, f32 accumulate
    wm = wm.astype(jnp.bfloat16)
    bm = bias.reshape(1, Cout).astype(jnp.float32)

    # Tile M so a double-buffered (a-tile + out-tile) stays at a few MiB (v7x-safe).
    bytes_per_row = Kp * 2 + Cout * 4
    tm = _pick_tile(M, min(2048, max(128, (4 << 20) // bytes_per_row)), multiple=8)
    out = pl.pallas_call(
        _conv_mm_bias_kernel,
        out_shape=jax.ShapeDtypeStruct((M, Cout), jnp.float32),
        grid=(M // tm,),
        in_specs=[
            pl.BlockSpec((tm, Kp), lambda i: (i, 0)),     # pipelined activation tiles
            pl.BlockSpec((Kp, Cout), lambda i: (0, 0)),   # weights stay VMEM-resident
            pl.BlockSpec((1, Cout), lambda i: (0, 0)),
        ],
        out_specs=pl.BlockSpec((tm, Cout), lambda i: (i, 0)),
        compiler_params=pltpu.CompilerParams(dimension_semantics=("parallel",)),
    )(a, wm, bm)
    return out.reshape(N, H, W, Cout)


def relu_maxpool2x2(x_nhwc):
    """Fused ReLU + MaxPool2d(kernel_size=2, stride=2); input is the pre-ReLU conv output."""
    N, H, W, C = x_nhwc.shape
    Ho, Wo = H // 2, W // 2
    R = N * Ho
    # Free row-major reshape: (N,H,W,C) -> (R, 2, Wo, 2*C); no tap stacking in HBM.
    xr = x_nhwc.reshape(R, 2, Wo, 2 * C)
    row_bytes = 2 * Wo * 2 * C * 4
    tr = _pick_tile(R, (2 << 20) // max(row_bytes, 1))
    out = pl.pallas_call(
        _relu_maxpool_kernel,
        out_shape=jax.ShapeDtypeStruct((R, Wo, C), jnp.float32),
        grid=(R // tr,),
        in_specs=[pl.BlockSpec((tr, 2, Wo, 2 * C), lambda i: (i, 0, 0, 0))],
        out_specs=pl.BlockSpec((tr, Wo, C), lambda i: (i, 0, 0)),
        compiler_params=pltpu.CompilerParams(dimension_semantics=("parallel",)),
    )(xr)
    return out.reshape(N, Ho, Wo, C)


def gram_matrix(f_nhwc):
    """G = (F @ F.T) / (N*C*H*W), F = features.view(N*C, H*W) (PyTorch flattening)."""
    N, H, W, C = f_nhwc.shape
    if N == 1:
        F = f_nhwc.reshape(H * W, C)          # free reshape: no HBM transpose
        Cg = C
    else:
        # TODO(synk): torch's general-N flattening mixes batch into channels; fall back
        # to an explicit transpose for that rare case.
        F = jnp.transpose(f_nhwc, (0, 3, 1, 2)).reshape(N * C, H * W).T
        Cg = N * C
    P = F.shape[0]
    # TODO(synk): normalization kept as 1/(N*C*H*W) (see original TODO); some Gatys
    # implementations divide by the Gram element count instead.
    scale = 1.0 / float(N * C * H * W)
    tp = _pick_tile(P, 512, multiple=8)
    return pl.pallas_call(
        functools.partial(_gram_kernel, scale=scale),
        out_shape=jax.ShapeDtypeStruct((Cg, Cg), jnp.float32),
        grid=(P // tp,),
        in_specs=[pl.BlockSpec((tp, Cg), lambda i: (i, 0))],
        out_specs=pl.BlockSpec((Cg, Cg), lambda i: (0, 0)),   # resident accumulator
        compiler_params=pltpu.CompilerParams(dimension_semantics=("arbitrary",)),
    )(F)


# ----------------------------- VGG forward -----------------------------------

def init_params(key):
    """Deterministic He-normal init, vgg19 conv1..conv5 shapes."""
    shapes = [(64, 3), (64, 64), (128, 64), (128, 128), (256, 128)]
    keys = jax.random.split(key, len(shapes))
    params = {}
    for idx, ((cout, cin), k) in enumerate(zip(shapes, keys), start=1):
        fan_in = cin * 9
        params[f"w{idx}"] = (jax.random.normal(k, (cout, cin, 3, 3), jnp.float32)
                             * jnp.sqrt(2.0 / fan_in))
        params[f"b{idx}"] = jnp.zeros((cout,), jnp.float32)
    return params


def extract_features(img_nhwc, params):
    """Pre-ReLU outputs of conv_1, conv2, conv_3, conv4, conv_5 (the loss tap points)."""
    f1 = conv3x3(img_nhwc, params["w1"], params["b1"])
    f2 = conv3x3(f1, params["w2"], params["b2"], relu_input=True)   # relu1 fused into glue
    p2 = relu_maxpool2x2(f2)                                        # relu2 + pool_2 fused
    f3 = conv3x3(p2, params["w3"], params["b3"])
    f4 = conv3x3(f3, params["w4"], params["b4"], relu_input=True)   # relu3 fused into glue
    p4 = relu_maxpool2x2(f4)                                        # relu4 + pool_4 fused
    f5 = conv3x3(p4, params["w5"], params["b5"])
    return (f1, f2, f3, f4, f5)


def _to_nhwc(t):
    return jnp.transpose(t.astype(jnp.float32), (0, 2, 3, 1))


def precompute_targets(style_nchw, content_nchw, params):
    """Style Gram / content feature targets: constants of the NST loop, computed once
    and stop_gradient'd (torch .detach() parity)."""
    style_feats = extract_features(_to_nhwc(style_nchw), params)
    content_feats = extract_features(_to_nhwc(content_nchw), params)
    style_targets = tuple(jax.lax.stop_gradient(gram_matrix(f)) for f in style_feats)
    content_target = jax.lax.stop_gradient(content_feats[3])   # conv4 pre-ReLU feature
    return style_targets, content_target


def vgg_forward(x_nchw, style_targets, content_target, params):
    """Per-step forward: returns (x after conv_5, style_losses, content_losses)."""
    x_feats = extract_features(_to_nhwc(x_nchw), params)
    style_losses = [jnp.mean((gram_matrix(x_feats[i]) - style_targets[i]) ** 2)
                    for i in range(5)]
    content_losses = [jnp.mean((x_feats[3] - content_target) ** 2)]
    # Sequential ends with conv_5 -> style_loss_5 (pass-through): output is conv_5.
    x_out = jnp.transpose(x_feats[4], (0, 3, 1, 2))             # back to NCHW
    return x_out, style_losses, content_losses


def vgg_forward_full(x_nchw, style_nchw, content_nchw, params):
    """Original-module-style API (targets recomputed in-call); prefer the hoisted pair."""
    style_targets, content_target = precompute_targets(style_nchw, content_nchw, params)
    return vgg_forward(x_nchw, style_targets, content_target, params)


# --------------------------------- main ---------------------------------------

if __name__ == "__main__":
    key = jax.random.PRNGKey(0)
    kx, ks, kc, kp = jax.random.split(key, 4)

    N, H, W = 1, 16, 16
    x = jax.random.uniform(kx, (N, 3, H, W), jnp.float32)
    style_img = jax.random.uniform(ks, (N, 3, H, W), jnp.float32)
    content_img = jax.random.uniform(kc, (N, 3, H, W), jnp.float32)
    params = init_params(kp)

    # Hoisted: style/content targets are constants of the optimization loop.
    style_targets, content_target = jax.jit(precompute_targets)(
        style_img, content_img, params)
    fwd = jax.jit(vgg_forward)
    out, style_losses, content_losses = fwd(x, style_targets, content_target, params)

    jax.block_until_ready(out)
    for v in list(style_losses) + list(content_losses):
        jax.block_until_ready(v)

    assert out.shape == (N, 256, H // 4, W // 4), out.shape
    assert len(style_losses) == 5 and len(content_losses) == 1
    assert all(bool(jnp.isfinite(v)) for v in list(style_losses) + list(content_losses))
    print("KERNEL_OK")
</pallas_src>

<mosaic_0001>
module attributes {stable_mosaic.version = 11 : i64} {
  func.func @_conv_mm_bias_kernel(%arg0: i32, %arg1: memref<256x32xbf16, #tpu.memory_space<vmem>>, %arg2: memref<32x64xbf16, #tpu.memory_space<vmem>>, %arg3: memref<1x64xf32, #tpu.memory_space<vmem>>, %arg4: memref<256x64xf32, #tpu.memory_space<vmem>>) attributes {dimension_semantics = [#tpu.dimension_semantics<parallel>], iteration_bounds = array<i64: 1>, scalar_prefetch = 0 : i64, scratch_operands = 0 : i64, tpu.core_type = #tpu.core_type<tc>, window_params = [{transform_indices = @transform_0, window_bounds = array<i64: 256, 32>}, {pipeline_mode = #tpu.pipeline_mode<synchronous>, transform_indices = @transform_1, window_bounds = array<i64: 32, 64>}, {pipeline_mode = #tpu.pipeline_mode<synchronous>, transform_indices = @transform_2, window_bounds = array<i64: 1, 64>}, {transform_indices = @transform_3, window_bounds = array<i64: 256, 64>}]} {
    %c0 = arith.constant 0 : index
    %c0_0 = arith.constant 0 : index
    %0 = vector.load %arg1[%c0, %c0_0] : memref<256x32xbf16, #tpu.memory_space<vmem>>, vector<256x32xbf16>
    %c0_1 = arith.constant 0 : index
    %c0_2 = arith.constant 0 : index
    %1 = vector.load %arg2[%c0_1, %c0_2] : memref<32x64xbf16, #tpu.memory_space<vmem>>, vector<32x64xbf16>
    %cst = arith.constant dense<0.000000e+00> : vector<256x64xf32>
    %2 = tpu.matmul %0, %1, %cst {dimension_numbers = #tpu.dot_dimension_numbers<[1], [0], [0], [1], [0, 0, 1, 1], [], []>} : vector<256x32xbf16>, vector<32x64xbf16>, vector<256x64xf32> -> vector<256x64xf32>
    %c0_3 = arith.constant 0 : index
    %c0_4 = arith.constant 0 : index
    %3 = vector.load %arg3[%c0_3, %c0_4] : memref<1x64xf32, #tpu.memory_space<vmem>>, vector<1x64xf32>
    %4 = vector.broadcast %3 : vector<1x64xf32> to vector<256x64xf32>
    %5 = arith.addf %2, %4 : vector<256x64xf32>
    %c0_5 = arith.constant 0 : index
    %c0_6 = arith.constant 0 : index
    %6 = vector.load %arg4[%c0_5, %c0_6] : memref<256x64xf32, #tpu.memory_space<vmem>>, vector<256x64xf32>
    tpu.vector_store %arg4[%c0_5, %c0_6], %5 {strides = array<i32>} : memref<256x64xf32, #tpu.memory_space<vmem>>, vector<256x64xf32>,
    return
  }
  func.func @transform_0(%arg0: i32) -> (i32, i32) {
    %c0_i32 = arith.constant 0 : i32
    %c0_i32_0 = arith.constant 0 : i32
    return %arg0, %c0_i32 : i32, i32
  }
  func.func @transform_1(%arg0: i32) -> (i32, i32) {
    %c0_i32 = arith.constant 0 : i32
    %c0_i32_0 = arith.constant 0 : i32
    %c0_i32_1 = arith.constant 0 : i32
    return %c0_i32, %c0_i32_0 : i32, i32
  }
  func.func @transform_2(%arg0: i32) -> (i32, i32) {
    %c0_i32 = arith.constant 0 : i32
    %c0_i32_0 = arith.constant 0 : i32
    %c0_i32_1 = arith.constant 0 : i32
    return %c0_i32, %c0_i32_0 : i32, i32
  }
  func.func @transform_3(%arg0: i32) -> (i32, i32) {
    %c0_i32 = arith.constant 0 : i32
    %c0_i32_0 = arith.constant 0 : i32
    return %arg0, %c0_i32 : i32, i32
  }
}

module attributes {stable_mosaic.version = 11 : i64} {
  func.func @_conv_mm_bias_kernel(%arg0: i32, %arg1: memref<256x576xbf16, #tpu.memory_space<vmem>>, %arg2: memref<576x64xbf16, #tpu.memory_space<vmem>>, %arg3: memref<1x64xf32, #tpu.memory_space<vmem>>, %arg4: memref<256x64xf32, #tpu.memory_space<vmem>>) attributes {dimension_semantics = [#tpu.dimension_semantics<parallel>], iteration_bounds = array<i64: 1>, scalar_prefetch = 0 : i64, scratch_operands = 0 : i64, tpu.core_type = #tpu.core_type<tc>, window_params = [{transform_indices = @transform_0, window_bounds = array<i64: 256, 576>}, {pipeline_mode = #tpu.pipeline_mode<synchronous>, transform_indices = @transform_1, window_bounds = array<i64: 576, 64>}, {pipeline_mode = #tpu.pipeline_mode<synchronous>, transform_indices = @transform_2, window_bounds = array<i64: 1, 64>}, {transform_indices = @transform_3, window_bounds = array<i64: 256, 64>}]} {
    %c0 = arith.constant 0 : index
    %c0_0 = arith.constant 0 : index
    %0 = vector.load %arg1[%c0, %c0_0] : memref<256x576xbf16, #tpu.memory_space<vmem>>, vector<256x576xbf16>
    %c0_1 = arith.constant 0 : index
    %c0_2 = arith.constant 0 : index
    %1 = vector.load %arg2[%c0_1, %c0_2] : memref<576x64xbf16, #tpu.memory_space<vmem>>, vector<576x64xbf16>
    %cst = arith.constant dense<0.000000e+00> : vector<256x64xf32>
    %2 = tpu.matmul %0, %1, %cst {dimension_numbers = #tpu.dot_dimension_numbers<[1], [0], [0], [1], [0, 0, 1, 1], [], []>} : vector<256x576xbf16>, vector<576x64xbf16>, vector<256x64xf32> -> vector<256x64xf32>
    %c0_3 = arith.constant 0 : index
    %c0_4 = arith.constant 0 : index
    %3 = vector.load %arg3[%c0_3, %c0_4] : memref<1x64xf32, #tpu.memory_space<vmem>>, vector<1x64xf32>
    %4 = vector.broadcast %3 : vector<1x64xf32> to vector<256x64xf32>
    %5 = arith.addf %2, %4 : vector<256x64xf32>
    %c0_5 = arith.constant 0 : index
    %c0_6 = arith.constant 0 : index
    %6 = vector.load %arg4[%c0_5, %c0_6] : memref<256x64xf32, #tpu.memory_space<vmem>>, vector<256x64xf32>
    tpu.vector_store %arg4[%c0_5, %c0_6], %5 {strides = array<i32>} : memref<256x64xf32, #tpu.memory_space<vmem>>, vector<256x64xf32>,
    return
  }
  func.func @transform_0(%arg0: i32) -> (i32, i32) {
    %c0_i32 = arith.constant 0 : i32
    %c0_i32_0 = arith.constant 0 : i32
    return %arg0, %c0_i32 : i32, i32
  }
  func.func @transform_1(%arg0: i32) -> (i32, i32) {
    %c0_i32 = arith.constant 0 : i32
    %c0_i32_0 = arith.constant 0 : i32
    %c0_i32_1 = arith.constant 0 : i32
    return %c0_i32, %c0_i32_0 : i32, i32
  }
  func.func @transform_2(%arg0: i32) -> (i32, i32) {
    %c0_i32 = arith.constant 0 : i32
    %c0_i32_0 = arith.constant 0 : i32
    %c0_i32_1 = arith.constant 0 : i32
    return %c0_i32, %c0_i32_0 : i32, i32
  }
  func.func @transform_3(%arg0: i32) -> (i32, i32) {
    %c0_i32 = arith.constant 0 : i32
    %c0_i32_0 = arith.constant 0 : i32
    return %arg0, %c0_i32 : i32, i32
  }
}

module attributes {stable_mosaic.version = 11 : i64} {
  func.func @_relu_maxpool_kernel(%arg0: i32, %arg1: memref<8x2x8x128xf32, #tpu.memory_space<vmem>>, %arg2: memref<8x8x64xf32, #tpu.memory_space<vmem>>) attributes {dimension_semantics = [#tpu.dimension_semantics<parallel>], iteration_bounds = array<i64: 1>, scalar_prefetch = 0 : i64, scratch_operands = 0 : i64, tpu.core_type = #tpu.core_type<tc>, window_params = [{transform_indices = @transform_0, window_bounds = array<i64: 8, 2, 8, 128>}, {transform_indices = @transform_1, window_bounds = array<i64: 8, 8, 64>}]} {
    %c0 = arith.constant 0 : index
    %c0_0 = arith.constant 0 : index
    %c0_1 = arith.constant 0 : index
    %c0_2 = arith.constant 0 : index
    %0 = vector.load %arg1[%c0, %c0_0, %c0_1, %c0_2] : memref<8x2x8x128xf32, #tpu.memory_space<vmem>>, vector<8x2x8x128xf32>
    %cst = arith.constant 0.000000e+00 : f32
    %1 = vector.broadcast %cst : f32 to vector<8x2x8x128xf32>
    %2 = arith.maximumf %0, %1 : vector<8x2x8x128xf32>
    %3 = vector.extract_strided_slice %2 {offsets = [0, 0, 0, 0], sizes = [8, 1, 8, 128], strides = [1, 1, 1, 1]} : vector<8x2x8x128xf32> to vector<8x1x8x128xf32>
    %4 = vector.shape_cast %3 : vector<8x1x8x128xf32> to vector<8x8x128xf32>
    %5 = vector.extract_strided_slice %2 {offsets = [0, 1, 0, 0], sizes = [8, 1, 8, 128], strides = [1, 1, 1, 1]} : vector<8x2x8x128xf32> to vector<8x1x8x128xf32>
    %6 = vector.shape_cast %5 : vector<8x1x8x128xf32> to vector<8x8x128xf32>
    %7 = arith.maximumf %4, %6 : vector<8x8x128xf32>
    %8 = vector.extract_strided_slice %7 {offsets = [0, 0, 0], sizes = [8, 8, 64], strides = [1, 1, 1]} : vector<8x8x128xf32> to vector<8x8x64xf32>
    %9 = vector.extract_strided_slice %7 {offsets = [0, 0, 64], sizes = [8, 8, 64], strides = [1, 1, 1]} : vector<8x8x128xf32> to vector<8x8x64xf32>
    %10 = arith.maximumf %8, %9 : vector<8x8x64xf32>
    %c0_3 = arith.constant 0 : index
    %c0_4 = arith.constant 0 : index
    %c0_5 = arith.constant 0 : index
    %11 = vector.load %arg2[%c0_3, %c0_4, %c0_5] : memref<8x8x64xf32, #tpu.memory_space<vmem>>, vector<8x8x64xf32>
    tpu.vector_store %arg2[%c0_3, %c0_4, %c0_5], %10 {strides = array<i32>} : memref<8x8x64xf32, #tpu.memory_space<vmem>>, vector<8x8x64xf32>,
    return
  }
  func.func @transform_0(%arg0: i32) -> (i32, i32, i32, i32) {
    %c0_i32 = arith.constant 0 : i32
    %c0_i32_0 = arith.constant 0 : i32
    %c0_i32_1 = arith.constant 0 : i32
    %c0_i32_2 = arith.constant 0 : i32
    return %arg0, %c0_i32, %c0_i32_0, %c0_i32_1 : i32, i32, i32, i32
  }
  func.func @transform_1(%arg0: i32) -> (i32, i32, i32) {
    %c0_i32 = arith.constant 0 : i32
    %c0_i32_0 = arith.constant 0 : i32
    %c0_i32_1 = arith.constant 0 : i32
    return %arg0, %c0_i32, %c0_i32_0 : i32, i32, i32
  }
}

module attributes {stable_mosaic.version = 11 : i64} {
  func.func @_conv_mm_bias_kernel(%arg0: i32, %arg1: memref<64x576xbf16, #tpu.memory_space<vmem>>, %arg2: memref<576x128xbf16, #tpu.memory_space<vmem>>, %arg3: memref<1x128xf32, #tpu.memory_space<vmem>>, %arg4: memref<64x128xf32, #tpu.memory_space<vmem>>) attributes {dimension_semantics = [#tpu.dimension_semantics<parallel>], iteration_bounds = array<i64: 1>, scalar_prefetch = 0 : i64, scratch_operands = 0 : i64, tpu.core_type = #tpu.core_type<tc>, window_params = [{transform_indices = @transform_0, window_bounds = array<i64: 64, 576>}, {pipeline_mode = #tpu.pipeline_mode<synchronous>, transform_indices = @transform_1, window_bounds = array<i64: 576, 128>}, {pipeline_mode = #tpu.pipeline_mode<synchronous>, transform_indices = @transform_2, window_bounds = array<i64: 1, 128>}, {transform_indices = @transform_3, window_bounds = array<i64: 64, 128>}]} {
    %c0 = arith.constant 0 : index
    %c0_0 = arith.constant 0 : index
    %0 = vector.load %arg1[%c0, %c0_0] : memref<64x576xbf16, #tpu.memory_space<vmem>>, vector<64x576xbf16>
    %c0_1 = arith.constant 0 : index
    %c0_2 = arith.constant 0 : index
    %1 = vector.load %arg2[%c0_1, %c0_2] : memref<576x128xbf16, #tpu.memory_space<vmem>>, vector<576x128xbf16>
    %cst = arith.constant dense<0.000000e+00> : vector<64x128xf32>
    %2 = tpu.matmul %0, %1, %cst {dimension_numbers = #tpu.dot_dimension_numbers<[1], [0], [0], [1], [0, 0, 1, 1], [], []>} : vector<64x576xbf16>, vector<576x128xbf16>, vector<64x128xf32> -> vector<64x128xf32>
    %c0_3 = arith.constant 0 : index
    %c0_4 = arith.constant 0 : index
    %3 = vector.load %arg3[%c0_3, %c0_4] : memref<1x128xf32, #tpu.memory_space<vmem>>, vector<1x128xf32>
    %4 = vector.broadcast %3 : vector<1x128xf32> to vector<64x128xf32>
    %5 = arith.addf %2, %4 : vector<64x128xf32>
    %c0_5 = arith.constant 0 : index
    %c0_6 = arith.constant 0 : index
    %6 = vector.load %arg4[%c0_5, %c0_6] : memref<64x128xf32, #tpu.memory_space<vmem>>, vector<64x128xf32>
    tpu.vector_store %arg4[%c0_5, %c0_6], %5 {strides = array<i32>} : memref<64x128xf32, #tpu.memory_space<vmem>>, vector<64x128xf32>,
    return
  }
  func.func @transform_0(%arg0: i32) -> (i32, i32) {
    %c0_i32 = arith.constant 0 : i32
    %c0_i32_0 = arith.constant 0 : i32
    return %arg0, %c0_i32 : i32, i32
  }
  func.func @transform_1(%arg0: i32) -> (i32, i32) {
    %c0_i32 = arith.constant 0 : i32
    %c0_i32_0 = arith.constant 0 : i32
    %c0_i32_1 = arith.constant 0 : i32
    return %c0_i32, %c0_i32_0 : i32, i32
  }
  func.func @transform_2(%arg0: i32) -> (i32, i32) {
    %c0_i32 = arith.constant 0 : i32
    %c0_i32_0 = arith.constant 0 : i32
    %c0_i32_1 = arith.constant 0 : i32
    return %c0_i32, %c0_i32_0 : i32, i32
  }
  func.func @transform_3(%arg0: i32) -> (i32, i32) {
    %c0_i32 = arith.constant 0 : i32
    %c0_i32_0 = arith.constant 0 : i32
    return %arg0, %c0_i32 : i32, i32
  }
}

module attributes {stable_mosaic.version = 11 : i64} {
  func.func @_conv_mm_bias_kernel(%arg0: i32, %arg1: memref<64x1152xbf16, #tpu.memory_space<vmem>>, %arg2: memref<1152x128xbf16, #tpu.memory_space<vmem>>, %arg3: memref<1x128xf32, #tpu.memory_space<vmem>>, %arg4: memref<64x128xf32, #tpu.memory_space<vmem>>) attributes {dimension_semantics = [#tpu.dimension_semantics<parallel>], iteration_bounds = array<i64: 1>, scalar_prefetch = 0 : i64, scratch_operands = 0 : i64, tpu.core_type = #tpu.core_type<tc>, window_params = [{transform_indices = @transform_0, window_bounds = array<i64: 64, 1152>}, {pipeline_mode = #tpu.pipeline_mode<synchronous>, transform_indices = @transform_1, window_bounds = array<i64: 1152, 128>}, {pipeline_mode = #tpu.pipeline_mode<synchronous>, transform_indices = @transform_2, window_bounds = array<i64: 1, 128>}, {transform_indices = @transform_3, window_bounds = array<i64: 64, 128>}]} {
    %c0 = arith.constant 0 : index
    %c0_0 = arith.constant 0 : index
    %0 = vector.load %arg1[%c0, %c0_0] : memref<64x1152xbf16, #tpu.memory_space<vmem>>, vector<64x1152xbf16>
    %c0_1 = arith.constant 0 : index
    %c0_2 = arith.constant 0 : index
    %1 = vector.load %arg2[%c0_1, %c0_2] : memref<1152x128xbf16, #tpu.memory_space<vmem>>, vector<1152x128xbf16>
    %cst = arith.constant dense<0.000000e+00> : vector<64x128xf32>
    %2 = tpu.matmul %0, %1, %cst {dimension_numbers = #tpu.dot_dimension_numbers<[1], [0], [0], [1], [0, 0, 1, 1], [], []>} : vector<64x1152xbf16>, vector<1152x128xbf16>, vector<64x128xf32> -> vector<64x128xf32>
    %c0_3 = arith.constant 0 : index
    %c0_4 = arith.constant 0 : index
    %3 = vector.load %arg3[%c0_3, %c0_4] : memref<1x128xf32, #tpu.memory_space<vmem>>, vector<1x128xf32>
    %4 = vector.broadcast %3 : vector<1x128xf32> to vector<64x128xf32>
    %5 = arith.addf %2, %4 : vector<64x128xf32>
    %c0_5 = arith.constant 0 : index
    %c0_6 = arith.constant 0 : index
    %6 = vector.load %arg4[%c0_5, %c0_6] : memref<64x128xf32, #tpu.memory_space<vmem>>, vector<64x128xf32>
    tpu.vector_store %arg4[%c0_5, %c0_6], %5 {strides = array<i32>} : memref<64x128xf32, #tpu.memory_space<vmem>>, vector<64x128xf32>,
    return
  }
  func.func @transform_0(%arg0: i32) -> (i32, i32) {
    %c0_i32 = arith.constant 0 : i32
    %c0_i32_0 = arith.constant 0 : i32
    return %arg0, %c0_i32 : i32, i32
  }
  func.func @transform_1(%arg0: i32) -> (i32, i32) {
    %c0_i32 = arith.constant 0 : i32
    %c0_i32_0 = arith.constant 0 : i32
    %c0_i32_1 = arith.constant 0 : i32
    return %c0_i32, %c0_i32_0 : i32, i32
  }
  func.func @transform_2(%arg0: i32) -> (i32, i32) {
    %c0_i32 = arith.constant 0 : i32
    %c0_i32_0 = arith.constant 0 : i32
    %c0_i32_1 = arith.constant 0 : i32
    return %c0_i32, %c0_i32_0 : i32, i32
  }
  func.func @transform_3(%arg0: i32) -> (i32, i32) {
    %c0_i32 = arith.constant 0 : i32
    %c0_i32_0 = arith.constant 0 : i32
    return %arg0, %c0_i32 : i32, i32
  }
}

module attributes {stable_mosaic.version = 11 : i64} {
  func.func @_conv_mm_bias_kernel(%arg0: i32, %arg1: memref<256x32xbf16, #tpu.memory_space<vmem>>, %arg2: memref<32x64xbf16, #tpu.memory_space<vmem>>, %arg3: memref<1x64xf32, #tpu.memory_space<vmem>>, %arg4: memref<256x64xf32, #tpu.memory_space<vmem>>) attributes {dimension_semantics = [#tpu.dimension_semantics<parallel>], iteration_bounds = array<i64: 1>, scalar_prefetch = 0 : i64, scratch_operands = 0 : i64, tpu.core_type = #tpu.core_type<tc>, window_params = [{transform_indices = @transform_0, window_bounds = array<i64: 256, 32>}, {pipeline_mode = #tpu.pipeline_mode<synchronous>, transform_indices = @transform_1, window_bounds = array<i64: 32, 64>}, {pipeline_mode = #tpu.pipeline_mode<synchronous>, transform_indices = @transform_2, window_bounds = array<i64: 1, 64>}, {transform_indices = @transform_3, window_bounds = array<i64: 256, 64>}]} {
    %c0 = arith.constant 0 : index
    %c0_0 = arith.constant 0 : index
    %0 = vector.load %arg1[%c0, %c0_0] : memref<256x32xbf16, #tpu.memory_space<vmem>>, vector<256x32xbf16>
    %c0_1 = arith.constant 0 : index
    %c0_2 = arith.constant 0 : index
    %1 = vector.load %arg2[%c0_1, %c0_2] : memref<32x64xbf16, #tpu.memory_space<vmem>>, vector<32x64xbf16>
    %cst = arith.constant dense<0.000000e+00> : vector<256x64xf32>
    %2 = tpu.matmul %0, %1, %cst {dimension_numbers = #tpu.dot_dimension_numbers<[1], [0], [0], [1], [0, 0, 1, 1], [], []>} : vector<256x32xbf16>, vector<32x64xbf16>, vector<256x64xf32> -> vector<256x64xf32>
    %c0_3 = arith.constant 0 : index
    %c0_4 = arith.constant 0 : index
    %3 = vector.load %arg3[%c0_3, %c0_4] : memref<1x64xf32, #tpu.memory_space<vmem>>, vector<1x64xf32>
    %4 = vector.broadcast %3 : vector<1x64xf32> to vector<256x64xf32>
    %5 = arith.addf %2, %4 : vector<256x64xf32>
    %c0_5 = arith.constant 0 : index
    %c0_6 = arith.constant 0 : index
    %6 = vector.load %arg4[%c0_5, %c0_6] : memref<256x64xf32, #tpu.memory_space<vmem>>, vector<256x64xf32>
    tpu.vector_store %arg4[%c0_5, %c0_6], %5 {strides = array<i32>} : memref<256x64xf32, #tpu.memory_space<vmem>>, vector<256x64xf32>,
    return
  }
  func.func @transform_0(%arg0: i32) -> (i32, i32) {
    %c0_i32 = arith.constant 0 : i32
    %c0_i32_0 = arith.constant 0 : i32
    return %arg0, %c0_i32 : i32, i32
  }
  func.func @transform_1(%arg0: i32) -> (i32, i32) {
    %c0_i32 = arith.constant 0 : i32
    %c0_i32_0 = arith.constant 0 : i32
    %c0_i32_1 = arith.constant 0 : i32
    return %c0_i32, %c0_i32_0 : i32, i32
  }
  func.func @transform_2(%arg0: i32) -> (i32, i32) {
    %c0_i32 = arith.constant 0 : i32
    %c0_i32_0 = arith.constant 0 : i32
    %c0_i32_1 = arith.constant 0 : i32
    return %c0_i32, %c0_i32_0 : i32, i32
  }
  func.func @transform_3(%arg0: i32) -> (i32, i32) {
    %c0_i32 = arith.constant 0 : i32
    %c0_i32_0 = arith.constant 0 : i32
    return %arg0, %c0_i32 : i32, i32
  }
}

module attributes {stable_mosaic.version = 11 : i64} {
  func.func @_conv_mm_bias_kernel(%arg0: i32, %arg1: memref<64x1152xbf16, #tpu.memory_space<vmem>>, %arg2: memref<1152x128xbf16, #tpu.memory_space<vmem>>, %arg3: memref<1x128xf32, #tpu.memory_space<vmem>>, %arg4: memref<64x128xf32, #tpu.memory_space<vmem>>) attributes {dimension_semantics = [#tpu.dimension_semantics<parallel>], iteration_bounds = array<i64: 1>, scalar_prefetch = 0 : i64, scratch_operands = 0 : i64, tpu.core_type = #tpu.core_type<tc>, window_params = [{transform_indices = @transform_0, window_bounds = array<i64: 64, 1152>}, {pipeline_mode = #tpu.pipeline_mode<synchronous>, transform_indices = @transform_1, window_bounds = array<i64: 1152, 128>}, {pipeline_mode = #tpu.pipeline_mode<synchronous>, transform_indices = @transform_2, window_bounds = array<i64: 1, 128>}, {transform_indices = @transform_3, window_bounds = array<i64: 64, 128>}]} {
    %c0 = arith.constant 0 : index
    %c0_0 = arith.constant 0 : index
    %0 = vector.load %arg1[%c0, %c0_0] : memref<64x1152xbf16, #tpu.memory_space<vmem>>, vector<64x1152xbf16>
    %c0_1 = arith.constant 0 : index
    %c0_2 = arith.constant 0 : index
    %1 = vector.load %arg2[%c0_1, %c0_2] : memref<1152x128xbf16, #tpu.memory_space<vmem>>, vector<1152x128xbf16>
    %cst = arith.constant dense<0.000000e+00> : vector<64x128xf32>
    %2 = tpu.matmul %0, %1, %cst {dimension_numbers = #tpu.dot_dimension_numbers<[1], [0], [0], [1], [0, 0, 1, 1], [], []>} : vector<64x1152xbf16>, vector<1152x128xbf16>, vector<64x128xf32> -> vector<64x128xf32>
    %c0_3 = arith.constant 0 : index
    %c0_4 = arith.constant 0 : index
    %3 = vector.load %arg3[%c0_3, %c0_4] : memref<1x128xf32, #tpu.memory_space<vmem>>, vector<1x128xf32>
    %4 = vector.broadcast %3 : vector<1x128xf32> to vector<64x128xf32>
    %5 = arith.addf %2, %4 : vector<64x128xf32>
    %c0_5 = arith.constant 0 : index
    %c0_6 = arith.constant 0 : index
    %6 = vector.load %arg4[%c0_5, %c0_6] : memref<64x128xf32, #tpu.memory_space<vmem>>, vector<64x128xf32>
    tpu.vector_store %arg4[%c0_5, %c0_6], %5 {strides = array<i32>} : memref<64x128xf32, #tpu.memory_space<vmem>>, vector<64x128xf32>,
    return
  }
  func.func @transform_0(%arg0: i32) -> (i32, i32) {
    %c0_i32 = arith.constant 0 : i32
    %c0_i32_0 = arith.constant 0 : i32
    return %arg0, %c0_i32 : i32, i32
  }
  func.func @transform_1(%arg0: i32) -> (i32, i32) {
    %c0_i32 = arith.constant 0 : i32
    %c0_i32_0 = arith.constant 0 : i32
    %c0_i32_1 = arith.constant 0 : i32
    return %c0_i32, %c0_i32_0 : i32, i32
  }
  func.func @transform_2(%arg0: i32) -> (i32, i32) {
    %c0_i32 = arith.constant 0 : i32
    %c0_i32_0 = arith.constant 0 : i32
    %c0_i32_1 = arith.constant 0 : i32
    return %c0_i32, %c0_i32_0 : i32, i32
  }
  func.func @transform_3(%arg0: i32) -> (i32, i32) {
    %c0_i32 = arith.constant 0 : i32
    %c0_i32_0 = arith.constant 0 : i32
    return %arg0, %c0_i32 : i32, i32
  }
}

module attributes {stable_mosaic.version = 11 : i64} {
  func.func @_relu_maxpool_kernel(%arg0: i32, %arg1: memref<4x2x4x256xf32, #tpu.memory_space<vmem>>, %arg2: memref<4x4x128xf32, #tpu.memory_space<vmem>>) attributes {dimension_semantics = [#tpu.dimension_semantics<parallel>], iteration_bounds = array<i64: 1>, scalar_prefetch = 0 : i64, scratch_operands = 0 : i64, tpu.core_type = #tpu.core_type<tc>, window_params = [{transform_indices = @transform_0, window_bounds = array<i64: 4, 2, 4, 256>}, {transform_indices = @transform_1, window_bounds = array<i64: 4, 4, 128>}]} {
    %c0 = arith.constant 0 : index
    %c0_0 = arith.constant 0 : index
    %c0_1 = arith.constant 0 : index
    %c0_2 = arith.constant 0 : index
    %0 = vector.load %arg1[%c0, %c0_0, %c0_1, %c0_2] : memref<4x2x4x256xf32, #tpu.memory_space<vmem>>, vector<4x2x4x256xf32>
    %cst = arith.constant 0.000000e+00 : f32
    %1 = vector.broadcast %cst : f32 to vector<4x2x4x256xf32>
    %2 = arith.maximumf %0, %1 : vector<4x2x4x256xf32>
    %3 = vector.extract_strided_slice %2 {offsets = [0, 0, 0, 0], sizes = [4, 1, 4, 256], strides = [1, 1, 1, 1]} : vector<4x2x4x256xf32> to vector<4x1x4x256xf32>
    %4 = vector.shape_cast %3 : vector<4x1x4x256xf32> to vector<4x4x256xf32>
    %5 = vector.extract_strided_slice %2 {offsets = [0, 1, 0, 0], sizes = [4, 1, 4, 256], strides = [1, 1, 1, 1]} : vector<4x2x4x256xf32> to vector<4x1x4x256xf32>
    %6 = vector.shape_cast %5 : vector<4x1x4x256xf32> to vector<4x4x256xf32>
    %7 = arith.maximumf %4, %6 : vector<4x4x256xf32>
    %8 = vector.extract_strided_slice %7 {offsets = [0, 0, 0], sizes = [4, 4, 128], strides = [1, 1, 1]} : vector<4x4x256xf32> to vector<4x4x128xf32>
    %9 = vector.extract_strided_slice %7 {offsets = [0, 0, 128], sizes = [4, 4, 128], strides = [1, 1, 1]} : vector<4x4x256xf32> to vector<4x4x128xf32>
    %10 = arith.maximumf %8, %9 : vector<4x4x128xf32>
    %c0_3 = arith.constant 0 : index
    %c0_4 = arith.constant 0 : index
    %c0_5 = arith.constant 0 : index
    %11 = vector.load %arg2[%c0_3, %c0_4, %c0_5] : memref<4x4x128xf32, #tpu.memory_space<vmem>>, vector<4x4x128xf32>
    tpu.vector_store %arg2[%c0_3, %c0_4, %c0_5], %10 {strides = array<i32>} : memref<4x4x128xf32, #tpu.memory_space<vmem>>, vector<4x4x128xf32>,
    return
  }
  func.func @transform_0(%arg0: i32) -> (i32, i32, i32, i32) {
    %c0_i32 = arith.constant 0 : i32
    %c0_i32_0 = arith.constant 0 : i32
    %c0_i32_1 = arith.constant 0 : i32
    %c0_i32_2 = arith.constant 0 : i32
    return %arg0, %c0_i32, %c0_i32_0, %c0_i32_1 : i32, i32, i32, i32
  }
  func.func @transform_1(%arg0: i32) -> (i32, i32, i32) {
    %c0_i32 = arith.constant 0 : i32
    %c0_i32_0 = arith.constant 0 : i32
    %c0_i32_1 = arith.constant 0 : i32
    return %arg0, %c0_i32, %c0_i32_0 : i32, i32, i32
  }
}

module attributes {stable_mosaic.version = 11 : i64} {
  func.func @_conv_mm_bias_kernel(%arg0: i32, %arg1: memref<16x1152xbf16, #tpu.memory_space<vmem>>, %arg2: memref<1152x256xbf16, #tpu.memory_space<vmem>>, %arg3: memref<1x256xf32, #tpu.memory_space<vmem>>, %arg4: memref<16x256xf32, #tpu.memory_space<vmem>>) attributes {dimension_semantics = [#tpu.dimension_semantics<parallel>], iteration_bounds = array<i64: 1>, scalar_prefetch = 0 : i64, scratch_operands = 0 : i64, tpu.core_type = #tpu.core_type<tc>, window_params = [{transform_indices = @transform_0, window_bounds = array<i64: 16, 1152>}, {pipeline_mode = #tpu.pipeline_mode<synchronous>, transform_indices = @transform_1, window_bounds = array<i64: 1152, 256>}, {pipeline_mode = #tpu.pipeline_mode<synchronous>, transform_indices = @transform_2, window_bounds = array<i64: 1, 256>}, {transform_indices = @transform_3, window_bounds = array<i64: 16, 256>}]} {
    %c0 = arith.constant 0 : index
    %c0_0 = arith.constant 0 : index
    %0 = vector.load %arg1[%c0, %c0_0] : memref<16x1152xbf16, #tpu.memory_space<vmem>>, vector<16x1152xbf16>
    %c0_1 = arith.constant 0 : index
    %c0_2 = arith.constant 0 : index
    %1 = vector.load %arg2[%c0_1, %c0_2] : memref<1152x256xbf16, #tpu.memory_space<vmem>>, vector<1152x256xbf16>
    %cst = arith.constant dense<0.000000e+00> : vector<16x256xf32>
    %2 = tpu.matmul %0, %1, %cst {dimension_numbers = #tpu.dot_dimension_numbers<[1], [0], [0], [1], [0, 0, 1, 1], [], []>} : vector<16x1152xbf16>, vector<1152x256xbf16>, vector<16x256xf32> -> vector<16x256xf32>
    %c0_3 = arith.constant 0 : index
    %c0_4 = arith.constant 0 : index
    %3 = vector.load %arg3[%c0_3, %c0_4] : memref<1x256xf32, #tpu.memory_space<vmem>>, vector<1x256xf32>
    %4 = vector.broadcast %3 : vector<1x256xf32> to vector<16x256xf32>
    %5 = arith.addf %2, %4 : vector<16x256xf32>
    %c0_5 = arith.constant 0 : index
    %c0_6 = arith.constant 0 : index
    %6 = vector.load %arg4[%c0_5, %c0_6] : memref<16x256xf32, #tpu.memory_space<vmem>>, vector<16x256xf32>
    tpu.vector_store %arg4[%c0_5, %c0_6], %5 {strides = array<i32>} : memref<16x256xf32, #tpu.memory_space<vmem>>, vector<16x256xf32>,
    return
  }
  func.func @transform_0(%arg0: i32) -> (i32, i32) {
    %c0_i32 = arith.constant 0 : i32
    %c0_i32_0 = arith.constant 0 : i32
    return %arg0, %c0_i32 : i32, i32
  }
  func.func @transform_1(%arg0: i32) -> (i32, i32) {
    %c0_i32 = arith.constant 0 : i32
    %c0_i32_0 = arith.constant 0 : i32
    %c0_i32_1 = arith.constant 0 : i32
    return %c0_i32, %c0_i32_0 : i32, i32
  }
  func.func @transform_2(%arg0: i32) -> (i32, i32) {
    %c0_i32 = arith.constant 0 : i32
    %c0_i32_0 = arith.constant 0 : i32
    %c0_i32_1 = arith.constant 0 : i32
    return %c0_i32, %c0_i32_0 : i32, i32
  }
  func.func @transform_3(%arg0: i32) -> (i32, i32) {
    %c0_i32 = arith.constant 0 : i32
    %c0_i32_0 = arith.constant 0 : i32
    return %arg0, %c0_i32 : i32, i32
  }
}

module attributes {stable_mosaic.version = 11 : i64} {
  func.func @_gram_kernel(%arg0: i32, %arg1: memref<16x256xf32, #tpu.memory_space<vmem>>, %arg2: memref<256x256xf32, #tpu.memory_space<vmem>>) attributes {dimension_semantics = [#tpu.dimension_semantics<arbitrary>], iteration_bounds = array<i64: 1>, scalar_prefetch = 0 : i64, scratch_operands = 0 : i64, tpu.core_type = #tpu.core_type<tc>, window_params = [{transform_indices = @transform_0, window_bounds = array<i64: 16, 256>}, {pipeline_mode = #tpu.pipeline_mode<synchronous>, transform_indices = @transform_1, window_bounds = array<i64: 256, 256>}]} {
    %c0_i32 = arith.constant 0 : i32
    %0 = arith.cmpi eq, %arg0, %c0_i32 : i32
    %1 = arith.extui %0 : i1 to i32
    %c0_i32_0 = arith.constant 0 : i32
    %2 = arith.cmpi ne, %1, %c0_i32_0 : i32
    scf.if %2 {
      %cst_7 = arith.constant 0.000000e+00 : f32
      %10 = vector.broadcast %cst_7 : f32 to vector<256x256xf32>
      %c0_8 = arith.constant 0 : index
      %c0_9 = arith.constant 0 : index
      %11 = vector.load %arg2[%c0_8, %c0_9] : memref<256x256xf32, #tpu.memory_space<vmem>>, vector<256x256xf32>
      tpu.vector_store %arg2[%c0_8, %c0_9], %10 {strides = array<i32>} : memref<256x256xf32, #tpu.memory_space<vmem>>, vector<256x256xf32>,
    } else {
    }
    %c0 = arith.constant 0 : index
    %c0_1 = arith.constant 0 : index
    %3 = vector.load %arg1[%c0, %c0_1] : memref<16x256xf32, #tpu.memory_space<vmem>>, vector<16x256xf32>
    %cst = arith.constant dense<0.000000e+00> : vector<256x256xf32>
    %4 = tpu.matmul %3, %3, %cst {dimension_numbers = #tpu.dot_dimension_numbers<[0], [0], [1], [1], [0, 1, 1, 1], [], []>} : vector<16x256xf32>, vector<16x256xf32>, vector<256x256xf32> -> vector<256x256xf32>
    %c0_2 = arith.constant 0 : index
    %c0_3 = arith.constant 0 : index
    %5 = vector.load %arg2[%c0_2, %c0_3] : memref<256x256xf32, #tpu.memory_space<vmem>>, vector<256x256xf32>
    %cst_4 = arith.constant 2.44140625E-4 : f32
    %6 = vector.broadcast %cst_4 : f32 to vector<256x256xf32>
    %7 = arith.mulf %4, %6 : vector<256x256xf32>
    %8 = arith.addf %5, %7 : vector<256x256xf32>
    %c0_5 = arith.constant 0 : index
    %c0_6 = arith.constant 0 : index
    %9 = vector.load %arg2[%c0_5, %c0_6] : memref<256x256xf32, #tpu.memory_space<vmem>>, vector<256x256xf32>
    tpu.vector_store %arg2[%c0_5, %c0_6], %8 {strides = array<i32>} : memref<256x256xf32, #tpu.memory_space<vmem>>, vector<256x256xf32>,
    return
  }
  func.func @transform_0(%arg0: i32) -> (i32, i32) {
    %c0_i32 = arith.constant 0 : i32
    %c0_i32_0 = arith.constant 0 : i32
    return %arg0, %c0_i32 : i32, i32
  }
  func.func @transform_1(%arg0: i32) -> (i32, i32) {
    %c0_i32 = arith.constant 0 : i32
    %c0_i32_0 = arith.constant 0 : i32
    %c0_i32_1 = arith.constant 0 : i32
    return %c0_i32, %c0_i32_0 : i32, i32
  }
}

module attributes {stable_mosaic.version = 11 : i64} {
  func.func @_gram_kernel(%arg0: i32, %arg1: memref<64x128xf32, #tpu.memory_space<vmem>>, %arg2: memref<128x128xf32, #tpu.memory_space<vmem>>) attributes {dimension_semantics = [#tpu.dimension_semantics<arbitrary>], iteration_bounds = array<i64: 1>, scalar_prefetch = 0 : i64, scratch_operands = 0 : i64, tpu.core_type = #tpu.core_type<tc>, window_params = [{transform_indices = @transform_0, window_bounds = array<i64: 64, 128>}, {pipeline_mode = #tpu.pipeline_mode<synchronous>, transform_indices = @transform_1, window_bounds = array<i64: 128, 128>}]} {
    %c0_i32 = arith.constant 0 : i32
    %0 = arith.cmpi eq, %arg0, %c0_i32 : i32
    %1 = arith.extui %0 : i1 to i32
    %c0_i32_0 = arith.constant 0 : i32
    %2 = arith.cmpi ne, %1, %c0_i32_0 : i32
    scf.if %2 {
      %cst_7 = arith.constant 0.000000e+00 : f32
      %10 = vector.broadcast %cst_7 : f32 to vector<128x128xf32>
      %c0_8 = arith.constant 0 : index
      %c0_9 = arith.constant 0 : index
      %11 = vector.load %arg2[%c0_8, %c0_9] : memref<128x128xf32, #tpu.memory_space<vmem>>, vector<128x128xf32>
      tpu.vector_store %arg2[%c0_8, %c0_9], %10 {strides = array<i32>} : memref<128x128xf32, #tpu.memory_space<vmem>>, vector<128x128xf32>,
    } else {
    }
    %c0 = arith.constant 0 : index
    %c0_1 = arith.constant 0 : index
    %3 = vector.load %arg1[%c0, %c0_1] : memref<64x128xf32, #tpu.memory_space<vmem>>, vector<64x128xf32>
    %cst = arith.constant dense<0.000000e+00> : vector<128x128xf32>
    %4 = tpu.matmul %3, %3, %cst {dimension_numbers = #tpu.dot_dimension_numbers<[0], [0], [1], [1], [0, 1, 1, 1], [], []>} : vector<64x128xf32>, vector<64x128xf32>, vector<128x128xf32> -> vector<128x128xf32>
    %c0_2 = arith.constant 0 : index
    %c0_3 = arith.constant 0 : index
    %5 = vector.load %arg2[%c0_2, %c0_3] : memref<128x128xf32, #tpu.memory_space<vmem>>, vector<128x128xf32>
    %cst_4 = arith.constant 1.22070313E-4 : f32
    %6 = vector.broadcast %cst_4 : f32 to vector<128x128xf32>
    %7 = arith.mulf %4, %6 : vector<128x128xf32>
    %8 = arith.addf %5, %7 : vector<128x128xf32>
    %c0_5 = arith.constant 0 : index
    %c0_6 = arith.constant 0 : index
    %9 = vector.load %arg2[%c0_5, %c0_6] : memref<128x128xf32, #tpu.memory_space<vmem>>, vector<128x128xf32>
    tpu.vector_store %arg2[%c0_5, %c0_6], %8 {strides = array<i32>} : memref<128x128xf32, #tpu.memory_space<vmem>>, vector<128x128xf32>,
    return
  }
  func.func @transform_0(%arg0: i32) -> (i32, i32) {
    %c0_i32 = arith.constant 0 : i32
    %c0_i32_0 = arith.constant 0 : i32
    return %arg0, %c0_i32 : i32, i32
  }
  func.func @transform_1(%arg0: i32) -> (i32, i32) {
    %c0_i32 = arith.constant 0 : i32
    %c0_i32_0 = arith.constant 0 : i32
    %c0_i32_1 = arith.constant 0 : i32
    return %c0_i32, %c0_i32_0 : i32, i32
  }
}

module attributes {stable_mosaic.version = 11 : i64} {
  func.func @_gram_kernel(%arg0: i32, %arg1: memref<256x64xf32, #tpu.memory_space<vmem>>, %arg2: memref<64x64xf32, #tpu.memory_space<vmem>>) attributes {dimension_semantics = [#tpu.dimension_semantics<arbitrary>], iteration_bounds = array<i64: 1>, scalar_prefetch = 0 : i64, scratch_operands = 0 : i64, tpu.core_type = #tpu.core_type<tc>, window_params = [{transform_indices = @transform_0, window_bounds = array<i64: 256, 64>}, {pipeline_mode = #tpu.pipeline_mode<synchronous>, transform_indices = @transform_1, window_bounds = array<i64: 64, 64>}]} {
    %c0_i32 = arith.constant 0 : i32
    %0 = arith.cmpi eq, %arg0, %c0_i32 : i32
    %1 = arith.extui %0 : i1 to i32
    %c0_i32_0 = arith.constant 0 : i32
    %2 = arith.cmpi ne, %1, %c0_i32_0 : i32
    scf.if %2 {
      %cst_7 = arith.constant 0.000000e+00 : f32
      %10 = vector.broadcast %cst_7 : f32 to vector<64x64xf32>
      %c0_8 = arith.constant 0 : index
      %c0_9 = arith.constant 0 : index
      %11 = vector.load %arg2[%c0_8, %c0_9] : memref<64x64xf32, #tpu.memory_space<vmem>>, vector<64x64xf32>
      tpu.vector_store %arg2[%c0_8, %c0_9], %10 {strides = array<i32>} : memref<64x64xf32, #tpu.memory_space<vmem>>, vector<64x64xf32>,
    } else {
    }
    %c0 = arith.constant 0 : index
    %c0_1 = arith.constant 0 : index
    %3 = vector.load %arg1[%c0, %c0_1] : memref<256x64xf32, #tpu.memory_space<vmem>>, vector<256x64xf32>
    %cst = arith.constant dense<0.000000e+00> : vector<64x64xf32>
    %4 = tpu.matmul %3, %3, %cst {dimension_numbers = #tpu.dot_dimension_numbers<[0], [0], [1], [1], [0, 1, 1, 1], [], []>} : vector<256x64xf32>, vector<256x64xf32>, vector<64x64xf32> -> vector<64x64xf32>
    %c0_2 = arith.constant 0 : index
    %c0_3 = arith.constant 0 : index
    %5 = vector.load %arg2[%c0_2, %c0_3] : memref<64x64xf32, #tpu.memory_space<vmem>>, vector<64x64xf32>
    %cst_4 = arith.constant 6.10351563E-5 : f32
    %6 = vector.broadcast %cst_4 : f32 to vector<64x64xf32>
    %7 = arith.mulf %4, %6 : vector<64x64xf32>
    %8 = arith.addf %5, %7 : vector<64x64xf32>
    %c0_5 = arith.constant 0 : index
    %c0_6 = arith.constant 0 : index
    %9 = vector.load %arg2[%c0_5, %c0_6] : memref<64x64xf32, #tpu.memory_space<vmem>>, vector<64x64xf32>
    tpu.vector_store %arg2[%c0_5, %c0_6], %8 {strides = array<i32>} : memref<64x64xf32, #tpu.memory_space<vmem>>, vector<64x64xf32>,
    return
  }
  func.func @transform_0(%arg0: i32) -> (i32, i32) {
    %c0_i32 = arith.constant 0 : i32
    %c0_i32_0 = arith.constant 0 : i32
    return %arg0, %c0_i32 : i32, i32
  }
  func.func @transform_1(%arg0: i32) -> (i32, i32) {
    %c0_i32 = arith.constant 0 : i32
    %c0_i32_0 = arith.constant 0 : i32
    %c0_i32_1 = arith.constant 0 : i32
    return %c0_i32, %c0_i32_0 : i32, i32
  }
}

</mosaic_0001>

<bundles_post_ra>
// kernel: precompute_targets.24
= control target key start
LH: loop header
LB: loop body
LE: loop exit
PB: predicated region body
PF: predicated region fallthrough
CT: control target
= control target key end

     0   :  { %8 = vsyncpa [#allocation3], 0  ;;  %s546_s12 = smov [#allocation2]   ;;  %s811_s0 = inlined_call_operand.vmem [shape: bf16[256,32], index: 0, kind: input, shape index: {}]   ;;  %s812_s1 = inlined_call_operand.vmem [shape: bf16[32,64], index: 1, kind: input, shape index: {}]   ;;  %s813_s2 = inlined_call_operand.hbm [shape: f32[1,64], index: 2, kind: input, shape index: {}]   ;;  %s814_s3 = inlined_call_operand.vmem [shape: f32[256,64], index: 3, kind: output, shape index: {}]  }
   0x1   :  { %s19_s13 = sshll.u32 %s546_s12, 4  ;;  %s522_s16 = scalar_lea.hbm %s813_s2, 16  ;;  %s20_s13 = int_to_ptr.vmem [resolvable:$true] %s19_s13 }
   0x2   :  { %p523_p0 = scmp.ne.s32.totalorder %s813_s2, %s522_s16  ;;  %p526_p1 = scmp.lt.u32.totalorder %s522_s16, %s813_s2 }
   0x4   :  { %p528_p2 = pnand %p526_p1, %p523_p0 }
   0x6   :  { %531 = shalt.err (!%p528_p2)
}
   0x7   :  { %s532_s21 = scalar_lea.vmem %s20_s13, 16  ;;  %s536_s22 = scalar_lea.vmem %s20_s13, 32 }
   0x8   :  { %p533_p3 = scmp.ne.s32.totalorder %s20_s13, %s532_s21  ;;  %p537_p4 = scmp.lt.s32.totalorder %s20_s13, %s20_s13 }
   0x9   :  { %p538_p5 = scmp.lt.s32.totalorder %s536_s22, %s532_s21 }
   0xb   :  { %p539_p6 = por %p538_p5, %p537_p4 }
   0xd   :  { %p540_p7 = pnand %p539_p6, %p533_p3 }
   0xf   :  { %543 = shalt.err (!%p540_p7)
}
  0x10   :  { %22 = dma.hbm_to_vmem [thread:$0]  %s813_s2, 16, %s20_s13, [#allocation3]  }
  0x11   :  { %544 = dma.done.wait [#allocation3], 16  }
  0x12   :  { %545 = vsyncadd [#allocation3], 4294967280  ;;  %v504_v0 = vld [vmem:[%s812_s1] sm:$0xff]   ;;  %v505_v1 = vld [vmem:[%s812_s1 + $0x8] sm:$0xff]   ;;  %vm162_vm0 = vcmask 261120   ;;  %vm372_vm1 = vcmask 523264  }
  0x13   :  { %463 = vmatprep.subr.bf16.mxu0 %v504_v0  ;;  %499 = vmatprep.subr.bf16.mxu1 %v504_v0  ;;  %v506_v2 = vld [vmem:[%s811_s0] sm:$0xff]   ;;  %v508_v4 = vld [vmem:[%s811_s0 + $0x8] sm:$0xff]   ;;  %v510_v6 = vld [vmem:[%s811_s0 + $0x10] sm:$0xff]  }
  0x14   :  { %464 = vmatpush3.bf16.msra.mxu0 %v504_v0  ;;  %501 = vmatpush3.bf16.msra.mxu1 %v504_v0  ;;  %v507_v3 = vld [vmem:[%s811_s0 + $0x40] sm:$0xff]   ;;  %v509_v5 = vld [vmem:[%s811_s0 + $0x48] sm:$0xff]   ;;  %v511_v7 = vld [vmem:[%s811_s0 + $0x50] sm:$0xff]  }
  0x15   :  { %465 = vmatprep.subr.bf16.mxu0 %v505_v1  ;;  %500 = vmatprep.subr.bf16.mxu1 %v505_v1  ;;  %v512_v8 = vld [vmem:[%s811_s0 + $0x18] sm:$0xff]   ;;  %v514_v10 = vld [vmem:[%s811_s0 + $0x20] sm:$0xff]   ;;  %v516_v12 = vld [vmem:[%s811_s0 + $0x28] sm:$0xff]  }
  0x16   :  { %467 = vmatprep.mubr.msk.bf16.mxu0 %vm162_vm0, %v506_v2  ;;  %483 = vmatprep.mubr.msk.bf16.mxu1 %vm162_vm0, %v507_v3  ;;  %v513_v9 = vld [vmem:[%s811_s0 + $0x58] sm:$0xff]   ;;  %v515_v11 = vld [vmem:[%s811_s0 + $0x60] sm:$0xff]   ;;  %v517_v13 = vld [vmem:[%s811_s0 + $0x68] sm:$0xff]  }
  0x17   :  { %v518_v14 = vld [vmem:[%s811_s0 + $0x30] sm:$0xff]   ;;  %v520_v16 = vld [vmem:[%s811_s0 + $0x38] sm:$0xff]   ;;  %v649_v18 = vld [vmem:[#allocation2] ss:$0 sm:$0xff] }
  0x18   :  { %466 = vmatpush3.bf16.msra.mxu0 %v505_v1  ;;  %502 = vmatpush3.bf16.msra.mxu1 %v505_v1  ;;  %v519_v15 = vld [vmem:[%s811_s0 + $0x70] sm:$0xff]   ;;  %v521_v17 = vld [vmem:[%s811_s0 + $0x78] sm:$0xff]  }
  0x1b   :  { %468 = vmatmul.mubr.msk.bf16.vlgmr.msra.gmra.mrb[0].mxu0 %vm162_vm0, %v508_v4  ;;  %484 = vmatmul.mubr.msk.bf16.vlgmr.msra.gmra.mrb[0].mxu1 %vm162_vm0, %v509_v5 }
  0x1c   :  { %471 = vmatprep.mubr.msk.bf16.mxu0 %vm162_vm0, %v510_v6  ;;  %487 = vmatprep.mubr.msk.bf16.mxu1 %vm162_vm0, %v511_v7 }
  0x23   :  { %472 = vmatmul.mubr.msk.bf16.gmra.mrb[4].mxu0 %vm162_vm0, %v512_v8  ;;  %488 = vmatmul.mubr.msk.bf16.gmra.mrb[4].mxu1 %vm162_vm0, %v513_v9 }
  0x24   :  { %475 = vmatprep.mubr.msk.bf16.mxu0 %vm162_vm0, %v514_v10  ;;  %491 = vmatprep.mubr.msk.bf16.mxu1 %vm162_vm0, %v515_v11 }
  0x2b   :  { %476 = vmatmul.mubr.msk.bf16.gmra.mrb[8].mxu0 %vm162_vm0, %v516_v12  ;;  %492 = vmatmul.mubr.msk.bf16.gmra.mrb[8].mxu1 %vm162_vm0, %v517_v13 }
  0x2c   :  { %479 = vmatprep.mubr.msk.bf16.mxu0 %vm162_vm0, %v518_v14  ;;  %495 = vmatprep.mubr.msk.bf16.mxu1 %vm162_vm0, %v519_v15 }
  0x33   :  { %480 = vmatmul.mubr.msk.bf16.gmra.mrb[12].mxu0 %vm162_vm0, %v520_v16  ;;  %496 = vmatmul.mubr.msk.bf16.gmra.mrb[12].mxu1 %vm162_vm0, %v521_v17 }
  0xee   :  { %v469_v19 = vpop.f32.mrb[0].mxu0  ;;  %v485_v20 = vpop.f32.mrb[0].mxu1 }
  0xef   :  { %v254_v21 = vadd.f32 %v469_v19, %v649_v18  ;;  %v318_v22 = vadd.f32 %v485_v20, %v649_v18  ;;  %v245_v23 = vpop.f32.mrb[1].mxu0  ;;  %v309_v24 = vpop.f32.mrb[1].mxu1 }
  0xf0   :  { %v246_v25 = vadd.f32 %v649_v18, %v245_v23  ;;  %v310_v26 = vadd.f32 %v649_v18, %v309_v24  ;;  %v470_v27 = vpop.f32.mrb[2].mxu0  ;;  %v486_v28 = vpop.f32.mrb[2].mxu1 }
  0xf1   :  { %375 = vst.msk [vmem:[%s814_s3 + $0x10] sm:$0xff] %vm372_vm1, %v254_v21  ;;  %391 = vst.msk [vmem:[%s814_s3 + $0x90] sm:$0xff] %vm372_vm1, %v318_v22  ;;  %v257_v29 = vadd.f32 %v470_v27, %v649_v18  ;;  %v321_v30 = vadd.f32 %v486_v28, %v649_v18  ;;  %v248_v31 = vpop.f32.mrb[3].mxu0  ;;  %v312_v32 = vpop.f32.mrb[3].mxu1 }
  0xf2   :  { %373 = vst.msk [vmem:[%s814_s3] sm:$0xff] %vm372_vm1, %v246_v25  ;;  %389 = vst.msk [vmem:[%s814_s3 + $0x80] sm:$0xff] %vm372_vm1, %v310_v26  ;;  %v249_v33 = vadd.f32 %v649_v18, %v248_v31  ;;  %v313_v34 = vadd.f32 %v649_v18, %v312_v32 }
  0xf3   :  { %376 = vst.msk [vmem:[%s814_s3 + $0x18] sm:$0xff] %vm372_vm1, %v257_v29  ;;  %392 = vst.msk [vmem:[%s814_s3 + $0x98] sm:$0xff] %vm372_vm1, %v321_v30 }
  0xf4   :  { %374 = vst.msk [vmem:[%s814_s3 + $0x8] sm:$0xff] %vm372_vm1, %v249_v33  ;;  %390 = vst.msk [vmem:[%s814_s3 + $0x88] sm:$0xff] %vm372_vm1, %v313_v34 }
  0xf6   :  { %v473_v35 = vpop.f32.mrb[4].mxu0  ;;  %v489_v36 = vpop.f32.mrb[4].mxu1 }
  0xf7   :  { %v270_v37 = vadd.f32 %v473_v35, %v649_v18  ;;  %v334_v38 = vadd.f32 %v489_v36, %v649_v18  ;;  %v261_v39 = vpop.f32.mrb[5].mxu0  ;;  %v325_v40 = vpop.f32.mrb[5].mxu1 }
  0xf8   :  { %v262_v41 = vadd.f32 %v649_v18, %v261_v39  ;;  %v326_v42 = vadd.f32 %v649_v18, %v325_v40  ;;  %v474_v43 = vpop.f32.mrb[6].mxu0  ;;  %v490_v44 = vpop.f32.mrb[6].mxu1 }
  0xf9   :  { %379 = vst.msk [vmem:[%s814_s3 + $0x30] sm:$0xff] %vm372_vm1, %v270_v37  ;;  %395 = vst.msk [vmem:[%s814_s3 + $0xb0] sm:$0xff] %vm372_vm1, %v334_v38  ;;  %v273_v45 = vadd.f32 %v474_v43, %v649_v18  ;;  %v337_v46 = vadd.f32 %v490_v44, %v649_v18  ;;  %v264_v47 = vpop.f32.mrb[7].mxu0  ;;  %v328_v48 = vpop.f32.mrb[7].mxu1 }
  0xfa   :  { %377 = vst.msk [vmem:[%s814_s3 + $0x20] sm:$0xff] %vm372_vm1, %v262_v41  ;;  %393 = vst.msk [vmem:[%s814_s3 + $0xa0] sm:$0xff] %vm372_vm1, %v326_v42  ;;  %v265_v49 = vadd.f32 %v649_v18, %v264_v47  ;;  %v329_v50 = vadd.f32 %v649_v18, %v328_v48 }
  0xfb   :  { %380 = vst.msk [vmem:[%s814_s3 + $0x38] sm:$0xff] %vm372_vm1, %v273_v45  ;;  %396 = vst.msk [vmem:[%s814_s3 + $0xb8] sm:$0xff] %vm372_vm1, %v337_v46 }
  0xfc   :  { %378 = vst.msk [vmem:[%s814_s3 + $0x28] sm:$0xff] %vm372_vm1, %v265_v49  ;;  %394 = vst.msk [vmem:[%s814_s3 + $0xa8] sm:$0xff] %vm372_vm1, %v329_v50 }
  0xfe   :  { %v477_v51 = vpop.f32.mrb[8].mxu0  ;;  %v493_v52 = vpop.f32.mrb[8].mxu1 }
  0xff   :  { %v286_v53 = vadd.f32 %v477_v51, %v649_v18  ;;  %v350_v54 = vadd.f32 %v493_v52, %v649_v18  ;;  %v277_v55 = vpop.f32.mrb[9].mxu0  ;;  %v341_v56 = vpop.f32.mrb[9].mxu1 }
 0x100   :  { %v278_v57 = vadd.f32 %v649_v18, %v277_v55  ;;  %v342_v58 = vadd.f32 %v649_v18, %v341_v56  ;;  %v478_v59 = vpop.f32.mrb[10].mxu0  ;;  %v494_v60 = vpop.f32.mrb[10].mxu1 }
 0x101   :  { %383 = vst.msk [vmem:[%s814_s3 + $0x50] sm:$0xff] %vm372_vm1, %v286_v53  ;;  %399 = vst.msk [vmem:[%s814_s3 + $0xd0] sm:$0xff] %vm372_vm1, %v350_v54  ;;  %v289_v61 = vadd.f32 %v478_v59, %v649_v18  ;;  %v353_v62 = vadd.f32 %v494_v60, %v649_v18  ;;  %v280_v63 = vpop.f32.mrb[11].mxu0  ;;  %v344_v0 = vpop.f32.mrb[11].mxu1 }
 0x102   :  { %381 = vst.msk [vmem:[%s814_s3 + $0x40] sm:$0xff] %vm372_vm1, %v278_v57  ;;  %397 = vst.msk [vmem:[%s814_s3 + $0xc0] sm:$0xff] %vm372_vm1, %v342_v58  ;;  %v281_v1 = vadd.f32 %v649_v18, %v280_v63  ;;  %v345_v2 = vadd.f32 %v649_v18, %v344_v0 }
 0x103   :  { %384 = vst.msk [vmem:[%s814_s3 + $0x58] sm:$0xff] %vm372_vm1, %v289_v61  ;;  %400 = vst.msk [vmem:[%s814_s3 + $0xd8] sm:$0xff] %vm372_vm1, %v353_v62 }
 0x104   :  { %382 = vst.msk [vmem:[%s814_s3 + $0x48] sm:$0xff] %vm372_vm1, %v281_v1  ;;  %398 = vst.msk [vmem:[%s814_s3 + $0xc8] sm:$0xff] %vm372_vm1, %v345_v2 }
 0x106   :  { %v481_v3 = vpop.f32.mrb[12].mxu0  ;;  %v497_v4 = vpop.f32.mrb[12].mxu1 }
 0x107   :  { %v302_v5 = vadd.f32 %v481_v3, %v649_v18  ;;  %v366_v6 = vadd.f32 %v497_v4, %v649_v18  ;;  %v293_v7 = vpop.f32.mrb[13].mxu0  ;;  %v357_v8 = vpop.f32.mrb[13].mxu1 }
 0x108   :  { %v294_v9 = vadd.f32 %v649_v18, %v293_v7  ;;  %v358_v10 = vadd.f32 %v649_v18, %v357_v8  ;;  %v482_v11 = vpop.f32.mrb[14].mxu0  ;;  %v498_v12 = vpop.f32.mrb[14].mxu1 }
 0x109   :  { %387 = vst.msk [vmem:[%s814_s3 + $0x70] sm:$0xff] %vm372_vm1, %v302_v5  ;;  %403 = vst.msk [vmem:[%s814_s3 + $0xf0] sm:$0xff] %vm372_vm1, %v366_v6  ;;  %v305_v13 = vadd.f32 %v482_v11, %v649_v18  ;;  %v369_v14 = vadd.f32 %v498_v12, %v649_v18  ;;  %v296_v15 = vpop.f32.mrb[15].mxu0  ;;  %v360_v16 = vpop.f32.mrb[15].mxu1 }
 0x10a   :  { %385 = vst.msk [vmem:[%s814_s3 + $0x60] sm:$0xff] %vm372_vm1, %v294_v9  ;;  %401 = vst.msk [vmem:[%s814_s3 + $0xe0] sm:$0xff] %vm372_vm1, %v358_v10  ;;  %v297_v17 = vadd.f32 %v649_v18, %v296_v15  ;;  %v361_v19 = vadd.f32 %v649_v18, %v360_v16 }
 0x10b   :  { %388 = vst.msk [vmem:[%s814_s3 + $0x78] sm:$0xff] %vm372_vm1, %v305_v13  ;;  %404 = vst.msk [vmem:[%s814_s3 + $0xf8] sm:$0xff] %vm372_vm1, %v369_v14 }
 0x10c   :  { %386 = vst.msk [vmem:[%s814_s3 + $0x68] sm:$0xff] %vm372_vm1, %v297_v17  ;;  %402 = vst.msk [vmem:[%s814_s3 + $0xe8] sm:$0xff] %vm372_vm1, %v361_v19 }
 0x10d   :  { %409 = vsyncpa [#allocation3], 1 }

// kernel: precompute_targets.26
= control target key start
LH: loop header
LB: loop body
LE: loop exit
PB: predicated region body
PF: predicated region fallthrough
CT: control target
= control target key end

     0   :  { %s102_s30 = smov 64   ;;  %vm88_vm0 = vcmask 523264   ;;  %s193_s0 = inlined_call_operand.vmem [shape: f32[8,2,8,128], index: 0, kind: input, shape index: {}]   ;;  %s194_s1 = inlined_call_operand.vmem [shape: f32[8,8,64], index: 1, kind: output, shape index: {}]  }
   0x1   :  { %v12_v0 = vld [vmem:[%s193_s0 + $0x20] sm:$0xff]  ;;  %v13_v1 = vld [vmem:[%s193_s0 + $0x28] sm:$0xff]  ;;  %v14_v7 = vld [vmem:[%s193_s0 + $0x30] sm:$0xff] }
   0x2   :  { %v8_v2 = vld [vmem:[%s193_s0] sm:$0xff]  ;;  %v28_v3 = vmax.f32 %v12_v0, 0.0  ;;  %v29_v4 = vmax.f32 %v13_v1, 0.0  ;;  %v9_v5 = vld [vmem:[%s193_s0 + $0x8] sm:$0xff]  ;;  %v15_v8 = vld [vmem:[%s193_s0 + $0x38] sm:$0xff]  ;;  %v30_v10 = vmax.f32 %v14_v7, 0.0 }
   0x3   :  { %v24_v6 = vmax.f32 %v8_v2, 0.0  ;;  %v25_v9 = vmax.f32 %v9_v5, 0.0  ;;  %v31_v11 = vmax.f32 %v15_v8, 0.0  ;;  %v10_v12 = vld [vmem:[%s193_s0 + $0x10] sm:$0xff]  ;;  %v11_v13 = vld [vmem:[%s193_s0 + $0x18] sm:$0xff]  ;;  %v16_v19 = vld [vmem:[%s193_s0 + $0x40] sm:$0xff] }
   0x4   :  { %v18_v14 = vld [vmem:[%s193_s0 + $0x50] sm:$0xff]  ;;  %v42_v15 = vmax.f32 %v28_v3, %v29_v4  ;;  %v26_v16 = vmax.f32 %v10_v12, 0.0  ;;  %v27_v17 = vmax.f32 %v11_v13, 0.0  ;;  %v19_v18 = vld [vmem:[%s193_s0 + $0x58] sm:$0xff]  ;;  %v17_v20 = vld [vmem:[%s193_s0 + $0x48] sm:$0xff]  ;;  %v32_v26 = vmax.f32 %v16_v19, 0.0 }
   0x5   :  { %v40_v21 = vmax.f32 %v24_v6, %v25_v9  ;;  %v43_v22 = vmax.f32 %v30_v10, %v31_v11  ;;  %v34_v23 = vmax.f32 %v18_v14, 0.0  ;;  %v35_v24 = vmax.f32 %v19_v18, 0.0  ;;  %v22_v28 = vld [vmem:[%s193_s0 + $0x70] sm:$0xff]  ;;  %v23_v29 = vld [vmem:[%s193_s0 + $0x78] sm:$0xff]  ;;  %v20_v30 = vld [vmem:[%s193_s0 + $0x60] sm:$0xff] }
   0x6   :  { %60 = vrot.lane.b32.xlu1 %v42_v15, %s102_s30  ;;  %v41_v25 = vmax.f32 %v26_v16, %v27_v17  ;;  %v33_v27 = vmax.f32 %v17_v20, 0.0  ;;  %v21_v31 = vld [vmem:[%s193_s0 + $0x68] sm:$0xff]  ;;  %v38_v33 = vmax.f32 %v22_v28, 0.0  ;;  %v39_v34 = vmax.f32 %v23_v29, 0.0 }
   0x7   :  { %56 = vrot.lane.b32.xlu0 %v40_v21, %s102_s30  ;;  %v45_v32 = vmax.f32 %v34_v23, %v35_v24  ;;  %v36_v36 = vmax.f32 %v20_v30, 0.0  ;;  %v37_v37 = vmax.f32 %v21_v31, 0.0 }
   0x8   :  { %v44_v35 = vmax.f32 %v32_v26, %v33_v27  ;;  %v47_v38 = vmax.f32 %v38_v33, %v39_v34 }
   0x9   :  { %v46_v39 = vmax.f32 %v36_v36, %v37_v37 }
   0xa   :  { %62 = vrot.lane.b32.xlu1 %v43_v22, %s102_s30 }
   0xb   :  { %58 = vrot.lane.b32.xlu0 %v41_v25, %s102_s30 }
   0xe   :  { %66 = vrot.lane.b32.xlu1 %v45_v32, %s102_s30 }
   0xf   :  { %64 = vrot.lane.b32.xlu0 %v44_v35, %s102_s30 }
  0x12   :  { %70 = vrot.lane.b32.xlu1 %v47_v38, %s102_s30 }
  0x13   :  { %68 = vrot.lane.b32.xlu0 %v46_v39, %s102_s30 }
  0x78   :  { %v61_v40 = vpop.permute.xlu1 %60 }
  0x79   :  { %v82_v41 = vmax.f32 %v42_v15, %v61_v40  ;;  %v57_v42 = vpop.permute.xlu0 %56 }
  0x7a   :  { %v80_v43 = vmax.f32 %v40_v21, %v57_v42 }
  0x7b   :  { %91 = vst.msk [vmem:[%s194_s1 + $0x10] sm:$0xff] %vm88_vm0, %v82_v41 }
  0x7c   :  { %89 = vst.msk [vmem:[%s194_s1] sm:$0xff] %vm88_vm0, %v80_v43  ;;  %v63_v44 = vpop.permute.xlu1 %62 }
  0x7d   :  { %v83_v45 = vmax.f32 %v43_v22, %v63_v44  ;;  %v59_v46 = vpop.permute.xlu0 %58 }
  0x7e   :  { %v81_v47 = vmax.f32 %v41_v25, %v59_v46 }
  0x7f   :  { %92 = vst.msk [vmem:[%s194_s1 + $0x18] sm:$0xff] %vm88_vm0, %v83_v45 }
  0x80   :  { %90 = vst.msk [vmem:[%s194_s1 + $0x8] sm:$0xff] %vm88_vm0, %v81_v47  ;;  %v67_v48 = vpop.permute.xlu1 %66 }
  0x81   :  { %v85_v49 = vmax.f32 %v45_v32, %v67_v48  ;;  %v65_v50 = vpop.permute.xlu0 %64 }
  0x82   :  { %v84_v51 = vmax.f32 %v44_v35, %v65_v50 }
  0x83   :  { %94 = vst.msk [vmem:[%s194_s1 + $0x28] sm:$0xff] %vm88_vm0, %v85_v49 }
  0x84   :  { %93 = vst.msk [vmem:[%s194_s1 + $0x20] sm:$0xff] %vm88_vm0, %v84_v51  ;;  %v71_v52 = vpop.permute.xlu1 %70 }
  0x85   :  { %v87_v53 = vmax.f32 %v47_v38, %v71_v52  ;;  %v69_v54 = vpop.permute.xlu0 %68 }
  0x86   :  { %v86_v55 = vmax.f32 %v46_v39, %v69_v54 }
  0x87   :  { %96 = vst.msk [vmem:[%s194_s1 + $0x38] sm:$0xff] %vm88_vm0, %v87_v53 }
  0x88   :  { %95 = vst.msk [vmem:[%s194_s1 + $0x30] sm:$0xff] %vm88_vm0, %v86_v55 }

// kernel: precompute_targets.25
= control target key start
LH: loop header
LB: loop body
LE: loop exit
PB: predicated region body
PF: predicated region fallthrough
CT: control target
= control target key end

     0   :  { %vm806_vm0 = vcmask 523264   ;;  %s2606_s1 = inlined_call_operand.vmem [shape: bf16[576,64], index: 1, kind: input, shape index: {}]   ;;  %s2607_s0 = inlined_call_operand.vmem [shape: bf16[256,576], index: 0, kind: input, shape index: {}]   ;;  %s2608_s2 = inlined_call_operand.vmem [shape: f32[1,64], index: 2, kind: input, shape index: {}]   ;;  %s2609_s3 = inlined_call_operand.vmem [shape: f32[256,64], index: 3, kind: output, shape index: {}]  }
   0x1   :  { %v1807_v0 = vld [vmem:[%s2606_s1 + $0x40] sm:$0xff]   ;;  %v1809_v2 = vld [vmem:[%s2606_s1 + $0x48] sm:$0xff]   ;;  %v1811_v4 = vld [vmem:[%s2606_s1 + $0x50] sm:$0xff]  }
   0x2   :  { %v1808_v1 = vld [vmem:[%s2606_s1] sm:$0xff]   ;;  %1507 = vmatprep.subr.bf16.mxu0 %v1807_v0  ;;  %1791 = vmatprep.subr.bf16.mxu1 %v1807_v0  ;;  %v1810_v3 = vld [vmem:[%s2606_s1 + $0x8] sm:$0xff]   ;;  %v1812_v5 = vld [vmem:[%s2606_s1 + $0x10] sm:$0xff]  }
   0x3   :  { %1508 = vmatpush3.bf16.msra.mxu0 %v1808_v1  ;;  %1799 = vmatpush3.bf16.msra.mxu1 %v1808_v1  ;;  %v1813_v6 = vld [vmem:[%s2606_s1 + $0x58] sm:$0xff]   ;;  %v1815_v8 = vld [vmem:[%s2606_s1 + $0x60] sm:$0xff]   ;;  %v1817_v10 = vld [vmem:[%s2606_s1 + $0x68] sm:$0xff]  }
   0x4   :  { %1509 = vmatprep.subr.bf16.mxu0 %v1809_v2  ;;  %1792 = vmatprep.subr.bf16.mxu1 %v1809_v2  ;;  %v1814_v7 = vld [vmem:[%s2606_s1 + $0x18] sm:$0xff]   ;;  %v1816_v9 = vld [vmem:[%s2606_s1 + $0x20] sm:$0xff]   ;;  %v1818_v13 = vld [vmem:[%s2606_s1 + $0x28] sm:$0xff]  }
   0x5   :  { %v1825_v11 = vld [vmem:[%s2607_s0 + $0x4] ss:$20 sps:$4 sm:$0xff]   ;;  %v1819_v14 = vld [vmem:[%s2606_s1 + $0x70] sm:$0xff]   ;;  %v1831_v23 = vld [vmem:[%s2606_s1 + $0xc8] sm:$0xff]  }
   0x6   :  { %v1828_v12 = vld [vmem:[%s2607_s0 + $0x1e4] ss:$20 sps:$4 sm:$0xff]   ;;  %887 = vmatprep.mubr.bf16.mxu0 %v1825_v11  ;;  %v1820_v15 = vld [vmem:[%s2606_s1 + $0x30] sm:$0xff]   ;;  %v1834_v24 = vld [vmem:[%s2607_s0 + $0x2c] ss:$20 sps:$4 sm:$0xff]  }
   0x7   :  { %1510 = vmatpush3.bf16.msra.mxu0 %v1810_v3  ;;  %1800 = vmatpush3.bf16.msra.mxu1 %v1810_v3  ;;  %v1821_v16 = vld [vmem:[%s2606_s1 + $0x78] sm:$0xff]   ;;  %v1829_v18 = vld [vmem:[%s2606_s1 + $0xc0] sm:$0xff]   ;;  %v1833_v26 = vld [vmem:[%s2606_s1 + $0x88] sm:$0xff]  }
   0x8   :  { %1511 = vmatprep.subr.bf16.mxu0 %v1811_v4  ;;  %1793 = vmatprep.subr.bf16.mxu1 %v1811_v4  ;;  %v1822_v17 = vld [vmem:[%s2606_s1 + $0x38] sm:$0xff]   ;;  %v1832_v19 = vld [vmem:[%s2606_s1 + $0x100] sm:$0xff]   ;;  %v1840_v28 = vld [vmem:[%s2606_s1 + $0xd0] sm:$0xff]  }
   0x9   :  { %983 = vmatprep.mubr.bf16.mxu1 %v1828_v12  ;;  %v1823_v20 = vld [vmem:[%s2607_s0] ss:$20 sps:$4 sm:$0xff]   ;;  %v1838_v27 = vld [vmem:[%s2607_s0 + $0x28] ss:$20 sps:$4 sm:$0xff]   ;;  %v1848_v36 = vld [vmem:[%s2607_s0 + $0x50] ss:$20 sps:$4 sm:$0xff]  }
   0xa   :  { %v1826_v21 = vld [vmem:[%s2607_s0 + $0x1e0] ss:$20 sps:$4 sm:$0xff]   ;;  %v1839_v29 = vld [vmem:[%s2607_s0 + $0x208] ss:$20 sps:$4 sm:$0xff]   ;;  %v1849_v38 = vld [vmem:[%s2607_s0 + $0x230] ss:$20 sps:$4 sm:$0xff]  }
   0xb   :  { %1512 = vmatpush3.bf16.msra.mxu0 %v1812_v5  ;;  %1801 = vmatpush3.bf16.msra.mxu1 %v1812_v5  ;;  %v1830_v22 = vld [vmem:[%s2606_s1 + $0x80] sm:$0xff]   ;;  %v1841_v30 = vld [vmem:[%s2606_s1 + $0x90] sm:$0xff]   ;;  %v1842_v31 = vld [vmem:[%s2606_s1 + $0xd8] sm:$0xff]  }
   0xc   :  { %1513 = vmatprep.subr.bf16.mxu0 %v1813_v6  ;;  %1794 = vmatprep.subr.bf16.mxu1 %v1813_v6  ;;  %v1836_v25 = vld [vmem:[%s2607_s0 + $0x20c] ss:$20 sps:$4 sm:$0xff]   ;;  %v1844_v32 = vld [vmem:[%s2607_s0 + $0x54] ss:$20 sps:$4 sm:$0xff]   ;;  %v1843_v34 = vld [vmem:[%s2606_s1 + $0x98] sm:$0xff]  }
   0xd   :  { %v1846_v33 = vld [vmem:[%s2607_s0 + $0x234] ss:$20 sps:$4 sm:$0xff]   ;;  %v1850_v37 = vld [vmem:[%s2606_s1 + $0xe0] sm:$0xff]   ;;  %v1854_v41 = vld [vmem:[%s2607_s0 + $0x7c] ss:$20 sps:$4 sm:$0xff]  }
   0xe   :  { %v1863_v35 = vld [vmem:[%s2606_s1 + $0x108] sm:$0xff]   ;;  %v1851_v39 = vld [vmem:[%s2606_s1 + $0xa0] sm:$0xff]   ;;  %v1856_v42 = vld [vmem:[%s2607_s0 + $0x25c] ss:$20 sps:$4 sm:$0xff]  }
   0xf   :  { %1514 = vmatpush3.bf16.msra.mxu0 %v1814_v7  ;;  %1802 = vmatpush3.bf16.msra.mxu1 %v1814_v7  ;;  %v1852_v40 = vld [vmem:[%s2606_s1 + $0xe8] sm:$0xff]   ;;  %v1860_v46 = vld [vmem:[%s2606_s1 + $0xf0] sm:$0xff]   ;;  %v1862_v49 = vld [vmem:[%s2606_s1 + $0xf8] sm:$0xff]  }
  0x10   :  { %1515 = vmatprep.subr.bf16.mxu0 %v1815_v8  ;;  %1795 = vmatprep.subr.bf16.mxu1 %v1815_v8  ;;  %v1853_v43 = vld [vmem:[%s2606_s1 + $0xa8] sm:$0xff]   ;;  %v1883_v47 = vld [vmem:[%s2606_s1 + $0x110] sm:$0xff]   ;;  %v1865_v50 = vld [vmem:[%s2607_s0 + $0xa4] ss:$20 sps:$4 sm:$0xff]  }
  0x11   :  { %v1858_v44 = vld [vmem:[%s2607_s0 + $0x78] ss:$20 sps:$4 sm:$0xff]   ;;  %v1861_v48 = vld [vmem:[%s2606_s1 + $0xb0] sm:$0xff]   ;;  %v1867_v53 = vld [vmem:[%s2607_s0 + $0x8] ss:$20 sps:$4 sm:$0xff]  }
  0x12   :  { %v1859_v45 = vld [vmem:[%s2607_s0 + $0x258] ss:$20 sps:$4 sm:$0xff]   ;;  %v1870_v54 = vld [vmem:[%s2607_s0 + $0xa0] ss:$20 sps:$4 sm:$0xff]   ;;  %v1875_v58 = vld [vmem:[%s2607_s0 + $0xc8] ss:$20 sps:$4 sm:$0xff]  }
  0x13   :  { %1516 = vmatpush3.bf16.msra.mxu0 %v1816_v9  ;;  %1803 = vmatpush3.bf16.msra.mxu1 %v1816_v9  ;;  %v1869_v51 = vld [vmem:[%s2607_s0 + $0xc] ss:$20 sps:$4 sm:$0xff]   ;;  %v1864_v52 = vld [vmem:[%s2606_s1 + $0xb8] sm:$0xff]   ;;  %v1873_v57 = vld [vmem:[%s2607_s0 + $0x34] ss:$20 sps:$4 sm:$0xff]  }
  0x14   :  { %1517 = vmatprep.subr.bf16.mxu0 %v1817_v10  ;;  %1796 = vmatprep.subr.bf16.mxu1 %v1817_v10  ;;  %v1871_v55 = vld [vmem:[%s2607_s0 + $0xcc] ss:$20 sps:$4 sm:$0xff]   ;;  %v1902_v56 = vld [vmem:[%s2606_s1 + $0x118] sm:$0xff]   ;;  %v1876_v59 = vld [vmem:[%s2607_s0 + $0x30] ss:$20 sps:$4 sm:$0xff]  }
  0x15   :  { %v1877_v60 = vld [vmem:[%s2607_s0 + $0xf4] ss:$20 sps:$4 sm:$0xff]   ;;  %v1879_v61 = vld [vmem:[%s2607_s0 + $0x5c] ss:$20 sps:$4 sm:$0xff]   ;;  %v1882_v63 = vld [vmem:[%s2607_s0 + $0x58] ss:$20 sps:$4 sm:$0xff]  }
  0x16   :  { %v1881_v62 = vld [vmem:[%s2607_s0 + $0xf0] ss:$20 sps:$4 sm:$0xff]   ;;  %v1888_v2 = vld [vmem:[%s2607_s0 + $0x118] ss:$20 sps:$4 sm:$0xff]   ;;  %v1889_v3 = vld [vmem:[%s2607_s0 + $0x80] ss:$20 sps:$4 sm:$0xff]  }
  0x17   :  { %1518 = vmatpush3.bf16.msra.mxu0 %v1818_v13  ;;  %1804 = vmatpush3.bf16.msra.mxu1 %v1818_v13  ;;  %v1884_v0 = vld [vmem:[%s2607_s0 + $0x11c] ss:$20 sps:$4 sm:$0xff]   ;;  %v1886_v1 = vld [vmem:[%s2607_s0 + $0x84] ss:$20 sps:$4 sm:$0xff]   ;;  %v1892_v5 = vld [vmem:[%s2607_s0 + $0xac] ss:$20 sps:$4 sm:$0xff]  }
  0x18   :  { %1519 = vmatprep.subr.bf16.mxu0 %v1819_v14  ;;  %1797 = vmatprep.subr.bf16.mxu1 %v1819_v14  ;;  %v1890_v4 = vld [vmem:[%s2607_s0 + $0x144] ss:$20 sps:$4 sm:$0xff]   ;;  %v1894_v6 = vld [vmem:[%s2607_s0 + $0x140] ss:$20 sps:$4 sm:$0xff]   ;;  %v1895_v7 = vld [vmem:[%s2607_s0 + $0xa8] ss:$20 sps:$4 sm:$0xff]  }
  0x19   :  { %v1896_v8 = vld [vmem:[%s2607_s0 + $0x16c] ss:$20 sps:$4 sm:$0xff]   ;;  %v1898_v9 = vld [vmem:[%s2607_s0 + $0xd4] ss:$20 sps:$4 sm:$0xff]   ;;  %v1901_v11 = vld [vmem:[%s2607_s0 + $0xd0] ss:$20 sps:$4 sm:$0xff]  }
  0x1a   :  { %v1900_v10 = vld [vmem:[%s2607_s0 + $0x168] ss:$20 sps:$4 sm:$0xff]   ;;  %v1907_v14 = vld [vmem:[%s2607_s0 + $0x190] ss:$20 sps:$4 sm:$0xff]  }
  0x1b   :  { %1520 = vmatpush3.bf16.msra.mxu0 %v1820_v15  ;;  %1805 = vmatpush3.bf16.msra.mxu1 %v1820_v15  ;;  %v1903_v12 = vld [vmem:[%s2607_s0 + $0x194] ss:$20 sps:$4 sm:$0xff]   ;;  %v1905_v13 = vld [vmem:[%s2607_s0 + $0xfc] ss:$20 sps:$4 sm:$0xff]   ;;  %v1908_v15 = vld [vmem:[%s2607_s0 + $0xf8] ss:$20 sps:$4 sm:$0xff]  }
  0x1c   :  { %1521 = vmatprep.subr.bf16.mxu0 %v1821_v16  ;;  %1798 = vmatprep.subr.bf16.mxu1 %v1821_v16  ;;  %v1909_v16 = vld [vmem:[%s2607_s0 + $0x1bc] ss:$20 sps:$4 sm:$0xff]  }
  0x1f   :  { %1522 = vmatpush3.bf16.msra.mxu0 %v1822_v17  ;;  %1806 = vmatpush3.bf16.msra.mxu1 %v1822_v17  ;;  %v1911_v17 = vld [vmem:[%s2607_s0 + $0x124] ss:$20 sps:$4 sm:$0xff]  }
  0x20   :  { %1619 = vmatprep.subr.bf16.mxu1 %v1829_v18  ;;  %1751 = vmatprep.subr.bf16.mxu0 %v1832_v19  ;;  %v1913_v18 = vld [vmem:[%s2607_s0 + $0x1b8] ss:$20 sps:$4 sm:$0xff]  }
  0x22   :  { %888 = vmatmul.mubr.bf16.vlgmr.msra.gmra.mrb[0].mxu0 %v1823_v20  ;;  %984 = vmatmul.mubr.bf16.vlgmr.msra.gmra.mrb[0].mxu1 %v1826_v21  ;;  %v1915_v20 = vld [vmem:[%s2607_s0 + $0x14c] ss:$20 sps:$4 sm:$0xff]   ;;  %v1917_v21 = vld [vmem:[%s2607_s0 + $0x10] ss:$20 sps:$4 sm:$0xff]  }
  0x23   :  { %1620 = vmatpush3.bf16.msra.mxu1 %v1830_v22  ;;  %1752 = vmatpush3.bf16.msra.mxu0 %v1832_v19  ;;  %v1914_v19 = vld [vmem:[%s2607_s0 + $0x120] ss:$20 sps:$4 sm:$0xff]   ;;  %v1918_v22 = vld [vmem:[%s2607_s0 + $0x148] ss:$20 sps:$4 sm:$0xff]  }
  0x24   :  { %1621 = vmatprep.subr.bf16.mxu1 %v1831_v23  ;;  %895 = vmatprep.mubr.bf16.mxu0 %v1834_v24  ;;  %v1919_v23 = vld [vmem:[%s2607_s0 + $0x38] ss:$20 sps:$4 sm:$0xff]   ;;  %v1920_v24 = vld [vmem:[%s2607_s0 + $0x174] ss:$20 sps:$4 sm:$0xff]  }
  0x25   :  { %991 = vmatprep.mubr.bf16.mxu1 %v1836_v25  ;;  %1753 = vmatprep.subr.bf16.mxu0 %v1863_v35  ;;  %v1922_v25 = vld [vmem:[%s2607_s0 + $0x60] ss:$20 sps:$4 sm:$0xff]  }
  0x27   :  { %1622 = vmatpush3.bf16.msra.mxu1 %v1833_v26  ;;  %1754 = vmatpush3.bf16.msra.mxu0 %v1863_v35  ;;  %v1923_v26 = vld [vmem:[%s2607_s0 + $0x170] ss:$20 sps:$4 sm:$0xff]   ;;  %v1934_v35 = vld [vmem:[%s2607_s0 + $0x128] ss:$20 sps:$4 sm:$0xff]  }
  0x28   :  { %1623 = vmatprep.subr.bf16.mxu1 %v1840_v28  ;;  %1755 = vmatprep.subr.bf16.mxu0 %v1883_v47  ;;  %v1925_v28 = vld [vmem:[%s2607_s0 + $0x19c] ss:$20 sps:$4 sm:$0xff]  }
  0x2a   :  { %896 = vmatmul.mubr.bf16.gmra.mrb[4].mxu0 %v1838_v27  ;;  %992 = vmatmul.mubr.bf16.gmra.mrb[4].mxu1 %v1839_v29  ;;  %v1924_v27 = vld [vmem:[%s2607_s0 + $0x88] ss:$20 sps:$4 sm:$0xff]   ;;  %v1927_v29 = vld [vmem:[%s2607_s0 + $0xb0] ss:$20 sps:$4 sm:$0xff]  }
  0x2b   :  { %1624 = vmatpush3.bf16.msra.mxu1 %v1841_v30  ;;  %903 = vmatprep.mubr.bf16.mxu0 %v1844_v32  ;;  %v1928_v30 = vld [vmem:[%s2607_s0 + $0x198] ss:$20 sps:$4 sm:$0xff]  }
  0x2c   :  { %1625 = vmatprep.subr.bf16.mxu1 %v1842_v31  ;;  %999 = vmatprep.mubr.bf16.mxu1 %v1846_v33  ;;  %v1929_v31 = vld [vmem:[%s2607_s0 + $0xd8] ss:$20 sps:$4 sm:$0xff]   ;;  %v1932_v33 = vld [vmem:[%s2607_s0 + $0x100] ss:$20 sps:$4 sm:$0xff]  }
  0x2d   :  { %1756 = vmatpush3.bf16.msra.mxu0 %v1883_v47  ;;  %v1930_v32 = vld [vmem:[%s2607_s0 + $0x1c4] ss:$20 sps:$4 sm:$0xff]  }
  0x2e   :  { %1757 = vmatprep.subr.bf16.mxu0 %v1902_v56  ;;  %v1949_v47 = vld [vmem:[%s2607_s0 + $0x218] ss:$20 sps:$4 sm:$0xff]  }
  0x2f   :  { %1626 = vmatpush3.bf16.msra.mxu1 %v1843_v34  ;;  %v1933_v34 = vld [vmem:[%s2607_s0 + $0x1c0] ss:$20 sps:$4 sm:$0xff]  }
  0x30   :  { %1627 = vmatprep.subr.bf16.mxu1 %v1850_v37  ;;  %v1937_v37 = vld [vmem:[%s2607_s0 + $0x150] ss:$20 sps:$4 sm:$0xff]  }
  0x31   :  { %1758 = vmatpush3.bf16.msra.mxu0 %v1902_v56 }
  0x32   :  { %904 = vmatmul.mubr.bf16.gmra.mrb[8].mxu0 %v1848_v36  ;;  %1000 = vmatmul.mubr.bf16.gmra.mrb[8].mxu1 %v1849_v38  ;;  %v1935_v36 = vld [vmem:[%s2607_s0 + $0x1ec] ss:$20 sps:$4 sm:$0xff]   ;;  %v1938_v38 = vld [vmem:[%s2607_s0 + $0x1e8] ss:$20 sps:$4 sm:$0xff]  }
  0x33   :  { %1628 = vmatpush3.bf16.msra.mxu1 %v1851_v39  ;;  %911 = vmatprep.mubr.bf16.mxu0 %v1854_v41  ;;  %v1939_v39 = vld [vmem:[%s2607_s0 + $0x178] ss:$20 sps:$4 sm:$0xff]   ;;  %v1942_v41 = vld [vmem:[%s2607_s0 + $0x1a0] ss:$20 sps:$4 sm:$0xff]  }
  0x34   :  { %1629 = vmatprep.subr.bf16.mxu1 %v1852_v40  ;;  %1007 = vmatprep.mubr.bf16.mxu1 %v1856_v42  ;;  %v1940_v40 = vld [vmem:[%s2607_s0 + $0x214] ss:$20 sps:$4 sm:$0xff]   ;;  %v1943_v42 = vld [vmem:[%s2607_s0 + $0x210] ss:$20 sps:$4 sm:$0xff]  }
  0x37   :  { %1630 = vmatpush3.bf16.msra.mxu1 %v1853_v43  ;;  %v1944_v43 = vld [vmem:[%s2607_s0 + $0x1c8] ss:$20 sps:$4 sm:$0xff]  }
  0x38   :  { %1631 = vmatprep.subr.bf16.mxu1 %v1860_v46  ;;  %v1948_v46 = vld [vmem:[%s2607_s0 + $0x238] ss:$20 sps:$4 sm:$0xff]  }
  0x3a   :  { %912 = vmatmul.mubr.bf16.gmra.mrb[12].mxu0 %v1858_v44  ;;  %1008 = vmatmul.mubr.bf16.gmra.mrb[12].mxu1 %v1859_v45  ;;  %v1945_v44 = vld [vmem:[%s2607_s0 + $0x23c] ss:$20 sps:$4 sm:$0xff]  }
  0x3b   :  { %1632 = vmatpush3.bf16.msra.mxu1 %v1861_v48  ;;  %919 = vmatprep.mubr.bf16.mxu0 %v1865_v50  ;;  %v1947_v45 = vld [vmem:[%s2607_s0 + $0x1f0] ss:$20 sps:$4 sm:$0xff]   ;;  %v1953_v50 = vld [vmem:[%s2607_s0 + $0x260] ss:$20 sps:$4 sm:$0xff]  }
  0x3c   :  { %1633 = vmatprep.subr.bf16.mxu1 %v1862_v49  ;;  %1048 = vmatprep.mubr.bf16.mxu1 %v1869_v51  ;;  %v1950_v48 = vld [vmem:[%s2607_s0 + $0x264] ss:$20 sps:$4 sm:$0xff]   ;;  %v1952_v49 = vld [vmem:[%s2607_s0 + $0x240] ss:$20 sps:$4 sm:$0xff]   ;;  %v1954_v51 = vld [vmem:[%s2607_s0 + $0x268] ss:$20 sps:$4 sm:$0xff]  }
  0x3f   :  { %1634 = vmatpush3.bf16.msra.mxu1 %v1864_v52 }
  0x42   :  { %920 = vmatmul.mubr.bf16.gmra.mrb[16].mxu0 %v1870_v54  ;;  %1049 = vmatmul.mubr.bf16.vlgmr.msra.gmra.mrb[16].mxu1 %v1867_v53 }
  0x43   :  { %927 = vmatprep.mubr.bf16.mxu0 %v1871_v55  ;;  %1056 = vmatprep.mubr.bf16.mxu1 %v1873_v57 }
  0x4a   :  { %928 = vmatmul.mubr.bf16.gmra.mrb[20].mxu0 %v1875_v58  ;;  %1057 = vmatmul.mubr.bf16.gmra.mrb[20].mxu1 %v1876_v59 }
  0x4b   :  { %935 = vmatprep.mubr.bf16.mxu0 %v1877_v60  ;;  %1064 = vmatprep.mubr.bf16.mxu1 %v1879_v61 }
  0x52   :  { %936 = vmatmul.mubr.bf16.gmra.mrb[24].mxu0 %v1881_v62  ;;  %1065 = vmatmul.mubr.bf16.gmra.mrb[24].mxu1 %v1882_v63 }
  0x53   :  { %943 = vmatprep.mubr.bf16.mxu0 %v1884_v0  ;;  %1072 = vmatprep.mubr.bf16.mxu1 %v1886_v1 }
  0x5a   :  { %944 = vmatmul.mubr.bf16.gmra.mrb[28].mxu0 %v1888_v2  ;;  %1073 = vmatmul.mubr.bf16.gmra.mrb[28].mxu1 %v1889_v3 }
  0x5b   :  { %951 = vmatprep.mubr.bf16.mxu0 %v1890_v4  ;;  %1080 = vmatprep.mubr.bf16.mxu1 %v1892_v5 }
  0x62   :  { %952 = vmatmul.mubr.bf16.gmra.mrb[32].mxu0 %v1894_v6  ;;  %1081 = vmatmul.mubr.bf16.gmra.mrb[32].mxu1 %v1895_v7 }
  0x63   :  { %959 = vmatprep.mubr.bf16.mxu0 %v1896_v8  ;;  %1088 = vmatprep.mubr.bf16.mxu1 %v1898_v9 }
  0x6a   :  { %960 = vmatmul.mubr.bf16.gmra.mrb[36].mxu0 %v1900_v10  ;;  %1089 = vmatmul.mubr.bf16.gmra.mrb[36].mxu1 %v1901_v11 }
  0x6b   :  { %967 = vmatprep.mubr.bf16.mxu0 %v1903_v12  ;;  %1096 = vmatprep.mubr.bf16.mxu1 %v1905_v13 }
  0x72   :  { %968 = vmatmul.mubr.bf16.gmra.mrb[40].mxu0 %v1907_v14  ;;  %1097 = vmatmul.mubr.bf16.gmra.mrb[40].mxu1 %v1908_v15 }
  0x73   :  { %975 = vmatprep.mubr.bf16.mxu0 %v1909_v16  ;;  %1104 = vmatprep.mubr.bf16.mxu1 %v1911_v17 }
  0x7a   :  { %976 = vmatmul.mubr.bf16.gmra.mrb[44].mxu0 %v1913_v18  ;;  %1105 = vmatmul.mubr.bf16.gmra.mrb[44].mxu1 %v1914_v19 }
  0x7b   :  { %1112 = vmatprep.mubr.bf16.mxu1 %v1915_v20  ;;  %1759 = vmatprep.mubr.msk.bf16.mxu0 %vm806_vm0, %v1917_v21 }
  0x82   :  { %1113 = vmatmul.mubr.bf16.gmra.mrb[48].mxu1 %v1918_v22  ;;  %1760 = vmatmul.mubr.msk.bf16.vlgmr.msra.gmra.mrb[48].mxu0 %vm806_vm0, %v1919_v23 }
  0x83   :  { %1120 = vmatprep.mubr.bf16.mxu1 %v1920_v24  ;;  %1763 = vmatprep.mubr.msk.bf16.mxu0 %vm806_vm0, %v1922_v25 }
  0x8a   :  { %1121 = vmatmul.mubr.bf16.gmra.mrb[52].mxu1 %v1923_v26  ;;  %1764 = vmatmul.mubr.msk.bf16.gmra.mrb[52].mxu0 %vm806_vm0, %v1924_v27 }
  0x8b   :  { %1128 = vmatprep.mubr.bf16.mxu1 %v1925_v28  ;;  %1767 = vmatprep.mubr.msk.bf16.mxu0 %vm806_vm0, %v1927_v29 }
  0x92   :  { %1129 = vmatmul.mubr.bf16.gmra.mrb[56].mxu1 %v1928_v30  ;;  %1768 = vmatmul.mubr.msk.bf16.gmra.mrb[56].mxu0 %vm806_vm0, %v1929_v31 }
  0x93   :  { %1136 = vmatprep.mubr.bf16.mxu1 %v1930_v32  ;;  %1771 = vmatprep.mubr.msk.bf16.mxu0 %vm806_vm0, %v1932_v33 }
  0x9a   :  { %1137 = vmatmul.mubr.bf16.gmra.mrb[60].mxu1 %v1933_v34  ;;  %1772 = vmatmul.mubr.msk.bf16.gmra.mrb[60].mxu0 %vm806_vm0, %v1934_v35 }
  0x9b   :  { %1144 = vmatprep.mubr.bf16.mxu1 %v1935_v36  ;;  %1775 = vmatprep.mubr.msk.bf16.mxu0 %vm806_vm0, %v1937_v37 }
  0xa2   :  { %1145 = vmatmul.mubr.bf16.gmra.mrb[64].mxu1 %v1938_v38  ;;  %1776 = vmatmul.mubr.msk.bf16.gmra.mrb[64].mxu0 %vm806_vm0, %v1939_v39  ;;  %v2358_v38 = vld [vmem:[%s2608_s2] ss:$0 sm:$0xff] }
  0xa3   :  { %1152 = vmatprep.mubr.bf16.mxu1 %v1940_v40  ;;  %1779 = vmatprep.mubr.msk.bf16.mxu0 %vm806_vm0, %v1942_v41 }
  0xaa   :  { %1153 = vmatmul.mubr.bf16.gmra.mrb[68].mxu1 %v1943_v42  ;;  %1780 = vmatmul.mubr.msk.bf16.gmra.mrb[68].mxu0 %vm806_vm0, %v1944_v43 }
  0xab   :  { %1160 = vmatprep.mubr.bf16.mxu1 %v1945_v44  ;;  %1783 = vmatprep.mubr.msk.bf16.mxu0 %vm806_vm0, %v1947_v45 }
  0xb2   :  { %1161 = vmatmul.mubr.bf16.gmra.mrb[72].mxu1 %v1948_v46  ;;  %1784 = vmatmul.mubr.msk.bf16.gmra.mrb[72].mxu0 %vm806_vm0, %v1949_v47 }
  0xb3   :  { %1168 = vmatprep.mubr.bf16.mxu1 %v1950_v48  ;;  %1787 = vmatprep.mubr.msk.bf16.mxu0 %vm806_vm0, %v1952_v49 }
  0xba   :  { %1169 = vmatmul.mubr.bf16.gmra.mrb[76].mxu1 %v1953_v50  ;;  %1788 = vmatmul.mubr.msk.bf16.gmra.mrb[76].mxu0 %vm806_vm0, %v1954_v51 }
  0xf5   :  { %v1595_v52 = vpop.f32.mrb[0].mxu1  ;;  %v1523_v53 = vpop.f32.mrb[0].mxu0 }
  0xf6   :  { %v1596_v54 = vpop.f32.mrb[1].mxu1  ;;  %v1524_v55 = vpop.f32.mrb[1].mxu0 }
  0xf7   :  { %v2339_v56 = vadd.f32 %v1596_v54, %v1595_v52  ;;  %v1598_v57 = vpop.f32.mrb[2].mxu1  ;;  %v1525_v58 = vadd.f32 %v1524_v55, %v1523_v53  ;;  %v1526_v59 = vpop.f32.mrb[2].mxu0 }
  0xf8   :  { %v1599_v60 = vpop.f32.mrb[3].mxu1  ;;  %v1527_v61 = vpop.f32.mrb[3].mxu0 }
  0xf9   :  { %v2341_v62 = vadd.f32 %v1599_v60, %v1598_v57  ;;  %v1528_v63 = vadd.f32 %v1527_v61, %v1526_v59  ;;  %v890_v41 = vadd.f32 %v1525_v58, %v2358_v38 }
  0xfb   :  { %v893_v48 = vadd.f32 %v1528_v63, %v2358_v38 }
  0xfd   :  { %v1601_v0 = vpop.f32.mrb[4].mxu1  ;;  %v1529_v1 = vpop.f32.mrb[4].mxu0 }
  0xfe   :  { %v1602_v2 = vpop.f32.mrb[5].mxu1  ;;  %v1530_v3 = vpop.f32.mrb[5].mxu0 }
  0xff   :  { %v2343_v4 = vadd.f32 %v1602_v2, %v1601_v0  ;;  %v1604_v5 = vpop.f32.mrb[6].mxu1  ;;  %v1531_v6 = vadd.f32 %v1530_v3, %v1529_v1  ;;  %v1532_v7 = vpop.f32.mrb[6].mxu0 }
 0x100   :  { %v1605_v8 = vpop.f32.mrb[7].mxu1  ;;  %v1533_v9 = vpop.f32.mrb[7].mxu0 }
 0x101   :  { %v2345_v10 = vadd.f32 %v1605_v8, %v1604_v5  ;;  %v1534_v11 = vadd.f32 %v1533_v9, %v1532_v7  ;;  %v898_v58 = vadd.f32 %v1531_v6, %v2358_v38 }
 0x103   :  { %v901_v63 = vadd.f32 %v1534_v11, %v2358_v38 }
 0x105   :  { %v1607_v12 = vpop.f32.mrb[8].mxu1  ;;  %v1535_v13 = vpop.f32.mrb[8].mxu0 }
 0x106   :  { %v1608_v14 = vpop.f32.mrb[9].mxu1  ;;  %v1536_v15 = vpop.f32.mrb[9].mxu0 }
 0x107   :  { %v2347_v16 = vadd.f32 %v1608_v14, %v1607_v12  ;;  %v1610_v17 = vpop.f32.mrb[10].mxu1  ;;  %v1537_v18 = vadd.f32 %v1536_v15, %v1535_v13  ;;  %v1538_v19 = vpop.f32.mrb[10].mxu0 }
 0x108   :  { %v1611_v20 = vpop.f32.mrb[11].mxu1  ;;  %v1539_v21 = vpop.f32.mrb[11].mxu0 }
 0x109   :  { %v2349_v22 = vadd.f32 %v1611_v20, %v1610_v17  ;;  %v1540_v23 = vadd.f32 %v1539_v21, %v1538_v19  ;;  %v906_v6 = vadd.f32 %v1537_v18, %v2358_v38 }
 0x10b   :  { %v909_v11 = vadd.f32 %v1540_v23, %v2358_v38 }
 0x10d   :  { %v1613_v24 = vpop.f32.mrb[12].mxu1  ;;  %v1541_v25 = vpop.f32.mrb[12].mxu0 }
 0x10e   :  { %v1614_v26 = vpop.f32.mrb[13].mxu1  ;;  %v1542_v27 = vpop.f32.mrb[13].mxu0 }
 0x10f   :  { %v2351_v28 = vadd.f32 %v1614_v26, %v1613_v24  ;;  %v1616_v29 = vpop.f32.mrb[14].mxu1  ;;  %v1543_v30 = vadd.f32 %v1542_v27, %v1541_v25  ;;  %v1544_v31 = vpop.f32.mrb[14].mxu0 }
 0x110   :  { %v1617_v32 = vpop.f32.mrb[15].mxu1  ;;  %v1545_v33 = vpop.f32.mrb[15].mxu0 }
 0x111   :  { %v2353_v34 = vadd.f32 %v1617_v32, %v1616_v29  ;;  %v1546_v35 = vadd.f32 %v1545_v33, %v1544_v31  ;;  %v914_v18 = vadd.f32 %v1543_v30, %v2358_v38 }
 0x113   :  { %v917_v23 = vadd.f32 %v1546_v35, %v2358_v38 }
 0x115   :  { %v1635_v36 = vpop.f32.mrb[16].mxu1  ;;  %v1547_v37 = vpop.f32.mrb[16].mxu0 }
 0x116   :  { %v1636_v39 = vpop.f32.mrb[17].mxu1  ;;  %v1548_v40 = vpop.f32.mrb[17].mxu0 }
 0x117   :  { %v1637_v42 = vadd.f32 %v1636_v39, %v1635_v36  ;;  %v1638_v43 = vpop.f32.mrb[18].mxu1  ;;  %v1549_v44 = vadd.f32 %v1548_v40, %v1547_v37  ;;  %v1550_v45 = vpop.f32.mrb[18].mxu0 }
 0x118   :  { %v1639_v46 = vpop.f32.mrb[19].mxu1  ;;  %v1551_v47 = vpop.f32.mrb[19].mxu0 }
 0x119   :  { %v1640_v49 = vadd.f32 %v1639_v46, %v1638_v43  ;;  %v1552_v50 = vadd.f32 %v1551_v47, %v1550_v45  ;;  %v2362_v51 = vadd.f32 %v1637_v42, %v890_v41  ;;  %v922_v30 = vadd.f32 %v1549_v44, %v2358_v38 }
 0x11b   :  { %v2364_v52 = vadd.f32 %v1640_v49, %v893_v48  ;;  %v925_v35 = vadd.f32 %v1552_v50, %v2358_v38 }
 0x11d   :  { %v1641_v53 = vpop.f32.mrb[20].mxu1  ;;  %v1553_v54 = vpop.f32.mrb[20].mxu0 }
 0x11e   :  { %v1642_v55 = vpop.f32.mrb[21].mxu1  ;;  %v1554_v57 = vpop.f32.mrb[21].mxu0 }
 0x11f   :  { %v1643_v59 = vadd.f32 %v1642_v55, %v1641_v53  ;;  %v1644_v60 = vpop.f32.mrb[22].mxu1  ;;  %v1555_v61 = vadd.f32 %v1554_v57, %v1553_v54  ;;  %v1556_v0 = vpop.f32.mrb[22].mxu0 }
 0x120   :  { %v1645_v1 = vpop.f32.mrb[23].mxu1  ;;  %v1557_v2 = vpop.f32.mrb[23].mxu0 }
 0x121   :  { %v1646_v3 = vadd.f32 %v1645_v1, %v1644_v60  ;;  %v1558_v5 = vadd.f32 %v1557_v2, %v1556_v0  ;;  %v2368_v7 = vadd.f32 %v1643_v59, %v898_v58 }
 0x123   :  { %v2370_v8 = vadd.f32 %v1646_v3, %v901_v63 }
 0x125   :  { %v1647_v9 = vpop.f32.mrb[24].mxu1  ;;  %v1559_v12 = vpop.f32.mrb[24].mxu0 }
 0x126   :  { %v1648_v13 = vpop.f32.mrb[25].mxu1  ;;  %v1560_v14 = vpop.f32.mrb[25].mxu0 }
 0x127   :  { %v1649_v15 = vadd.f32 %v1648_v13, %v1647_v9  ;;  %v1650_v17 = vpop.f32.mrb[26].mxu1  ;;  %v1561_v19 = vadd.f32 %v1560_v14, %v1559_v12  ;;  %v1562_v20 = vpop.f32.mrb[26].mxu0 }
 0x128   :  { %v1651_v21 = vpop.f32.mrb[27].mxu1  ;;  %v1563_v24 = vpop.f32.mrb[27].mxu0 }
 0x129   :  { %v1652_v25 = vadd.f32 %v1651_v21, %v1650_v17  ;;  %v1564_v26 = vadd.f32 %v1563_v24, %v1562_v20  ;;  %v2374_v27 = vadd.f32 %v1649_v15, %v906_v6  ;;  %v930_v6 = vadd.f32 %v1555_v61, %v2358_v38 }
 0x12b   :  { %v2376_v29 = vadd.f32 %v1652_v25, %v909_v11  ;;  %v933_v11 = vadd.f32 %v1558_v5, %v2358_v38 }
 0x12d   :  { %v1653_v31 = vpop.f32.mrb[28].mxu1  ;;  %v1565_v32 = vpop.f32.mrb[28].mxu0 }
 0x12e   :  { %v1654_v33 = vpop.f32.mrb[29].mxu1  ;;  %v1566_v36 = vpop.f32.mrb[29].mxu0 }
 0x12f   :  { %v1655_v37 = vadd.f32 %v1654_v33, %v1653_v31  ;;  %v1656_v39 = vpop.f32.mrb[30].mxu1  ;;  %v1567_v40 = vadd.f32 %v1566_v36, %v1565_v32  ;;  %v1568_v41 = vpop.f32.mrb[30].mxu0 }
 0x130   :  { %v1657_v42 = vpop.f32.mrb[31].mxu1  ;;  %v1569_v43 = vpop.f32.mrb[31].mxu0 }
 0x131   :  { %v1658_v45 = vadd.f32 %v1657_v42, %v1656_v39  ;;  %v1570_v46 = vadd.f32 %v1569_v43, %v1568_v41  ;;  %v2380_v47 = vadd.f32 %v1655_v37, %v914_v18  ;;  %v938_v39 = vadd.f32 %v1561_v19, %v2358_v38 }
 0x133   :  { %v2382_v48 = vadd.f32 %v1658_v45, %v917_v23 }
 0x135   :  { %v1659_v49 = vpop.f32.mrb[32].mxu1  ;;  %v1571_v53 = vpop.f32.mrb[32].mxu0 }
 0x136   :  { %v1660_v54 = vpop.f32.mrb[33].mxu1  ;;  %v1572_v55 = vpop.f32.mrb[33].mxu0 }
 0x137   :  { %v1661_v57 = vadd.f32 %v1660_v54, %v1659_v49  ;;  %v1662_v58 = vpop.f32.mrb[34].mxu1  ;;  %v2385_v59 = vadd.f32 %v1572_v55, %v1571_v53  ;;  %v1574_v60 = vpop.f32.mrb[34].mxu0  ;;  %v941_v49 = vadd.f32 %v1564_v26, %v2358_v38 }
 0x138   :  { %v1663_v0 = vpop.f32.mrb[35].mxu1  ;;  %v1575_v1 = vpop.f32.mrb[35].mxu0 }
 0x139   :  { %v1664_v2 = vadd.f32 %v1663_v0, %v1662_v58  ;;  %v2388_v63 = vadd.f32 %v1575_v1, %v1574_v60  ;;  %v2390_v3 = vadd.f32 %v1661_v57, %v922_v30  ;;  %v946_v0 = vadd.f32 %v1567_v40, %v2358_v38 }
 0x13b   :  { %v2392_v9 = vadd.f32 %v1664_v2, %v925_v35 }
 0x13d   :  { %v1665_v12 = vpop.f32.mrb[36].mxu1  ;;  %v1577_v13 = vpop.f32.mrb[36].mxu0 }
 0x13e   :  { %v1666_v14 = vpop.f32.mrb[37].mxu1  ;;  %v1578_v44 = vpop.f32.mrb[37].mxu0 }
 0x13f   :  { %v1667_v15 = vadd.f32 %v1666_v14, %v1665_v12  ;;  %v1668_v17 = vpop.f32.mrb[38].mxu1  ;;  %v2395_v20 = vadd.f32 %v1578_v44, %v1577_v13  ;;  %v1580_v21 = vpop.f32.mrb[38].mxu0  ;;  %v949_v14 = vadd.f32 %v1570_v46, %v2358_v38 }
 0x140   :  { %v1669_v24 = vpop.f32.mrb[39].mxu1  ;;  %v1581_v50 = vpop.f32.mrb[39].mxu0 }
 0x141   :  { %v1670_v25 = vadd.f32 %v1669_v24, %v1668_v17  ;;  %v2398_v31 = vadd.f32 %v1581_v50, %v1580_v21  ;;  %v2400_v32 = vadd.f32 %v1667_v15, %v930_v6 }
 0x143   :  { %v2402_v33 = vadd.f32 %v1670_v25, %v933_v11  ;;  %v954_v25 = vadd.f32 %v2385_v59, %v2358_v38 }
 0x145   :  { %v1671_v36 = vpop.f32.mrb[40].mxu1  ;;  %v1583_v18 = vpop.f32.mrb[40].mxu0 }
 0x146   :  { %v1672_v37 = vpop.f32.mrb[41].mxu1  ;;  %v1584_v61 = vpop.f32.mrb[41].mxu0 }
 0x147   :  { %v1673_v41 = vadd.f32 %v1672_v37, %v1671_v36  ;;  %v1674_v42 = vpop.f32.mrb[42].mxu1  ;;  %v2405_v43 = vadd.f32 %v1584_v61, %v1583_v18  ;;  %v1586_v23 = vpop.f32.mrb[42].mxu0 }
 0x148   :  { %v1675_v45 = vpop.f32.mrb[43].mxu1  ;;  %v1587_v5 = vpop.f32.mrb[43].mxu0 }
 0x149   :  { %v1676_v53 = vadd.f32 %v1675_v45, %v1674_v42  ;;  %v2408_v54 = vadd.f32 %v1587_v5, %v1586_v23  ;;  %v2410_v55 = vadd.f32 %v1673_v41, %v938_v39 }
 0x14b   :  { %v2412_v30 = vadd.f32 %v1676_v53, %v941_v49  ;;  %v962_v49 = vadd.f32 %v2395_v20, %v2358_v38 }
 0x14d   :  { %v1677_v57 = vpop.f32.mrb[44].mxu1  ;;  %v1589_v58 = vpop.f32.mrb[44].mxu0 }
 0x14e   :  { %v1678_v60 = vpop.f32.mrb[45].mxu1  ;;  %v1590_v19 = vpop.f32.mrb[45].mxu0 }
 0x14f   :  { %v1679_v1 = vadd.f32 %v1678_v60, %v1677_v57  ;;  %v1680_v35 = vpop.f32.mrb[46].mxu1  ;;  %v2415_v2 = vadd.f32 %v1590_v19, %v1589_v58  ;;  %v1592_v12 = vpop.f32.mrb[46].mxu0 }
 0x150   :  { %v1681_v13 = vpop.f32.mrb[47].mxu1  ;;  %v1593_v26 = vpop.f32.mrb[47].mxu0 }
 0x151   :  { %v1682_v44 = vadd.f32 %v1681_v13, %v1680_v35  ;;  %v2418_v6 = vadd.f32 %v1593_v26, %v1592_v12  ;;  %v2420_v15 = vadd.f32 %v1679_v1, %v946_v0 }
 0x153   :  { %v2422_v17 = vadd.f32 %v1682_v44, %v949_v14 }
 0x155   :  { %v1683_v21 = vpop.f32.mrb[48].mxu1  ;;  %v1761_v24 = vpop.f32.mrb[48].mxu0 }
 0x156   :  { %v1220_v40 = vadd.f32 %v1761_v24, %v2368_v7  ;;  %v1684_v50 = vpop.f32.mrb[49].mxu1  ;;  %v1211_v11 = vpop.f32.mrb[49].mxu0  ;;  %v957_v7 = vadd.f32 %v2388_v63, %v2358_v38 }
 0x157   :  { %v1685_v36 = vadd.f32 %v1684_v50, %v1683_v21  ;;  %v1212_v18 = vadd.f32 %v1211_v11, %v2362_v51  ;;  %v1686_v46 = vpop.f32.mrb[50].mxu1  ;;  %v1762_v37 = vpop.f32.mrb[50].mxu0 }
 0x158   :  { %1340 = vst.msk [vmem:[%s2609_s3 + $0x10] sm:$0xff] %vm806_vm0, %v1220_v40  ;;  %v1223_v61 = vadd.f32 %v1762_v37, %v2370_v8  ;;  %v1687_v39 = vpop.f32.mrb[51].mxu1  ;;  %v1214_v41 = vpop.f32.mrb[51].mxu0 }
 0x159   :  { %1338 = vst.msk [vmem:[%s2609_s3] sm:$0xff] %vm806_vm0, %v1212_v18  ;;  %v1688_v51 = vadd.f32 %v1687_v39, %v1686_v46  ;;  %v1215_v59 = vadd.f32 %v1214_v41, %v2364_v52  ;;  %v2440_v42 = vadd.f32 %v1685_v36, %v954_v25 }
 0x15a   :  { %1341 = vst.msk [vmem:[%s2609_s3 + $0x18] sm:$0xff] %vm806_vm0, %v1223_v61 }
 0x15b   :  { %1339 = vst.msk [vmem:[%s2609_s3 + $0x8] sm:$0xff] %vm806_vm0, %v1215_v59  ;;  %v2450_v8 = vadd.f32 %v1688_v51, %v957_v7 }
 0x15d   :  { %v1689_v63 = vpop.f32.mrb[52].mxu1  ;;  %v1765_v23 = vpop.f32.mrb[52].mxu0 }
 0x15e   :  { %v1236_v45 = vadd.f32 %v1765_v23, %v2380_v47  ;;  %v1690_v5 = vpop.f32.mrb[53].mxu1  ;;  %v1227_v52 = vpop.f32.mrb[53].mxu0  ;;  %v965_v47 = vadd.f32 %v2398_v31, %v2358_v38 }
 0x15f   :  { %v1691_v53 = vadd.f32 %v1690_v5, %v1689_v63  ;;  %v1228_v57 = vadd.f32 %v1227_v52, %v2374_v27  ;;  %v1692_v58 = vpop.f32.mrb[54].mxu1  ;;  %v1766_v60 = vpop.f32.mrb[54].mxu0 }
 0x160   :  { %1344 = vst.msk [vmem:[%s2609_s3 + $0x30] sm:$0xff] %vm806_vm0, %v1236_v45  ;;  %v1239_v19 = vadd.f32 %v1766_v60, %v2382_v48  ;;  %v1693_v0 = vpop.f32.mrb[55].mxu1  ;;  %v1230_v1 = vpop.f32.mrb[55].mxu0 }
 0x161   :  { %1342 = vst.msk [vmem:[%s2609_s3 + $0x20] sm:$0xff] %vm806_vm0, %v1228_v57  ;;  %v1694_v27 = vadd.f32 %v1693_v0, %v1692_v58  ;;  %v1231_v20 = vadd.f32 %v1230_v1, %v2376_v29  ;;  %v1123_v35 = vadd.f32 %v1691_v53, %v962_v49  ;;  %v970_v29 = vadd.f32 %v2405_v43, %v2358_v38 }
 0x162   :  { %1345 = vst.msk [vmem:[%s2609_s3 + $0x38] sm:$0xff] %vm806_vm0, %v1239_v19 }
 0x163   :  { %1343 = vst.msk [vmem:[%s2609_s3 + $0x28] sm:$0xff] %vm806_vm0, %v1231_v20  ;;  %v1126_v48 = vadd.f32 %v1694_v27, %v965_v47  ;;  %v989_v27 = vadd.f32 %v2341_v62, %v2358_v38 }
 0x165   :  { %v1695_v31 = vpop.f32.mrb[56].mxu1  ;;  %v1769_v12 = vpop.f32.mrb[56].mxu0 }
 0x166   :  { %v1252_v13 = vadd.f32 %v1769_v12, %v2400_v32  ;;  %v1696_v26 = vpop.f32.mrb[57].mxu1  ;;  %v1243_v14 = vpop.f32.mrb[57].mxu0  ;;  %v973_v32 = vadd.f32 %v2408_v54, %v2358_v38 }
 0x167   :  { %v1697_v44 = vadd.f32 %v1696_v26, %v1695_v31  ;;  %v1244_v21 = vadd.f32 %v1243_v14, %v2390_v3  ;;  %v1698_v24 = vpop.f32.mrb[58].mxu1  ;;  %v1770_v40 = vpop.f32.mrb[58].mxu0 }
 0x168   :  { %1348 = vst.msk [vmem:[%s2609_s3 + $0x50] sm:$0xff] %vm806_vm0, %v1252_v13  ;;  %v1255_v50 = vadd.f32 %v1770_v40, %v2402_v33  ;;  %v1699_v11 = vpop.f32.mrb[59].mxu1  ;;  %v1246_v25 = vpop.f32.mrb[59].mxu0 }
 0x169   :  { %1346 = vst.msk [vmem:[%s2609_s3 + $0x40] sm:$0xff] %vm806_vm0, %v1244_v21  ;;  %v1700_v3 = vadd.f32 %v1699_v11, %v1698_v24  ;;  %v1247_v43 = vadd.f32 %v1246_v25, %v2392_v9  ;;  %v1131_v36 = vadd.f32 %v1697_v44, %v970_v29  ;;  %v978_v9 = vadd.f32 %v2415_v2, %v2358_v38 }
 0x16a   :  { %1349 = vst.msk [vmem:[%s2609_s3 + $0x58] sm:$0xff] %vm806_vm0, %v1255_v50  ;;  %v997_v50 = vadd.f32 %v2345_v10, %v2358_v38 }
 0x16b   :  { %1347 = vst.msk [vmem:[%s2609_s3 + $0x48] sm:$0xff] %vm806_vm0, %v1247_v43  ;;  %v1134_v33 = vadd.f32 %v1700_v3, %v973_v32 }
 0x16d   :  { %v1701_v54 = vpop.f32.mrb[60].mxu1  ;;  %v1773_v18 = vpop.f32.mrb[60].mxu0 }
 0x16e   :  { %v1268_v46 = vadd.f32 %v1773_v18, %v2420_v15  ;;  %v1702_v37 = vpop.f32.mrb[61].mxu1  ;;  %v1259_v61 = vpop.f32.mrb[61].mxu0  ;;  %v981_v15 = vadd.f32 %v2418_v6, %v2358_v38 }
 0x16f   :  { %v1703_v39 = vadd.f32 %v1702_v37, %v1701_v54  ;;  %v1260_v41 = vadd.f32 %v1259_v61, %v2410_v55  ;;  %v1704_v7 = vpop.f32.mrb[62].mxu1  ;;  %v1774_v51 = vpop.f32.mrb[62].mxu0 }
 0x170   :  { %1352 = vst.msk [vmem:[%s2609_s3 + $0x70] sm:$0xff] %vm806_vm0, %v1268_v46  ;;  %v1271_v59 = vadd.f32 %v1774_v51, %v2422_v17  ;;  %v1705_v63 = vpop.f32.mrb[63].mxu1  ;;  %v1262_v23 = vpop.f32.mrb[63].mxu0 }
 0x171   :  { %1350 = vst.msk [vmem:[%s2609_s3 + $0x60] sm:$0xff] %vm806_vm0, %v1260_v41  ;;  %v1706_v55 = vadd.f32 %v1705_v63, %v1704_v7  ;;  %v1263_v2 = vadd.f32 %v1262_v23, %v2412_v30  ;;  %v1139_v45 = vadd.f32 %v1703_v39, %v978_v9  ;;  %v986_v30 = vadd.f32 %v2339_v56, %v2358_v38 }
 0x172   :  { %1353 = vst.msk [vmem:[%s2609_s3 + $0x78] sm:$0xff] %vm806_vm0, %v1271_v59  ;;  %v1005_v7 = vadd.f32 %v2349_v22, %v2358_v38 }
 0x173   :  { %1351 = vst.msk [vmem:[%s2609_s3 + $0x68] sm:$0xff] %vm806_vm0, %v1263_v2  ;;  %v1142_v6 = vadd.f32 %v1706_v55, %v981_v15  ;;  %v1010_v2 = vadd.f32 %v2351_v28, %v2358_v38 }
 0x175   :  { %v1707_v17 = vpop.f32.mrb[64].mxu1  ;;  %v1777_v5 = vpop.f32.mrb[64].mxu0 }
 0x176   :  { %v1284_v52 = vadd.f32 %v1777_v5, %v1123_v35  ;;  %v1708_v49 = vpop.f32.mrb[65].mxu1  ;;  %v1275_v53 = vpop.f32.mrb[65].mxu0 }
 0x177   :  { %v1709_v57 = vadd.f32 %v1708_v49, %v1707_v17  ;;  %v1276_v58 = vadd.f32 %v1275_v53, %v2440_v42  ;;  %v1710_v60 = vpop.f32.mrb[66].mxu1  ;;  %v1778_v19 = vpop.f32.mrb[66].mxu0  ;;  %v1013_v53 = vadd.f32 %v2353_v34, %v2358_v38 }
 0x178   :  { %1356 = vst.msk [vmem:[%s2609_s3 + $0x90] sm:$0xff] %vm806_vm0, %v1284_v52  ;;  %v1287_v0 = vadd.f32 %v1778_v19, %v1126_v48  ;;  %v1711_v1 = vpop.f32.mrb[67].mxu1  ;;  %v1278_v47 = vpop.f32.mrb[67].mxu0 }
 0x179   :  { %1354 = vst.msk [vmem:[%s2609_s3 + $0x80] sm:$0xff] %vm806_vm0, %v1276_v58  ;;  %v1712_v56 = vadd.f32 %v1711_v1, %v1710_v60  ;;  %v1279_v42 = vadd.f32 %v1278_v47, %v2450_v8  ;;  %v1147_v20 = vadd.f32 %v1709_v57, %v986_v30  ;;  %v994_v8 = vadd.f32 %v2343_v4, %v2358_v38 }
 0x17a   :  { %1357 = vst.msk [vmem:[%s2609_s3 + $0x98] sm:$0xff] %vm806_vm0, %v1287_v0 }
 0x17b   :  { %1355 = vst.msk [vmem:[%s2609_s3 + $0x88] sm:$0xff] %vm806_vm0, %v1279_v42  ;;  %v1150_v62 = vadd.f32 %v1712_v56, %v989_v27 }
 0x17d   :  { %v1713_v35 = vpop.f32.mrb[68].mxu1  ;;  %v1781_v48 = vpop.f32.mrb[68].mxu0 }
 0x17e   :  { %v1300_v31 = vadd.f32 %v1781_v48, %v1139_v45  ;;  %v1714_v12 = vpop.f32.mrb[69].mxu1  ;;  %v1291_v13 = vpop.f32.mrb[69].mxu0 }
 0x17f   :  { %v1715_v26 = vadd.f32 %v1714_v12, %v1713_v35  ;;  %v1292_v14 = vadd.f32 %v1291_v13, %v1131_v36  ;;  %v1716_v29 = vpop.f32.mrb[70].mxu1  ;;  %v1782_v44 = vpop.f32.mrb[70].mxu0 }
 0x180   :  { %1360 = vst.msk [vmem:[%s2609_s3 + $0xb0] sm:$0xff] %vm806_vm0, %v1300_v31  ;;  %v1303_v21 = vadd.f32 %v1782_v44, %v1142_v6  ;;  %v1717_v24 = vpop.f32.mrb[71].mxu1  ;;  %v1294_v40 = vpop.f32.mrb[71].mxu0 }
 0x181   :  { %1358 = vst.msk [vmem:[%s2609_s3 + $0xa0] sm:$0xff] %vm806_vm0, %v1292_v14  ;;  %v1718_v4 = vadd.f32 %v1717_v24, %v1716_v29  ;;  %v1295_v11 = vadd.f32 %v1294_v40, %v1134_v33  ;;  %v1155_v25 = vadd.f32 %v1715_v26, %v994_v8  ;;  %v1002_v33 = vadd.f32 %v2347_v16, %v2358_v38 }
 0x182   :  { %1361 = vst.msk [vmem:[%s2609_s3 + $0xb8] sm:$0xff] %vm806_vm0, %v1303_v21 }
 0x183   :  { %1359 = vst.msk [vmem:[%s2609_s3 + $0xa8] sm:$0xff] %vm806_vm0, %v1295_v11  ;;  %v1158_v32 = vadd.f32 %v1718_v4, %v997_v50 }
 0x185   :  { %v1719_v10 = vpop.f32.mrb[72].mxu1  ;;  %v1785_v3 = vpop.f32.mrb[72].mxu0 }
 0x186   :  { %v1316_v43 = vadd.f32 %v1785_v3, %v1155_v25  ;;  %v1720_v36 = vpop.f32.mrb[73].mxu1  ;;  %v1307_v54 = vpop.f32.mrb[73].mxu0 }
 0x187   :  { %v1721_v18 = vadd.f32 %v1720_v36, %v1719_v10  ;;  %v1308_v46 = vadd.f32 %v1307_v54, %v1147_v20  ;;  %v1722_v37 = vpop.f32.mrb[74].mxu1  ;;  %v1786_v61 = vpop.f32.mrb[74].mxu0 }
 0x188   :  { %1364 = vst.msk [vmem:[%s2609_s3 + $0xd0] sm:$0xff] %vm806_vm0, %v1316_v43  ;;  %v1319_v9 = vadd.f32 %v1786_v61, %v1158_v32  ;;  %v1723_v39 = vpop.f32.mrb[75].mxu1  ;;  %v1310_v41 = vpop.f32.mrb[75].mxu0 }
 0x189   :  { %1362 = vst.msk [vmem:[%s2609_s3 + $0xc0] sm:$0xff] %vm806_vm0, %v1308_v46  ;;  %v1724_v16 = vadd.f32 %v1723_v39, %v1722_v37  ;;  %v1311_v51 = vadd.f32 %v1310_v41, %v1150_v62  ;;  %v1163_v59 = vadd.f32 %v1721_v18, %v1002_v33 }
 0x18a   :  { %1365 = vst.msk [vmem:[%s2609_s3 + $0xd8] sm:$0xff] %vm806_vm0, %v1319_v9 }
 0x18b   :  { %1363 = vst.msk [vmem:[%s2609_s3 + $0xc8] sm:$0xff] %vm806_vm0, %v1311_v51  ;;  %v1166_v63 = vadd.f32 %v1724_v16, %v1005_v7 }
 0x18d   :  { %v1725_v22 = vpop.f32.mrb[76].mxu1  ;;  %v1789_v23 = vpop.f32.mrb[76].mxu0 }
 0x18e   :  { %v1726_v15 = vpop.f32.mrb[77].mxu1  ;;  %v1323_v55 = vpop.f32.mrb[77].mxu0 }
 0x18f   :  { %v1727_v45 = vadd.f32 %v1726_v15, %v1725_v22  ;;  %v1324_v6 = vadd.f32 %v1323_v55, %v1163_v59  ;;  %v1728_v17 = vpop.f32.mrb[78].mxu1  ;;  %v1790_v5 = vpop.f32.mrb[78].mxu0 }
 0x190   :  { %v1729_v52 = vpop.f32.mrb[79].mxu1  ;;  %v1326_v49 = vpop.f32.mrb[79].mxu0 }
 0x191   :  { %v1171_v30 = vadd.f32 %v1727_v45, %v1010_v2  ;;  %1366 = vst.msk [vmem:[%s2609_s3 + $0xe0] sm:$0xff] %vm806_vm0, %v1324_v6  ;;  %v1730_v57 = vadd.f32 %v1729_v52, %v1728_v17  ;;  %v1327_v58 = vadd.f32 %v1326_v49, %v1166_v63 }
 0x193   :  { %v1332_v60 = vadd.f32 %v1789_v23, %v1171_v30  ;;  %v1174_v19 = vadd.f32 %v1730_v57, %v1013_v53  ;;  %1367 = vst.msk [vmem:[%s2609_s3 + $0xe8] sm:$0xff] %vm806_vm0, %v1327_v58 }
 0x195   :  { %1368 = vst.msk [vmem:[%s2609_s3 + $0xf0] sm:$0xff] %vm806_vm0, %v1332_v60  ;;  %v1335_v28 = vadd.f32 %v1790_v5, %v1174_v19 }
 0x197   :  { %1369 = vst.msk [vmem:[%s2609_s3 + $0xf8] sm:$0xff] %vm806_vm0, %v1335_v28 }

// kernel: precompute_targets.27
= control target key start
LH: loop header
LB: loop body
LE: loop exit
PB: predicated region body
PF: predicated region fallthrough
CT: control target
= control target key end

     0   :  { %vm434_vm0 = vcmask 523264   ;;  %s1109_s1 = inlined_call_operand.vmem [shape: bf16[576,128], index: 1, kind: input, shape index: {}]   ;;  %s1110_s0 = inlined_call_operand.vmem [shape: bf16[64,576], index: 0, kind: input, shape index: {}]   ;;  %s1111_s2 = inlined_call_operand.vmem [shape: f32[1,128], index: 2, kind: input, shape index: {}]   ;;  %s1112_s3 = inlined_call_operand.vmem [shape: f32[64,128], index: 3, kind: output, shape index: {}]  }
   0x1   :  { %v827_v0 = vld [vmem:[%s1109_s1 + $0x40] sm:$0xff]   ;;  %v831_v4 = vld [vmem:[%s1109_s1 + $0x48] sm:$0xff]   ;;  %v835_v8 = vld [vmem:[%s1109_s1 + $0x50] sm:$0xff]  }
   0x2   :  { %v828_v1 = vld [vmem:[%s1109_s1 + $0xc0] sm:$0xff]   ;;  %715 = vmatprep.subr.bf16.mxu0 %v827_v0  ;;  %v832_v5 = vld [vmem:[%s1109_s1 + $0xc8] sm:$0xff]   ;;  %v836_v9 = vld [vmem:[%s1109_s1 + $0xd0] sm:$0xff]  }
   0x3   :  { %v829_v2 = vld [vmem:[%s1109_s1] sm:$0xff]   ;;  %755 = vmatprep.subr.bf16.mxu1 %v828_v1  ;;  %v833_v6 = vld [vmem:[%s1109_s1 + $0x8] sm:$0xff]   ;;  %v837_v10 = vld [vmem:[%s1109_s1 + $0x10] sm:$0xff]  }
   0x4   :  { %v830_v3 = vld [vmem:[%s1109_s1 + $0x80] sm:$0xff]   ;;  %716 = vmatpush3.bf16.msra.mxu0 %v829_v2  ;;  %v834_v7 = vld [vmem:[%s1109_s1 + $0x88] sm:$0xff]   ;;  %v838_v11 = vld [vmem:[%s1109_s1 + $0x90] sm:$0xff]  }
   0x5   :  { %756 = vmatpush3.bf16.msra.mxu1 %v830_v3  ;;  %717 = vmatprep.subr.bf16.mxu0 %v831_v4  ;;  %v839_v12 = vld [vmem:[%s1109_s1 + $0x58] sm:$0xff]   ;;  %v843_v16 = vld [vmem:[%s1109_s1 + $0x60] sm:$0xff]   ;;  %v847_v20 = vld [vmem:[%s1109_s1 + $0x68] sm:$0xff]  }
   0x6   :  { %757 = vmatprep.subr.bf16.mxu1 %v832_v5  ;;  %v840_v13 = vld [vmem:[%s1109_s1 + $0xd8] sm:$0xff]   ;;  %v844_v17 = vld [vmem:[%s1109_s1 + $0xe0] sm:$0xff]   ;;  %v848_v21 = vld [vmem:[%s1109_s1 + $0xe8] sm:$0xff]  }
   0x7   :  { %v841_v14 = vld [vmem:[%s1109_s1 + $0x18] sm:$0xff]   ;;  %v845_v18 = vld [vmem:[%s1109_s1 + $0x20] sm:$0xff]   ;;  %v849_v22 = vld [vmem:[%s1109_s1 + $0x28] sm:$0xff]  }
   0x8   :  { %718 = vmatpush3.bf16.msra.mxu0 %v833_v6  ;;  %v842_v15 = vld [vmem:[%s1109_s1 + $0x98] sm:$0xff]   ;;  %v846_v19 = vld [vmem:[%s1109_s1 + $0xa0] sm:$0xff]   ;;  %v850_v23 = vld [vmem:[%s1109_s1 + $0xa8] sm:$0xff]  }
   0x9   :  { %758 = vmatpush3.bf16.msra.mxu1 %v834_v7  ;;  %719 = vmatprep.subr.bf16.mxu0 %v835_v8  ;;  %v851_v24 = vld [vmem:[%s1109_s1 + $0x70] sm:$0xff]   ;;  %v855_v28 = vld [vmem:[%s1109_s1 + $0x78] sm:$0xff]   ;;  %v864_v35 = vld [vmem:[%s1110_s0 + $0xc] ss:$20 sps:$4 sm:$0xff]  }
   0xa   :  { %759 = vmatprep.subr.bf16.mxu1 %v836_v9  ;;  %v852_v25 = vld [vmem:[%s1109_s1 + $0xf0] sm:$0xff]   ;;  %v856_v29 = vld [vmem:[%s1109_s1 + $0xf8] sm:$0xff]   ;;  %v865_v36 = vld [vmem:[%s1109_s1 + $0x100] sm:$0xff]   ;;  %544 = vmatprep.mubr.bf16.mxu1 %v864_v35 }
   0xb   :  { %v853_v26 = vld [vmem:[%s1109_s1 + $0x30] sm:$0xff]   ;;  %v857_v30 = vld [vmem:[%s1109_s1 + $0x38] sm:$0xff]   ;;  %v866_v37 = vld [vmem:[%s1110_s0 + $0x2c] ss:$20 sps:$4 sm:$0xff]  }
   0xc   :  { %720 = vmatpush3.bf16.msra.mxu0 %v837_v10  ;;  %v854_v27 = vld [vmem:[%s1109_s1 + $0xb0] sm:$0xff]   ;;  %v858_v31 = vld [vmem:[%s1109_s1 + $0xb8] sm:$0xff]   ;;  %v872_v39 = vld [vmem:[%s1109_s1 + $0x108] sm:$0xff]  }
   0xd   :  { %760 = vmatpush3.bf16.msra.mxu1 %v838_v11  ;;  %721 = vmatprep.subr.bf16.mxu0 %v839_v12  ;;  %v859_v32 = vld [vmem:[%s1110_s0] ss:$20 sps:$4 sm:$0xff]   ;;  %v861_v33 = vld [vmem:[%s1110_s0 + $0x4] ss:$20 sps:$4 sm:$0xff]   ;;  %v862_v34 = vld [vmem:[%s1110_s0 + $0x8] ss:$20 sps:$4 sm:$0xff]  }
   0xe   :  { %761 = vmatprep.subr.bf16.mxu1 %v840_v13  ;;  %479 = vmatprep.mubr.bf16.mxu0 %v861_v33  ;;  %v868_v38 = vld [vmem:[%s1110_s0 + $0x34] ss:$20 sps:$4 sm:$0xff]   ;;  %v871_v41 = vld [vmem:[%s1110_s0 + $0x30] ss:$20 sps:$4 sm:$0xff]   ;;  %v886_v45 = vld [vmem:[%s1109_s1 + $0x118] sm:$0xff]  }
   0xf   :  { %v870_v40 = vld [vmem:[%s1110_s0 + $0x28] ss:$20 sps:$4 sm:$0xff]   ;;  %v879_v44 = vld [vmem:[%s1109_s1 + $0x110] sm:$0xff]   ;;  %v878_v47 = vld [vmem:[%s1110_s0 + $0x58] ss:$20 sps:$4 sm:$0xff]  }
  0x10   :  { %722 = vmatpush3.bf16.msra.mxu0 %v841_v14  ;;  %v873_v42 = vld [vmem:[%s1110_s0 + $0x54] ss:$20 sps:$4 sm:$0xff]   ;;  %v875_v43 = vld [vmem:[%s1110_s0 + $0x5c] ss:$20 sps:$4 sm:$0xff]   ;;  %v882_v49 = vld [vmem:[%s1110_s0 + $0x84] ss:$20 sps:$4 sm:$0xff]  }
  0x11   :  { %762 = vmatpush3.bf16.msra.mxu1 %v842_v15  ;;  %723 = vmatprep.subr.bf16.mxu0 %v843_v16  ;;  %v877_v46 = vld [vmem:[%s1110_s0 + $0x50] ss:$20 sps:$4 sm:$0xff]   ;;  %v884_v50 = vld [vmem:[%s1110_s0 + $0x78] ss:$20 sps:$4 sm:$0xff]   ;;  %v885_v51 = vld [vmem:[%s1110_s0 + $0x80] ss:$20 sps:$4 sm:$0xff]  }
  0x12   :  { %763 = vmatprep.subr.bf16.mxu1 %v844_v17  ;;  %v880_v48 = vld [vmem:[%s1110_s0 + $0x7c] ss:$20 sps:$4 sm:$0xff]   ;;  %v888_v53 = vld [vmem:[%s1110_s0 + $0x60] ss:$20 sps:$4 sm:$0xff]   ;;  %v889_v54 = vld [vmem:[%s1110_s0 + $0x38] ss:$20 sps:$4 sm:$0xff]  }
  0x13   :  { %v887_v52 = vld [vmem:[%s1110_s0 + $0x10] ss:$20 sps:$4 sm:$0xff]   ;;  %v890_v55 = vld [vmem:[%s1110_s0 + $0x88] ss:$20 sps:$4 sm:$0xff]   ;;  %v654_v58 = vld [vmem:[%s1111_s2] ss:$0 sm:$0xff] }
  0x14   :  { %724 = vmatpush3.bf16.msra.mxu0 %v845_v18 }
  0x15   :  { %764 = vmatpush3.bf16.msra.mxu1 %v846_v19  ;;  %725 = vmatprep.subr.bf16.mxu0 %v847_v20 }
  0x16   :  { %765 = vmatprep.subr.bf16.mxu1 %v848_v21 }
  0x18   :  { %726 = vmatpush3.bf16.msra.mxu0 %v849_v22 }
  0x19   :  { %766 = vmatpush3.bf16.msra.mxu1 %v850_v23  ;;  %727 = vmatprep.subr.bf16.mxu0 %v851_v24 }
  0x1a   :  { %767 = vmatprep.subr.bf16.mxu1 %v852_v25 }
  0x1c   :  { %728 = vmatpush3.bf16.msra.mxu0 %v853_v26 }
  0x1d   :  { %768 = vmatpush3.bf16.msra.mxu1 %v854_v27  ;;  %729 = vmatprep.subr.bf16.mxu0 %v855_v28 }
  0x1e   :  { %769 = vmatprep.subr.bf16.mxu1 %v856_v29 }
  0x20   :  { %730 = vmatpush3.bf16.msra.mxu0 %v857_v30 }
  0x21   :  { %770 = vmatpush3.bf16.msra.mxu1 %v858_v31  ;;  %803 = vmatprep.subr.bf16.mxu0 %v865_v36 }
  0x22   :  { %819 = vmatprep.subr.bf16.mxu1 %v865_v36 }
  0x23   :  { %480 = vmatmul.mubr.bf16.vlgmr.msra.gmra.mrb[0].mxu0 %v859_v32 }
  0x24   :  { %545 = vmatmul.mubr.bf16.vlgmr.msra.gmra.mrb[0].mxu1 %v862_v34  ;;  %804 = vmatpush3.bf16.msra.mxu0 %v865_v36 }
  0x25   :  { %823 = vmatpush3.bf16.msra.mxu1 %v865_v36  ;;  %487 = vmatprep.mubr.bf16.mxu0 %v866_v37 }
  0x26   :  { %552 = vmatprep.mubr.bf16.mxu1 %v868_v38  ;;  %805 = vmatprep.subr.bf16.mxu0 %v872_v39 }
  0x27   :  { %820 = vmatprep.subr.bf16.mxu1 %v872_v39 }
  0x28   :  { %806 = vmatpush3.bf16.msra.mxu0 %v872_v39 }
  0x29   :  { %824 = vmatpush3.bf16.msra.mxu1 %v872_v39  ;;  %807 = vmatprep.subr.bf16.mxu0 %v879_v44 }
  0x2a   :  { %821 = vmatprep.subr.bf16.mxu1 %v879_v44 }
  0x2b   :  { %488 = vmatmul.mubr.bf16.gmra.mrb[4].mxu0 %v870_v40 }
  0x2c   :  { %553 = vmatmul.mubr.bf16.gmra.mrb[4].mxu1 %v871_v41  ;;  %495 = vmatprep.mubr.bf16.mxu0 %v873_v42 }
  0x2d   :  { %560 = vmatprep.mubr.bf16.mxu1 %v875_v43  ;;  %808 = vmatpush3.bf16.msra.mxu0 %v879_v44 }
  0x2e   :  { %825 = vmatpush3.bf16.msra.mxu1 %v879_v44  ;;  %809 = vmatprep.subr.bf16.mxu0 %v886_v45 }
  0x2f   :  { %822 = vmatprep.subr.bf16.mxu1 %v886_v45 }
  0x31   :  { %810 = vmatpush3.bf16.msra.mxu0 %v886_v45 }
  0x32   :  { %826 = vmatpush3.bf16.msra.mxu1 %v886_v45 }
  0x33   :  { %496 = vmatmul.mubr.bf16.gmra.mrb[8].mxu0 %v877_v46 }
  0x34   :  { %561 = vmatmul.mubr.bf16.gmra.mrb[8].mxu1 %v878_v47  ;;  %503 = vmatprep.mubr.bf16.mxu0 %v880_v48 }
  0x35   :  { %568 = vmatprep.mubr.bf16.mxu1 %v882_v49 }
  0x3b   :  { %504 = vmatmul.mubr.bf16.gmra.mrb[12].mxu0 %v884_v50 }
  0x3c   :  { %569 = vmatmul.mubr.bf16.gmra.mrb[12].mxu1 %v885_v51  ;;  %811 = vmatprep.mubr.msk.bf16.mxu0 %vm434_vm0, %v887_v52 }
  0x3d   :  { %815 = vmatprep.mubr.msk.bf16.mxu1 %vm434_vm0, %v888_v53 }
  0x43   :  { %812 = vmatmul.mubr.msk.bf16.vlgmr.msra.gmra.mrb[16].mxu0 %vm434_vm0, %v889_v54 }
  0x44   :  { %816 = vmatmul.mubr.msk.bf16.vlgmr.msra.gmra.mrb[16].mxu1 %vm434_vm0, %v890_v55 }
  0xf6   :  { %v731_v56 = vpop.f32.mrb[0].mxu0 }
  0xf7   :  { %v771_v57 = vpop.f32.mrb[0].mxu1  ;;  %v732_v59 = vpop.f32.mrb[1].mxu0 }
  0xf8   :  { %v733_v60 = vadd.f32 %v732_v59, %v731_v56  ;;  %v772_v61 = vpop.f32.mrb[1].mxu1  ;;  %v734_v62 = vpop.f32.mrb[2].mxu0 }
  0xf9   :  { %v773_v63 = vadd.f32 %v772_v61, %v771_v57  ;;  %v774_v0 = vpop.f32.mrb[2].mxu1  ;;  %v735_v1 = vpop.f32.mrb[3].mxu0 }
  0xfa   :  { %v482_v2 = vadd.f32 %v733_v60, %v654_v58  ;;  %v736_v3 = vadd.f32 %v735_v1, %v734_v62  ;;  %v775_v4 = vpop.f32.mrb[3].mxu1 }
  0xfb   :  { %v776_v5 = vadd.f32 %v775_v4, %v774_v0 }
  0xfc   :  { %v485_v6 = vadd.f32 %v736_v3, %v654_v58  ;;  %v547_v7 = vadd.f32 %v773_v63, %v482_v2 }
  0xfe   :  { %v737_v8 = vpop.f32.mrb[4].mxu0  ;;  %v1082_v9 = vadd.f32 %v776_v5, %v485_v6 }
  0xff   :  { %v777_v10 = vpop.f32.mrb[4].mxu1  ;;  %v738_v11 = vpop.f32.mrb[5].mxu0 }
 0x100   :  { %v739_v12 = vadd.f32 %v738_v11, %v737_v8  ;;  %v778_v13 = vpop.f32.mrb[5].mxu1  ;;  %v740_v14 = vpop.f32.mrb[6].mxu0 }
 0x101   :  { %v779_v15 = vadd.f32 %v778_v13, %v777_v10  ;;  %v780_v16 = vpop.f32.mrb[6].mxu1  ;;  %v741_v17 = vpop.f32.mrb[7].mxu0 }
 0x102   :  { %v490_v18 = vadd.f32 %v739_v12, %v654_v58  ;;  %v742_v19 = vadd.f32 %v741_v17, %v740_v14  ;;  %v781_v20 = vpop.f32.mrb[7].mxu1 }
 0x103   :  { %v782_v21 = vadd.f32 %v781_v20, %v780_v16 }
 0x104   :  { %v493_v22 = vadd.f32 %v742_v19, %v654_v58  ;;  %v555_v23 = vadd.f32 %v779_v15, %v490_v18 }
 0x106   :  { %v743_v24 = vpop.f32.mrb[8].mxu0  ;;  %v558_v25 = vadd.f32 %v782_v21, %v493_v22 }
 0x107   :  { %v783_v26 = vpop.f32.mrb[8].mxu1  ;;  %v744_v27 = vpop.f32.mrb[9].mxu0 }
 0x108   :  { %v745_v28 = vadd.f32 %v744_v27, %v743_v24  ;;  %v784_v29 = vpop.f32.mrb[9].mxu1  ;;  %v746_v30 = vpop.f32.mrb[10].mxu0 }
 0x109   :  { %v785_v31 = vadd.f32 %v784_v29, %v783_v26  ;;  %v786_v32 = vpop.f32.mrb[10].mxu1  ;;  %v747_v33 = vpop.f32.mrb[11].mxu0 }
 0x10a   :  { %v498_v34 = vadd.f32 %v745_v28, %v654_v58  ;;  %v748_v35 = vadd.f32 %v747_v33, %v746_v30  ;;  %v787_v36 = vpop.f32.mrb[11].mxu1 }
 0x10b   :  { %v788_v37 = vadd.f32 %v787_v36, %v786_v32 }
 0x10c   :  { %v501_v38 = vadd.f32 %v748_v35, %v654_v58  ;;  %v563_v39 = vadd.f32 %v785_v31, %v498_v34 }
 0x10e   :  { %v749_v40 = vpop.f32.mrb[12].mxu0  ;;  %v566_v41 = vadd.f32 %v788_v37, %v501_v38 }
 0x10f   :  { %v789_v42 = vpop.f32.mrb[12].mxu1  ;;  %v750_v43 = vpop.f32.mrb[13].mxu0 }
 0x110   :  { %v751_v44 = vadd.f32 %v750_v43, %v749_v40  ;;  %v790_v45 = vpop.f32.mrb[13].mxu1  ;;  %v752_v46 = vpop.f32.mrb[14].mxu0 }
 0x111   :  { %v791_v47 = vadd.f32 %v790_v45, %v789_v42  ;;  %v792_v48 = vpop.f32.mrb[14].mxu1  ;;  %v753_v49 = vpop.f32.mrb[15].mxu0 }
 0x112   :  { %v506_v50 = vadd.f32 %v751_v44, %v654_v58  ;;  %v754_v51 = vadd.f32 %v753_v49, %v752_v46  ;;  %v793_v52 = vpop.f32.mrb[15].mxu1 }
 0x113   :  { %v794_v53 = vadd.f32 %v793_v52, %v792_v48 }
 0x114   :  { %v509_v54 = vadd.f32 %v754_v51, %v654_v58  ;;  %v571_v55 = vadd.f32 %v791_v47, %v506_v50 }
 0x116   :  { %v813_v56 = vpop.f32.mrb[16].mxu0  ;;  %v574_v57 = vadd.f32 %v794_v53, %v509_v54 }
 0x117   :  { %v620_v59 = vadd.f32 %v813_v56, %v555_v23  ;;  %v817_v60 = vpop.f32.mrb[16].mxu1  ;;  %v611_v61 = vpop.f32.mrb[17].mxu0 }
 0x118   :  { %v636_v62 = vadd.f32 %v817_v60, %v571_v55  ;;  %v612_v63 = vadd.f32 %v611_v61, %v547_v7  ;;  %v627_v0 = vpop.f32.mrb[17].mxu1  ;;  %v814_v1 = vpop.f32.mrb[18].mxu0 }
 0x119   :  { %644 = vst [vmem:[%s1112_s3 + $0x10] sm:$0xff] %v620_v59  ;;  %v628_v2 = vadd.f32 %v627_v0, %v563_v39  ;;  %v623_v3 = vadd.f32 %v814_v1, %v558_v25  ;;  %v818_v4 = vpop.f32.mrb[18].mxu1  ;;  %v614_v5 = vpop.f32.mrb[19].mxu0 }
 0x11a   :  { %648 = vst [vmem:[%s1112_s3 + $0x30] sm:$0xff] %v636_v62  ;;  %642 = vst [vmem:[%s1112_s3] sm:$0xff] %v612_v63  ;;  %v639_v58 = vadd.f32 %v818_v4, %v574_v57  ;;  %v615_v6 = vadd.f32 %v614_v5, %v1082_v9  ;;  %v630_v7 = vpop.f32.mrb[19].mxu1 }
 0x11b   :  { %646 = vst [vmem:[%s1112_s3 + $0x20] sm:$0xff] %v628_v2  ;;  %645 = vst [vmem:[%s1112_s3 + $0x18] sm:$0xff] %v623_v3  ;;  %v631_v8 = vadd.f32 %v630_v7, %v566_v41 }
 0x11c   :  { %649 = vst [vmem:[%s1112_s3 + $0x38] sm:$0xff] %v639_v58  ;;  %643 = vst [vmem:[%s1112_s3 + $0x8] sm:$0xff] %v615_v6 }
 0x11d   :  { %647 = vst [vmem:[%s1112_s3 + $0x28] sm:$0xff] %v631_v8 }

// kernel: precompute_targets.28
= control target key start
LH: loop header
LB: loop body
LE: loop exit
PB: predicated region body
PF: predicated region fallthrough
CT: control target
= control target key end

     0   :  { %s2009_s0 = inlined_call_operand.vmem [shape: bf16[64,1152], index: 0, kind: input, shape index: {}]   ;;  %s2010_s1 = inlined_call_operand.vmem [shape: bf16[1152,128], index: 1, kind: input, shape index: {}]   ;;  %s2011_s2 = inlined_call_operand.vmem [shape: f32[1,128], index: 2, kind: input, shape index: {}]   ;;  %s2012_s3 = inlined_call_operand.hbm [shape: f32[64,128], index: 3, kind: output, shape index: {}]  }
   0x1   :  { %v1496_v0 = vld [vmem:[%s2010_s1 + $0x40] sm:$0xff]   ;;  %v1500_v4 = vld [vmem:[%s2010_s1 + $0x48] sm:$0xff]   ;;  %v1504_v8 = vld [vmem:[%s2010_s1 + $0x50] sm:$0xff]  }
   0x2   :  { %v1497_v1 = vld [vmem:[%s2010_s1 + $0xc0] sm:$0xff]   ;;  %1281 = vmatprep.subr.bf16.mxu0 %v1496_v0  ;;  %v1501_v5 = vld [vmem:[%s2010_s1 + $0xc8] sm:$0xff]   ;;  %v1505_v9 = vld [vmem:[%s2010_s1 + $0xd0] sm:$0xff]  }
   0x3   :  { %v1498_v2 = vld [vmem:[%s2010_s1] sm:$0xff]   ;;  %1321 = vmatprep.subr.bf16.mxu1 %v1497_v1  ;;  %v1502_v6 = vld [vmem:[%s2010_s1 + $0x8] sm:$0xff]   ;;  %v1506_v10 = vld [vmem:[%s2010_s1 + $0x10] sm:$0xff]  }
   0x4   :  { %v1499_v3 = vld [vmem:[%s2010_s1 + $0x80] sm:$0xff]   ;;  %1282 = vmatpush3.bf16.msra.mxu0 %v1498_v2  ;;  %v1503_v7 = vld [vmem:[%s2010_s1 + $0x88] sm:$0xff]   ;;  %v1507_v11 = vld [vmem:[%s2010_s1 + $0x90] sm:$0xff]  }
   0x5   :  { %1322 = vmatpush3.bf16.msra.mxu1 %v1499_v3  ;;  %1283 = vmatprep.subr.bf16.mxu0 %v1500_v4  ;;  %v1508_v12 = vld [vmem:[%s2010_s1 + $0x58] sm:$0xff]   ;;  %v1512_v16 = vld [vmem:[%s2010_s1 + $0x60] sm:$0xff]   ;;  %v1516_v20 = vld [vmem:[%s2010_s1 + $0x68] sm:$0xff]  }
   0x6   :  { %1323 = vmatprep.subr.bf16.mxu1 %v1501_v5  ;;  %v1509_v13 = vld [vmem:[%s2010_s1 + $0xd8] sm:$0xff]   ;;  %v1513_v17 = vld [vmem:[%s2010_s1 + $0xe0] sm:$0xff]   ;;  %v1517_v21 = vld [vmem:[%s2010_s1 + $0xe8] sm:$0xff]  }
   0x7   :  { %v1510_v14 = vld [vmem:[%s2010_s1 + $0x18] sm:$0xff]   ;;  %v1514_v18 = vld [vmem:[%s2010_s1 + $0x20] sm:$0xff]   ;;  %v1518_v22 = vld [vmem:[%s2010_s1 + $0x28] sm:$0xff]  }
   0x8   :  { %1284 = vmatpush3.bf16.msra.mxu0 %v1502_v6  ;;  %v1511_v15 = vld [vmem:[%s2010_s1 + $0x98] sm:$0xff]   ;;  %v1515_v19 = vld [vmem:[%s2010_s1 + $0xa0] sm:$0xff]   ;;  %v1519_v23 = vld [vmem:[%s2010_s1 + $0xa8] sm:$0xff]  }
   0x9   :  { %1324 = vmatpush3.bf16.msra.mxu1 %v1503_v7  ;;  %1285 = vmatprep.subr.bf16.mxu0 %v1504_v8  ;;  %v1520_v24 = vld [vmem:[%s2010_s1 + $0x70] sm:$0xff]   ;;  %v1524_v28 = vld [vmem:[%s2010_s1 + $0x78] sm:$0xff]   ;;  %v1528_v32 = vld [vmem:[%s2009_s0] ss:$36 sps:$4 sm:$0xff]  }
   0xa   :  { %1325 = vmatprep.subr.bf16.mxu1 %v1505_v9  ;;  %v1521_v25 = vld [vmem:[%s2010_s1 + $0xf0] sm:$0xff]   ;;  %v1525_v29 = vld [vmem:[%s2010_s1 + $0xf8] sm:$0xff]   ;;  %v1530_v33 = vld [vmem:[%s2009_s0 + $0x4] ss:$36 sps:$4 sm:$0xff]  }
   0xb   :  { %v1522_v26 = vld [vmem:[%s2010_s1 + $0x30] sm:$0xff]   ;;  %v1526_v30 = vld [vmem:[%s2010_s1 + $0x38] sm:$0xff]   ;;  %v1531_v34 = vld [vmem:[%s2009_s0 + $0x8] ss:$36 sps:$4 sm:$0xff]   ;;  %855 = vmatprep.mubr.bf16.mxu0 %v1530_v33 }
   0xc   :  { %1286 = vmatpush3.bf16.msra.mxu0 %v1506_v10  ;;  %v1523_v27 = vld [vmem:[%s2010_s1 + $0xb0] sm:$0xff]   ;;  %v1527_v31 = vld [vmem:[%s2010_s1 + $0xb8] sm:$0xff]   ;;  %v1534_v36 = vld [vmem:[%s2010_s1 + $0x140] sm:$0xff]  }
   0xd   :  { %1326 = vmatpush3.bf16.msra.mxu1 %v1507_v11  ;;  %1287 = vmatprep.subr.bf16.mxu0 %v1508_v12  ;;  %v1533_v35 = vld [vmem:[%s2009_s0 + $0xc] ss:$36 sps:$4 sm:$0xff]   ;;  %v1535_v37 = vld [vmem:[%s2010_s1 + $0x1c0] sm:$0xff]   ;;  %v1544_v45 = vld [vmem:[%s2009_s0 + $0x54] ss:$36 sps:$4 sm:$0xff]  }
   0xe   :  { %1327 = vmatprep.subr.bf16.mxu1 %v1509_v13  ;;  %920 = vmatprep.mubr.bf16.mxu1 %v1533_v35  ;;  %v1536_v38 = vld [vmem:[%s2010_s1 + $0x100] sm:$0xff]   ;;  %v1538_v40 = vld [vmem:[%s2010_s1 + $0x148] sm:$0xff]   ;;  %v1547_v47 = vld [vmem:[%s2009_s0 + $0x50] ss:$36 sps:$4 sm:$0xff]  }
   0xf   :  { %v1537_v39 = vld [vmem:[%s2010_s1 + $0x180] sm:$0xff]   ;;  %v1539_v41 = vld [vmem:[%s2010_s1 + $0x1c8] sm:$0xff]   ;;  %v1548_v48 = vld [vmem:[%s2010_s1 + $0x150] sm:$0xff]  }
  0x10   :  { %1288 = vmatpush3.bf16.msra.mxu0 %v1510_v14  ;;  %v1540_v42 = vld [vmem:[%s2010_s1 + $0x108] sm:$0xff]   ;;  %v1549_v49 = vld [vmem:[%s2010_s1 + $0x1d0] sm:$0xff]   ;;  %v1552_v52 = vld [vmem:[%s2010_s1 + $0x158] sm:$0xff]  }
  0x11   :  { %1328 = vmatpush3.bf16.msra.mxu1 %v1511_v15  ;;  %1289 = vmatprep.subr.bf16.mxu0 %v1512_v16  ;;  %v1541_v43 = vld [vmem:[%s2010_s1 + $0x188] sm:$0xff]   ;;  %v1550_v50 = vld [vmem:[%s2010_s1 + $0x110] sm:$0xff]   ;;  %v1553_v53 = vld [vmem:[%s2010_s1 + $0x1d8] sm:$0xff]  }
  0x12   :  { %1329 = vmatprep.subr.bf16.mxu1 %v1513_v17  ;;  %v1542_v44 = vld [vmem:[%s2009_s0 + $0x4c] ss:$36 sps:$4 sm:$0xff]   ;;  %v1554_v54 = vld [vmem:[%s2010_s1 + $0x118] sm:$0xff]   ;;  %v1562_v60 = vld [vmem:[%s2010_s1 + $0x160] sm:$0xff]  }
  0x13   :  { %v1546_v46 = vld [vmem:[%s2009_s0 + $0x48] ss:$36 sps:$4 sm:$0xff]   ;;  %v1551_v51 = vld [vmem:[%s2010_s1 + $0x190] sm:$0xff]   ;;  %v1555_v55 = vld [vmem:[%s2010_s1 + $0x198] sm:$0xff]  }
  0x14   :  { %1290 = vmatpush3.bf16.msra.mxu0 %v1514_v18  ;;  %v1556_v56 = vld [vmem:[%s2009_s0 + $0x94] ss:$36 sps:$4 sm:$0xff]   ;;  %v1558_v57 = vld [vmem:[%s2009_s0 + $0x9c] ss:$36 sps:$4 sm:$0xff]   ;;  %v1566_v0 = vld [vmem:[%s2010_s1 + $0x168] sm:$0xff]  }
  0x15   :  { %1330 = vmatpush3.bf16.msra.mxu1 %v1515_v19  ;;  %1291 = vmatprep.subr.bf16.mxu0 %v1516_v20  ;;  %v1560_v58 = vld [vmem:[%s2009_s0 + $0x90] ss:$36 sps:$4 sm:$0xff]   ;;  %v1561_v59 = vld [vmem:[%s2009_s0 + $0x98] ss:$36 sps:$4 sm:$0xff]   ;;  %v1563_v61 = vld [vmem:[%s2010_s1 + $0x1e0] sm:$0xff]  }
  0x16   :  { %1331 = vmatprep.subr.bf16.mxu1 %v1517_v21  ;;  %v1564_v62 = vld [vmem:[%s2010_s1 + $0x120] sm:$0xff]   ;;  %v1567_v1 = vld [vmem:[%s2010_s1 + $0x1e8] sm:$0xff]   ;;  %v1574_v6 = vld [vmem:[%s2009_s0 + $0xd8] ss:$36 sps:$4 sm:$0xff]  }
  0x17   :  { %v1565_v63 = vld [vmem:[%s2010_s1 + $0x1a0] sm:$0xff]   ;;  %v1568_v2 = vld [vmem:[%s2010_s1 + $0x128] sm:$0xff]   ;;  %v1576_v8 = vld [vmem:[%s2010_s1 + $0x170] sm:$0xff]  }
  0x18   :  { %1292 = vmatpush3.bf16.msra.mxu0 %v1518_v22  ;;  %v1569_v3 = vld [vmem:[%s2010_s1 + $0x1a8] sm:$0xff]   ;;  %v1570_v4 = vld [vmem:[%s2009_s0 + $0xdc] ss:$36 sps:$4 sm:$0xff]   ;;  %v1577_v9 = vld [vmem:[%s2010_s1 + $0x1f0] sm:$0xff]  }
  0x19   :  { %1332 = vmatpush3.bf16.msra.mxu1 %v1519_v23  ;;  %1293 = vmatprep.subr.bf16.mxu0 %v1520_v24  ;;  %v1572_v5 = vld [vmem:[%s2009_s0 + $0xe4] ss:$36 sps:$4 sm:$0xff]   ;;  %v1578_v10 = vld [vmem:[%s2010_s1 + $0x130] sm:$0xff]   ;;  %v1580_v12 = vld [vmem:[%s2010_s1 + $0x178] sm:$0xff]  }
  0x1a   :  { %1333 = vmatprep.subr.bf16.mxu1 %v1521_v25  ;;  %v1575_v7 = vld [vmem:[%s2009_s0 + $0xe0] ss:$36 sps:$4 sm:$0xff]   ;;  %v1579_v11 = vld [vmem:[%s2010_s1 + $0x1b0] sm:$0xff]   ;;  %v1581_v13 = vld [vmem:[%s2010_s1 + $0x1f8] sm:$0xff]  }
  0x1b   :  { %v1582_v14 = vld [vmem:[%s2010_s1 + $0x138] sm:$0xff]   ;;  %v1584_v16 = vld [vmem:[%s2009_s0 + $0x10] ss:$36 sps:$4 sm:$0xff]   ;;  %v1590_v20 = vld [vmem:[%s2010_s1 + $0x200] sm:$0xff]  }
  0x1c   :  { %1294 = vmatpush3.bf16.msra.mxu0 %v1522_v26  ;;  %v1583_v15 = vld [vmem:[%s2010_s1 + $0x1b8] sm:$0xff]   ;;  %v1591_v21 = vld [vmem:[%s2010_s1 + $0x208] sm:$0xff]   ;;  %v1597_v25 = vld [vmem:[%s2009_s0 + $0x60] ss:$36 sps:$4 sm:$0xff]  }
  0x1d   :  { %1334 = vmatpush3.bf16.msra.mxu1 %v1523_v27  ;;  %1295 = vmatprep.subr.bf16.mxu0 %v1524_v28  ;;  %v1586_v17 = vld [vmem:[%s2009_s0 + $0x14] ss:$36 sps:$4 sm:$0xff]   ;;  %v1589_v19 = vld [vmem:[%s2009_s0 + $0x1c] ss:$36 sps:$4 sm:$0xff]   ;;  %v1594_v23 = vld [vmem:[%s2009_s0 + $0x64] ss:$36 sps:$4 sm:$0xff]  }
  0x1e   :  { %1335 = vmatprep.subr.bf16.mxu1 %v1525_v29  ;;  %v1587_v18 = vld [vmem:[%s2009_s0 + $0x18] ss:$36 sps:$4 sm:$0xff]   ;;  %v1598_v26 = vld [vmem:[%s2010_s1 + $0x210] sm:$0xff]   ;;  %v1600_v27 = vld [vmem:[%s2009_s0 + $0xa4] ss:$36 sps:$4 sm:$0xff]  }
  0x1f   :  { %v1592_v22 = vld [vmem:[%s2009_s0 + $0x5c] ss:$36 sps:$4 sm:$0xff]   ;;  %v1602_v28 = vld [vmem:[%s2009_s0 + $0xac] ss:$36 sps:$4 sm:$0xff]  }
  0x20   :  { %1296 = vmatpush3.bf16.msra.mxu0 %v1526_v30  ;;  %v1596_v24 = vld [vmem:[%s2009_s0 + $0x58] ss:$36 sps:$4 sm:$0xff]   ;;  %v1604_v30 = vld [vmem:[%s2009_s0 + $0xa0] ss:$36 sps:$4 sm:$0xff]   ;;  %v1608_v33 = vld [vmem:[%s2009_s0 + $0xec] ss:$36 sps:$4 sm:$0xff]  }
  0x21   :  { %1336 = vmatpush3.bf16.msra.mxu1 %v1527_v31  ;;  %1361 = vmatprep.subr.bf16.mxu0 %v1534_v36  ;;  %v1599_v29 = vld [vmem:[%s2010_s1 + $0x218] sm:$0xff]   ;;  %v1605_v31 = vld [vmem:[%s2009_s0 + $0xa8] ss:$36 sps:$4 sm:$0xff]  }
  0x22   :  { %1401 = vmatprep.subr.bf16.mxu1 %v1535_v37  ;;  %v1607_v35 = vld [vmem:[%s2010_s1 + $0x228] sm:$0xff]  }
  0x23   :  { %856 = vmatmul.mubr.bf16.vlgmr.msra.gmra.mrb[0].mxu0 %v1528_v32  ;;  %v1606_v32 = vld [vmem:[%s2010_s1 + $0x220] sm:$0xff]  }
  0x24   :  { %921 = vmatmul.mubr.bf16.vlgmr.msra.gmra.mrb[0].mxu1 %v1531_v34  ;;  %1362 = vmatpush3.bf16.msra.mxu0 %v1536_v38  ;;  %v1610_v34 = vld [vmem:[%s2009_s0 + $0xf4] ss:$36 sps:$4 sm:$0xff]  }
  0x25   :  { %1402 = vmatpush3.bf16.msra.mxu1 %v1537_v39  ;;  %1363 = vmatprep.subr.bf16.mxu0 %v1538_v40 }
  0x26   :  { %1403 = vmatprep.subr.bf16.mxu1 %v1539_v41  ;;  %863 = vmatprep.mubr.bf16.mxu0 %v1542_v44 }
  0x27   :  { %928 = vmatprep.mubr.bf16.mxu1 %v1544_v45 }
  0x28   :  { %1364 = vmatpush3.bf16.msra.mxu0 %v1540_v42 }
  0x29   :  { %1404 = vmatpush3.bf16.msra.mxu1 %v1541_v43  ;;  %1365 = vmatprep.subr.bf16.mxu0 %v1548_v48 }
  0x2a   :  { %1405 = vmatprep.subr.bf16.mxu1 %v1549_v49 }
  0x2b   :  { %864 = vmatmul.mubr.bf16.gmra.mrb[4].mxu0 %v1546_v46 }
  0x2c   :  { %929 = vmatmul.mubr.bf16.gmra.mrb[4].mxu1 %v1547_v47  ;;  %1366 = vmatpush3.bf16.msra.mxu0 %v1550_v50 }
  0x2d   :  { %1406 = vmatpush3.bf16.msra.mxu1 %v1551_v51  ;;  %1367 = vmatprep.subr.bf16.mxu0 %v1552_v52 }
  0x2e   :  { %1407 = vmatprep.subr.bf16.mxu1 %v1553_v53  ;;  %871 = vmatprep.mubr.bf16.mxu0 %v1556_v56 }
  0x2f   :  { %936 = vmatprep.mubr.bf16.mxu1 %v1558_v57 }
  0x30   :  { %1368 = vmatpush3.bf16.msra.mxu0 %v1554_v54 }
  0x31   :  { %1408 = vmatpush3.bf16.msra.mxu1 %v1555_v55  ;;  %1369 = vmatprep.subr.bf16.mxu0 %v1562_v60 }
  0x32   :  { %1409 = vmatprep.subr.bf16.mxu1 %v1563_v61 }
  0x33   :  { %872 = vmatmul.mubr.bf16.gmra.mrb[8].mxu0 %v1560_v58 }
  0x34   :  { %937 = vmatmul.mubr.bf16.gmra.mrb[8].mxu1 %v1561_v59  ;;  %1370 = vmatpush3.bf16.msra.mxu0 %v1564_v62 }
  0x35   :  { %1410 = vmatpush3.bf16.msra.mxu1 %v1565_v63  ;;  %1371 = vmatprep.subr.bf16.mxu0 %v1566_v0 }
  0x36   :  { %1411 = vmatprep.subr.bf16.mxu1 %v1567_v1  ;;  %879 = vmatprep.mubr.bf16.mxu0 %v1570_v4 }
  0x37   :  { %944 = vmatprep.mubr.bf16.mxu1 %v1572_v5 }
  0x38   :  { %1372 = vmatpush3.bf16.msra.mxu0 %v1568_v2 }
  0x39   :  { %1412 = vmatpush3.bf16.msra.mxu1 %v1569_v3  ;;  %1373 = vmatprep.subr.bf16.mxu0 %v1576_v8 }
  0x3a   :  { %1413 = vmatprep.subr.bf16.mxu1 %v1577_v9 }
  0x3b   :  { %880 = vmatmul.mubr.bf16.gmra.mrb[12].mxu0 %v1574_v6 }
  0x3c   :  { %945 = vmatmul.mubr.bf16.gmra.mrb[12].mxu1 %v1575_v7  ;;  %1374 = vmatpush3.bf16.msra.mxu0 %v1578_v10 }
  0x3d   :  { %1414 = vmatpush3.bf16.msra.mxu1 %v1579_v11  ;;  %1375 = vmatprep.subr.bf16.mxu0 %v1580_v12 }
  0x3e   :  { %1415 = vmatprep.subr.bf16.mxu1 %v1581_v13  ;;  %985 = vmatprep.mubr.bf16.mxu0 %v1586_v17 }
  0x3f   :  { %1050 = vmatprep.mubr.bf16.mxu1 %v1589_v19 }
  0x40   :  { %1376 = vmatpush3.bf16.msra.mxu0 %v1582_v14 }
  0x41   :  { %1416 = vmatpush3.bf16.msra.mxu1 %v1583_v15  ;;  %1453 = vmatprep.subr.bf16.mxu0 %v1590_v20 }
  0x42   :  { %1477 = vmatprep.subr.bf16.mxu1 %v1590_v20 }
  0x43   :  { %986 = vmatmul.mubr.bf16.vlgmr.msra.gmra.mrb[16].mxu0 %v1584_v16 }
  0x44   :  { %1051 = vmatmul.mubr.bf16.vlgmr.msra.gmra.mrb[16].mxu1 %v1587_v18  ;;  %1454 = vmatpush3.bf16.msra.mxu0 %v1590_v20 }
  0x45   :  { %1485 = vmatpush3.bf16.msra.mxu1 %v1590_v20  ;;  %1455 = vmatprep.subr.bf16.mxu0 %v1591_v21 }
  0x46   :  { %1478 = vmatprep.subr.bf16.mxu1 %v1591_v21  ;;  %993 = vmatprep.mubr.bf16.mxu0 %v1592_v22 }
  0x47   :  { %1058 = vmatprep.mubr.bf16.mxu1 %v1594_v23 }
  0x48   :  { %1456 = vmatpush3.bf16.msra.mxu0 %v1591_v21 }
  0x49   :  { %1486 = vmatpush3.bf16.msra.mxu1 %v1591_v21  ;;  %1457 = vmatprep.subr.bf16.mxu0 %v1598_v26 }
  0x4a   :  { %1479 = vmatprep.subr.bf16.mxu1 %v1598_v26 }
  0x4b   :  { %994 = vmatmul.mubr.bf16.gmra.mrb[20].mxu0 %v1596_v24 }
  0x4c   :  { %1059 = vmatmul.mubr.bf16.gmra.mrb[20].mxu1 %v1597_v25  ;;  %1001 = vmatprep.mubr.bf16.mxu0 %v1600_v27 }
  0x4d   :  { %1458 = vmatpush3.bf16.msra.mxu0 %v1598_v26  ;;  %1066 = vmatprep.mubr.bf16.mxu1 %v1602_v28 }
  0x4e   :  { %1487 = vmatpush3.bf16.msra.mxu1 %v1598_v26  ;;  %1459 = vmatprep.subr.bf16.mxu0 %v1599_v29 }
  0x4f   :  { %1480 = vmatprep.subr.bf16.mxu1 %v1599_v29 }
  0x51   :  { %1460 = vmatpush3.bf16.msra.mxu0 %v1599_v29 }
  0x52   :  { %1488 = vmatpush3.bf16.msra.mxu1 %v1599_v29  ;;  %1461 = vmatprep.subr.bf16.mxu0 %v1606_v32 }
  0x53   :  { %1002 = vmatmul.mubr.bf16.gmra.mrb[24].mxu0 %v1604_v30  ;;  %1481 = vmatprep.subr.bf16.mxu1 %v1606_v32 }
  0x54   :  { %1067 = vmatmul.mubr.bf16.gmra.mrb[24].mxu1 %v1605_v31  ;;  %1009 = vmatprep.mubr.bf16.mxu0 %v1608_v33 }
  0x55   :  { %1462 = vmatpush3.bf16.msra.mxu0 %v1606_v32  ;;  %1074 = vmatprep.mubr.bf16.mxu1 %v1610_v34 }
  0x56   :  { %8 = vsyncpa [#allocation3], 0  ;;  %1489 = vmatpush3.bf16.msra.mxu1 %v1606_v32  ;;  %1463 = vmatprep.subr.bf16.mxu0 %v1607_v35  ;;  %v1612_v36 = vld [vmem:[%s2009_s0 + $0xe8] ss:$36 sps:$4 sm:$0xff]   ;;  %v1614_v37 = vld [vmem:[%s2010_s1 + $0x230] sm:$0xff]  }
  0x57   :  { %1482 = vmatprep.subr.bf16.mxu1 %v1607_v35  ;;  %v1613_v38 = vld [vmem:[%s2009_s0 + $0xf0] ss:$36 sps:$4 sm:$0xff]   ;;  %v1616_v39 = vld [vmem:[%s2009_s0 + $0x20] ss:$36 sps:$4 sm:$0xff]   ;;  %v1615_v41 = vld [vmem:[%s2010_s1 + $0x238] sm:$0xff]  }
  0x58   :  { %v1617_v40 = vld [vmem:[%s2009_s0 + $0xb0] ss:$36 sps:$4 sm:$0xff]   ;;  %v1618_v42 = vld [vmem:[%s2009_s0 + $0x68] ss:$36 sps:$4 sm:$0xff]   ;;  %v1619_v43 = vld [vmem:[%s2009_s0 + $0xf8] ss:$36 sps:$4 sm:$0xff]  }
  0x59   :  { %1464 = vmatpush3.bf16.msra.mxu0 %v1607_v35  ;;  %v1172_v46 = vld [vmem:[%s2011_s2] ss:$0 sm:$0xff]  ;;  %s1644_s0 = smov [#allocation2]  }
  0x5a   :  { %1490 = vmatpush3.bf16.msra.mxu1 %v1607_v35  ;;  %1465 = vmatprep.subr.bf16.mxu0 %v1614_v37  ;;  %s1161_s2 = sshll.u32 %s1644_s0, 4  ;;  %s1162_s2 = int_to_ptr.vmem [resolvable:$true] %s1161_s2 }
  0x5b   :  { %1010 = vmatmul.mubr.bf16.gmra.mrb[28].mxu0 %v1612_v36  ;;  %1483 = vmatprep.subr.bf16.mxu1 %v1614_v37  ;;  %s1620_s13 = scalar_lea.vmem %s1162_s2, 1024  ;;  %p1625_p1 = scmp.lt.s32.totalorder %s1162_s2, %s1162_s2 }
  0x5c   :  { %1075 = vmatmul.mubr.bf16.gmra.mrb[28].mxu1 %v1613_v38  ;;  %1469 = vmatprep.mubr.bf16.mxu0 %v1616_v39  ;;  %p1621_p0 = scmp.ne.s32.totalorder %s1162_s2, %s1620_s13  ;;  %p1626_p2 = scmp.lt.s32.totalorder %s1620_s13, %s1620_s13 }
  0x5d   :  { %1466 = vmatpush3.bf16.msra.mxu0 %v1614_v37  ;;  %1473 = vmatprep.mubr.bf16.mxu1 %v1617_v40 }
  0x5e   :  { %1491 = vmatpush3.bf16.msra.mxu1 %v1614_v37  ;;  %1467 = vmatprep.subr.bf16.mxu0 %v1615_v41  ;;  %p1627_p3 = por %p1626_p2, %p1625_p1 }
  0x5f   :  { %1484 = vmatprep.subr.bf16.mxu1 %v1615_v41 }
  0x60   :  { %p1628_p4 = pnand %p1627_p3, %p1621_p0 }
  0x61   :  { %1468 = vmatpush3.bf16.msra.mxu0 %v1615_v41 }
  0x62   :  { %1492 = vmatpush3.bf16.msra.mxu1 %v1615_v41 }
  0x64   :  { %1470 = vmatmul.mubr.bf16.vlgmr.msra.gmra.mrb[32].mxu0 %v1618_v42 }
  0x65   :  { %1474 = vmatmul.mubr.bf16.vlgmr.msra.gmra.mrb[32].mxu1 %v1619_v43 }
  0xf6   :  { %v1297_v44 = vpop.f32.mrb[0].mxu0 }
  0xf7   :  { %v1337_v45 = vpop.f32.mrb[0].mxu1  ;;  %v1298_v47 = vpop.f32.mrb[1].mxu0 }
  0xf8   :  { %v1299_v48 = vadd.f32 %v1298_v47, %v1297_v44  ;;  %v1338_v49 = vpop.f32.mrb[1].mxu1  ;;  %v1300_v50 = vpop.f32.mrb[2].mxu0 }
  0xf9   :  { %v1339_v51 = vadd.f32 %v1338_v49, %v1337_v45  ;;  %v1340_v52 = vpop.f32.mrb[2].mxu1  ;;  %v1301_v53 = vpop.f32.mrb[3].mxu0 }
  0xfa   :  { %v858_v54 = vadd.f32 %v1299_v48, %v1172_v46  ;;  %v1302_v55 = vadd.f32 %v1301_v53, %v1300_v50  ;;  %v1341_v56 = vpop.f32.mrb[3].mxu1 }
  0xfb   :  { %v1342_v57 = vadd.f32 %v1341_v56, %v1340_v52 }
  0xfc   :  { %v923_v58 = vadd.f32 %v1339_v51, %v858_v54  ;;  %v861_v59 = vadd.f32 %v1302_v55, %v1172_v46 }
  0xfe   :  { %v926_v60 = vadd.f32 %v1342_v57, %v861_v59  ;;  %v1303_v61 = vpop.f32.mrb[4].mxu0 }
  0xff   :  { %v1343_v62 = vpop.f32.mrb[4].mxu1  ;;  %v1304_v63 = vpop.f32.mrb[5].mxu0 }
 0x100   :  { %v1305_v0 = vadd.f32 %v1304_v63, %v1303_v61  ;;  %v1344_v1 = vpop.f32.mrb[5].mxu1  ;;  %v1306_v2 = vpop.f32.mrb[6].mxu0 }
 0x101   :  { %v1345_v3 = vadd.f32 %v1344_v1, %v1343_v62  ;;  %v1346_v4 = vpop.f32.mrb[6].mxu1  ;;  %v1307_v5 = vpop.f32.mrb[7].mxu0 }
 0x102   :  { %v866_v6 = vadd.f32 %v1305_v0, %v1172_v46  ;;  %v1308_v7 = vadd.f32 %v1307_v5, %v1306_v2  ;;  %v1347_v8 = vpop.f32.mrb[7].mxu1 }
 0x103   :  { %v1348_v9 = vadd.f32 %v1347_v8, %v1346_v4 }
 0x104   :  { %v931_v10 = vadd.f32 %v1345_v3, %v866_v6  ;;  %v869_v11 = vadd.f32 %v1308_v7, %v1172_v46 }
 0x106   :  { %v934_v12 = vadd.f32 %v1348_v9, %v869_v11  ;;  %v1309_v13 = vpop.f32.mrb[8].mxu0 }
 0x107   :  { %v1349_v14 = vpop.f32.mrb[8].mxu1  ;;  %v1310_v15 = vpop.f32.mrb[9].mxu0 }
 0x108   :  { %v1311_v16 = vadd.f32 %v1310_v15, %v1309_v13  ;;  %v1350_v17 = vpop.f32.mrb[9].mxu1  ;;  %v1312_v18 = vpop.f32.mrb[10].mxu0 }
 0x109   :  { %v1351_v19 = vadd.f32 %v1350_v17, %v1349_v14  ;;  %v1352_v20 = vpop.f32.mrb[10].mxu1  ;;  %v1313_v21 = vpop.f32.mrb[11].mxu0 }
 0x10a   :  { %v874_v22 = vadd.f32 %v1311_v16, %v1172_v46  ;;  %v1314_v23 = vadd.f32 %v1313_v21, %v1312_v18  ;;  %v1353_v24 = vpop.f32.mrb[11].mxu1 }
 0x10b   :  { %v1354_v25 = vadd.f32 %v1353_v24, %v1352_v20 }
 0x10c   :  { %v939_v26 = vadd.f32 %v1351_v19, %v874_v22  ;;  %v877_v27 = vadd.f32 %v1314_v23, %v1172_v46 }
 0x10e   :  { %v942_v28 = vadd.f32 %v1354_v25, %v877_v27  ;;  %v1315_v29 = vpop.f32.mrb[12].mxu0 }
 0x10f   :  { %v1355_v30 = vpop.f32.mrb[12].mxu1  ;;  %v1316_v31 = vpop.f32.mrb[13].mxu0 }
 0x110   :  { %v1356_v32 = vpop.f32.mrb[13].mxu1  ;;  %v1317_v33 = vadd.f32 %v1316_v31, %v1315_v29  ;;  %v1318_v35 = vpop.f32.mrb[14].mxu0 }
 0x111   :  { %v1357_v34 = vadd.f32 %v1356_v32, %v1355_v30  ;;  %v1358_v36 = vpop.f32.mrb[14].mxu1  ;;  %v1319_v37 = vpop.f32.mrb[15].mxu0 }
 0x112   :  { %v1359_v38 = vpop.f32.mrb[15].mxu1  ;;  %v882_v39 = vadd.f32 %v1317_v33, %v1172_v46  ;;  %v1320_v40 = vadd.f32 %v1319_v37, %v1318_v35 }
 0x113   :  { %v1360_v41 = vadd.f32 %v1359_v38, %v1358_v36 }
 0x114   :  { %v947_v42 = vadd.f32 %v1357_v34, %v882_v39  ;;  %v885_v43 = vadd.f32 %v1320_v40, %v1172_v46 }
 0x116   :  { %v950_v44 = vadd.f32 %v1360_v41, %v885_v43  ;;  %v1377_v45 = vpop.f32.mrb[16].mxu0 }
 0x117   :  { %v1378_v47 = vpop.f32.mrb[17].mxu0  ;;  %v1417_v48 = vpop.f32.mrb[16].mxu1 }
 0x118   :  { %v1379_v49 = vadd.f32 %v1378_v47, %v1377_v45  ;;  %v1380_v50 = vpop.f32.mrb[18].mxu0  ;;  %v1418_v51 = vpop.f32.mrb[17].mxu1 }
 0x119   :  { %v1381_v52 = vpop.f32.mrb[19].mxu0  ;;  %v1419_v54 = vadd.f32 %v1418_v51, %v1417_v48  ;;  %v1420_v55 = vpop.f32.mrb[18].mxu1 }
 0x11a   :  { %v988_v53 = vadd.f32 %v1379_v49, %v923_v58  ;;  %v1382_v56 = vadd.f32 %v1381_v52, %v1380_v50  ;;  %v1421_v57 = vpop.f32.mrb[19].mxu1 }
 0x11b   :  { %v1422_v61 = vadd.f32 %v1421_v57, %v1420_v55 }
 0x11c   :  { %v991_v59 = vadd.f32 %v1382_v56, %v926_v60  ;;  %v1053_v62 = vadd.f32 %v1419_v54, %v988_v53 }
 0x11e   :  { %v1383_v63 = vpop.f32.mrb[20].mxu0  ;;  %v1994_v0 = vadd.f32 %v1422_v61, %v991_v59 }
 0x11f   :  { %v1384_v46 = vpop.f32.mrb[21].mxu0  ;;  %v1423_v1 = vpop.f32.mrb[20].mxu1 }
 0x120   :  { %v1385_v2 = vadd.f32 %v1384_v46, %v1383_v63  ;;  %v1386_v3 = vpop.f32.mrb[22].mxu0  ;;  %v1424_v4 = vpop.f32.mrb[21].mxu1 }
 0x121   :  { %v1387_v5 = vpop.f32.mrb[23].mxu0  ;;  %v1425_v7 = vadd.f32 %v1424_v4, %v1423_v1  ;;  %v1426_v8 = vpop.f32.mrb[22].mxu1 }
 0x122   :  { %v996_v6 = vadd.f32 %v1385_v2, %v931_v10  ;;  %v1388_v58 = vadd.f32 %v1387_v5, %v1386_v3  ;;  %v1427_v9 = vpop.f32.mrb[23].mxu1 }
 0x123   :  { %v1428_v13 = vadd.f32 %v1427_v9, %v1426_v8 }
 0x124   :  { %v999_v11 = vadd.f32 %v1388_v58, %v934_v12  ;;  %v1061_v14 = vadd.f32 %v1425_v7, %v996_v6 }
 0x126   :  { %v1389_v60 = vpop.f32.mrb[24].mxu0  ;;  %v1064_v15 = vadd.f32 %v1428_v13, %v999_v11 }
 0x127   :  { %v1390_v16 = vpop.f32.mrb[25].mxu0  ;;  %v1429_v17 = vpop.f32.mrb[24].mxu1 }
 0x128   :  { %v1391_v18 = vadd.f32 %v1390_v16, %v1389_v60  ;;  %v1392_v19 = vpop.f32.mrb[26].mxu0  ;;  %v1430_v20 = vpop.f32.mrb[25].mxu1 }
 0x129   :  { %v1393_v21 = vpop.f32.mrb[27].mxu0  ;;  %v1431_v23 = vadd.f32 %v1430_v20, %v1429_v17  ;;  %v1432_v24 = vpop.f32.mrb[26].mxu1 }
 0x12a   :  { %v1004_v22 = vadd.f32 %v1391_v18, %v939_v26  ;;  %v1394_v25 = vadd.f32 %v1393_v21, %v1392_v19  ;;  %v1433_v10 = vpop.f32.mrb[27].mxu1 }
 0x12b   :  { %v1434_v29 = vadd.f32 %v1433_v10, %v1432_v24 }
 0x12c   :  { %v1007_v27 = vadd.f32 %v1394_v25, %v942_v28  ;;  %v1069_v30 = vadd.f32 %v1431_v23, %v1004_v22 }
 0x12e   :  { %v1395_v31 = vpop.f32.mrb[28].mxu0  ;;  %v1072_v12 = vadd.f32 %v1434_v29, %v1007_v27 }
 0x12f   :  { %v1396_v32 = vpop.f32.mrb[29].mxu0  ;;  %v1435_v33 = vpop.f32.mrb[28].mxu1 }
 0x130   :  { %v1397_v34 = vadd.f32 %v1396_v32, %v1395_v31  ;;  %v1398_v35 = vpop.f32.mrb[30].mxu0  ;;  %v1436_v36 = vpop.f32.mrb[29].mxu1 }
 0x131   :  { %v1399_v37 = vpop.f32.mrb[31].mxu0  ;;  %v1437_v39 = vadd.f32 %v1436_v36, %v1435_v33  ;;  %v1438_v40 = vpop.f32.mrb[30].mxu1 }
 0x132   :  { %v1012_v38 = vadd.f32 %v1397_v34, %v947_v42  ;;  %v1400_v41 = vadd.f32 %v1399_v37, %v1398_v35  ;;  %v1439_v26 = vpop.f32.mrb[31].mxu1 }
 0x133   :  { %v1440_v45 = vadd.f32 %v1439_v26, %v1438_v40 }
 0x134   :  { %v1015_v43 = vadd.f32 %v1400_v41, %v950_v44  ;;  %v1077_v47 = vadd.f32 %v1437_v39, %v1012_v38 }
 0x136   :  { %v1080_v48 = vadd.f32 %v1440_v45, %v1015_v43 }
 0x137   :  { %v1471_v28 = vpop.f32.mrb[32].mxu0 }
 0x138   :  { %v1126_v49 = vadd.f32 %v1471_v28, %v1061_v14  ;;  %v1475_v50 = vpop.f32.mrb[32].mxu1  ;;  %v1117_v51 = vpop.f32.mrb[33].mxu0 }
 0x139   :  { %v1142_v52 = vadd.f32 %v1475_v50, %v1077_v47  ;;  %v1118_v53 = vadd.f32 %v1117_v51, %v1053_v62  ;;  %v1133_v54 = vpop.f32.mrb[33].mxu1  ;;  %v1472_v55 = vpop.f32.mrb[34].mxu0 }
 0x13a   :  { %1150 = vst [vmem:[#allocation2 + $0x10] sm:$0xff] %v1126_v49  ;;  %v1134_v42 = vadd.f32 %v1133_v54, %v1069_v30  ;;  %v1129_v56 = vadd.f32 %v1472_v55, %v1064_v15  ;;  %v1476_v57 = vpop.f32.mrb[34].mxu1  ;;  %v1120_v59 = vpop.f32.mrb[35].mxu0 }
 0x13b   :  { %1154 = vst [vmem:[#allocation2 + $0x30] sm:$0xff] %v1142_v52  ;;  %1148 = vst [vmem:[#allocation2] sm:$0xff] %v1118_v53  ;;  %v1145_v44 = vadd.f32 %v1476_v57, %v1080_v48  ;;  %v1121_v61 = vadd.f32 %v1120_v59, %v1994_v0  ;;  %v1136_v63 = vpop.f32.mrb[35].mxu1 }
 0x13c   :  { %1152 = vst [vmem:[#allocation2 + $0x20] sm:$0xff] %v1134_v42  ;;  %1151 = vst [vmem:[#allocation2 + $0x18] sm:$0xff] %v1129_v56  ;;  %v1137_v46 = vadd.f32 %v1136_v63, %v1072_v12 }
 0x13d   :  { %1155 = vst [vmem:[#allocation2 + $0x38] sm:$0xff] %v1145_v44  ;;  %1149 = vst [vmem:[#allocation2 + $0x8] sm:$0xff] %v1121_v61 }
 0x13e   :  { %1153 = vst [vmem:[#allocation2 + $0x28] sm:$0xff] %v1137_v46 }
 0x13f   :  { %1631 = shalt.err (!%p1628_p4)
}
 0x140   :  { %s1632_s16 = scalar_lea.hbm %s2012_s3, 1024 }
 0x141   :  { %p1633_p5 = scmp.ne.s32.totalorder %s2012_s3, %s1632_s16  ;;  %p1636_p6 = scmp.lt.u32.totalorder %s1632_s16, %s2012_s3 }
 0x143   :  { %p1638_p7 = pnand %p1636_p6, %p1633_p5 }
 0x145   :  { %1641 = shalt.err (!%p1638_p7)
}
 0x146   :  { %s1645_s21 = smov 128   ;;  %s1646_s22 = smov 8  }
 0x147   :  { %1167 = dma.vmem_to_hbm [thread:$0]  %s1162_s2, 1024, %s2012_s3, [#allocation3], %s1645_s21, %s1645_s21, %s1646_s22  }
 0x148   :  { %1642 = dma.done.wait [#allocation3], 1024  }
 0x149   :  { %1643 = vsyncadd [#allocation3], 4294966272 }
 0x14a   :  { %1171 = vsyncpa [#allocation3], 1 }

// kernel: precompute_targets.17
= control target key start
LH: loop header
LB: loop body
LE: loop exit
PB: predicated region body
PF: predicated region fallthrough
CT: control target
= control target key end

     0   :  { %vm150_vm0 = vcmask 261120   ;;  %vm360_vm1 = vcmask 523264   ;;  %s763_s1 = inlined_call_operand.vmem [shape: bf16[32,64], index: 1, kind: input, shape index: {}]   ;;  %s764_s0 = inlined_call_operand.vmem [shape: bf16[256,32], index: 0, kind: input, shape index: {}]   ;;  %s765_s2 = inlined_call_operand.vmem [shape: f32[1,64], index: 2, kind: input, shape index: {}]   ;;  %s766_s3 = inlined_call_operand.vmem [shape: f32[256,64], index: 3, kind: output, shape index: {}]  }
   0x1   :  { %v490_v0 = vld [vmem:[%s763_s1] sm:$0xff]   ;;  %v491_v1 = vld [vmem:[%s763_s1 + $0x8] sm:$0xff]   ;;  %v496_v6 = vld [vmem:[%s764_s0 + $0x10] sm:$0xff]  }
   0x2   :  { %450 = vmatprep.subr.bf16.mxu0 %v490_v0  ;;  %486 = vmatprep.subr.bf16.mxu1 %v490_v0  ;;  %v492_v2 = vld [vmem:[%s764_s0] sm:$0xff]   ;;  %v494_v4 = vld [vmem:[%s764_s0 + $0x8] sm:$0xff]   ;;  %v497_v7 = vld [vmem:[%s764_s0 + $0x50] sm:$0xff]  }
   0x3   :  { %451 = vmatpush3.bf16.msra.mxu0 %v490_v0  ;;  %488 = vmatpush3.bf16.msra.mxu1 %v490_v0  ;;  %v493_v3 = vld [vmem:[%s764_s0 + $0x40] sm:$0xff]   ;;  %v495_v5 = vld [vmem:[%s764_s0 + $0x48] sm:$0xff]   ;;  %v498_v8 = vld [vmem:[%s764_s0 + $0x18] sm:$0xff]  }
   0x4   :  { %452 = vmatprep.subr.bf16.mxu0 %v491_v1  ;;  %487 = vmatprep.subr.bf16.mxu1 %v491_v1  ;;  %v499_v9 = vld [vmem:[%s764_s0 + $0x58] sm:$0xff]   ;;  %v500_v10 = vld [vmem:[%s764_s0 + $0x20] sm:$0xff]   ;;  %v502_v12 = vld [vmem:[%s764_s0 + $0x28] sm:$0xff]  }
   0x5   :  { %454 = vmatprep.mubr.msk.bf16.mxu0 %vm150_vm0, %v492_v2  ;;  %470 = vmatprep.mubr.msk.bf16.mxu1 %vm150_vm0, %v493_v3  ;;  %v501_v11 = vld [vmem:[%s764_s0 + $0x60] sm:$0xff]   ;;  %v503_v13 = vld [vmem:[%s764_s0 + $0x68] sm:$0xff]   ;;  %v504_v14 = vld [vmem:[%s764_s0 + $0x30] sm:$0xff]  }
   0x6   :  { %v505_v15 = vld [vmem:[%s764_s0 + $0x70] sm:$0xff]   ;;  %v506_v16 = vld [vmem:[%s764_s0 + $0x38] sm:$0xff]   ;;  %v601_v18 = vld [vmem:[%s765_s2] ss:$0 sm:$0xff] }
   0x7   :  { %453 = vmatpush3.bf16.msra.mxu0 %v491_v1  ;;  %489 = vmatpush3.bf16.msra.mxu1 %v491_v1  ;;  %v507_v17 = vld [vmem:[%s764_s0 + $0x78] sm:$0xff]  }
   0xa   :  { %455 = vmatmul.mubr.msk.bf16.vlgmr.msra.gmra.mrb[0].mxu0 %vm150_vm0, %v494_v4  ;;  %471 = vmatmul.mubr.msk.bf16.vlgmr.msra.gmra.mrb[0].mxu1 %vm150_vm0, %v495_v5 }
   0xb   :  { %458 = vmatprep.mubr.msk.bf16.mxu0 %vm150_vm0, %v496_v6  ;;  %474 = vmatprep.mubr.msk.bf16.mxu1 %vm150_vm0, %v497_v7 }
  0x12   :  { %459 = vmatmul.mubr.msk.bf16.gmra.mrb[4].mxu0 %vm150_vm0, %v498_v8  ;;  %475 = vmatmul.mubr.msk.bf16.gmra.mrb[4].mxu1 %vm150_vm0, %v499_v9 }
  0x13   :  { %462 = vmatprep.mubr.msk.bf16.mxu0 %vm150_vm0, %v500_v10  ;;  %478 = vmatprep.mubr.msk.bf16.mxu1 %vm150_vm0, %v501_v11 }
  0x1a   :  { %463 = vmatmul.mubr.msk.bf16.gmra.mrb[8].mxu0 %vm150_vm0, %v502_v12  ;;  %479 = vmatmul.mubr.msk.bf16.gmra.mrb[8].mxu1 %vm150_vm0, %v503_v13 }
  0x1b   :  { %466 = vmatprep.mubr.msk.bf16.mxu0 %vm150_vm0, %v504_v14  ;;  %482 = vmatprep.mubr.msk.bf16.mxu1 %vm150_vm0, %v505_v15 }
  0x22   :  { %467 = vmatmul.mubr.msk.bf16.gmra.mrb[12].mxu0 %vm150_vm0, %v506_v16  ;;  %483 = vmatmul.mubr.msk.bf16.gmra.mrb[12].mxu1 %vm150_vm0, %v507_v17 }
  0xdd   :  { %v456_v19 = vpop.f32.mrb[0].mxu0  ;;  %v472_v20 = vpop.f32.mrb[0].mxu1 }
  0xde   :  { %v242_v21 = vadd.f32 %v456_v19, %v601_v18  ;;  %v306_v22 = vadd.f32 %v472_v20, %v601_v18  ;;  %v233_v23 = vpop.f32.mrb[1].mxu0  ;;  %v297_v24 = vpop.f32.mrb[1].mxu1 }
  0xdf   :  { %v234_v25 = vadd.f32 %v601_v18, %v233_v23  ;;  %v298_v26 = vadd.f32 %v601_v18, %v297_v24  ;;  %v457_v27 = vpop.f32.mrb[2].mxu0  ;;  %v473_v28 = vpop.f32.mrb[2].mxu1 }
  0xe0   :  { %363 = vst.msk [vmem:[%s766_s3 + $0x10] sm:$0xff] %vm360_vm1, %v242_v21  ;;  %379 = vst.msk [vmem:[%s766_s3 + $0x90] sm:$0xff] %vm360_vm1, %v306_v22  ;;  %v245_v29 = vadd.f32 %v457_v27, %v601_v18  ;;  %v309_v30 = vadd.f32 %v473_v28, %v601_v18  ;;  %v236_v31 = vpop.f32.mrb[3].mxu0  ;;  %v300_v32 = vpop.f32.mrb[3].mxu1 }
  0xe1   :  { %361 = vst.msk [vmem:[%s766_s3] sm:$0xff] %vm360_vm1, %v234_v25  ;;  %377 = vst.msk [vmem:[%s766_s3 + $0x80] sm:$0xff] %vm360_vm1, %v298_v26  ;;  %v237_v33 = vadd.f32 %v601_v18, %v236_v31  ;;  %v301_v34 = vadd.f32 %v601_v18, %v300_v32 }
  0xe2   :  { %364 = vst.msk [vmem:[%s766_s3 + $0x18] sm:$0xff] %vm360_vm1, %v245_v29  ;;  %380 = vst.msk [vmem:[%s766_s3 + $0x98] sm:$0xff] %vm360_vm1, %v309_v30 }
  0xe3   :  { %362 = vst.msk [vmem:[%s766_s3 + $0x8] sm:$0xff] %vm360_vm1, %v237_v33  ;;  %378 = vst.msk [vmem:[%s766_s3 + $0x88] sm:$0xff] %vm360_vm1, %v301_v34 }
  0xe5   :  { %v460_v35 = vpop.f32.mrb[4].mxu0  ;;  %v476_v36 = vpop.f32.mrb[4].mxu1 }
  0xe6   :  { %v258_v37 = vadd.f32 %v460_v35, %v601_v18  ;;  %v322_v38 = vadd.f32 %v476_v36, %v601_v18  ;;  %v249_v39 = vpop.f32.mrb[5].mxu0  ;;  %v313_v40 = vpop.f32.mrb[5].mxu1 }
  0xe7   :  { %v250_v41 = vadd.f32 %v601_v18, %v249_v39  ;;  %v314_v42 = vadd.f32 %v601_v18, %v313_v40  ;;  %v461_v43 = vpop.f32.mrb[6].mxu0  ;;  %v477_v44 = vpop.f32.mrb[6].mxu1 }
  0xe8   :  { %367 = vst.msk [vmem:[%s766_s3 + $0x30] sm:$0xff] %vm360_vm1, %v258_v37  ;;  %383 = vst.msk [vmem:[%s766_s3 + $0xb0] sm:$0xff] %vm360_vm1, %v322_v38  ;;  %v261_v45 = vadd.f32 %v461_v43, %v601_v18  ;;  %v325_v46 = vadd.f32 %v477_v44, %v601_v18  ;;  %v252_v47 = vpop.f32.mrb[7].mxu0  ;;  %v316_v48 = vpop.f32.mrb[7].mxu1 }
  0xe9   :  { %365 = vst.msk [vmem:[%s766_s3 + $0x20] sm:$0xff] %vm360_vm1, %v250_v41  ;;  %381 = vst.msk [vmem:[%s766_s3 + $0xa0] sm:$0xff] %vm360_vm1, %v314_v42  ;;  %v253_v49 = vadd.f32 %v601_v18, %v252_v47  ;;  %v317_v50 = vadd.f32 %v601_v18, %v316_v48 }
  0xea   :  { %368 = vst.msk [vmem:[%s766_s3 + $0x38] sm:$0xff] %vm360_vm1, %v261_v45  ;;  %384 = vst.msk [vmem:[%s766_s3 + $0xb8] sm:$0xff] %vm360_vm1, %v325_v46 }
  0xeb   :  { %366 = vst.msk [vmem:[%s766_s3 + $0x28] sm:$0xff] %vm360_vm1, %v253_v49  ;;  %382 = vst.msk [vmem:[%s766_s3 + $0xa8] sm:$0xff] %vm360_vm1, %v317_v50 }
  0xed   :  { %v464_v51 = vpop.f32.mrb[8].mxu0  ;;  %v480_v52 = vpop.f32.mrb[8].mxu1 }
  0xee   :  { %v274_v53 = vadd.f32 %v464_v51, %v601_v18  ;;  %v338_v54 = vadd.f32 %v480_v52, %v601_v18  ;;  %v265_v55 = vpop.f32.mrb[9].mxu0  ;;  %v329_v56 = vpop.f32.mrb[9].mxu1 }
  0xef   :  { %v266_v57 = vadd.f32 %v601_v18, %v265_v55  ;;  %v330_v58 = vadd.f32 %v601_v18, %v329_v56  ;;  %v465_v59 = vpop.f32.mrb[10].mxu0  ;;  %v481_v60 = vpop.f32.mrb[10].mxu1 }
  0xf0   :  { %371 = vst.msk [vmem:[%s766_s3 + $0x50] sm:$0xff] %vm360_vm1, %v274_v53  ;;  %387 = vst.msk [vmem:[%s766_s3 + $0xd0] sm:$0xff] %vm360_vm1, %v338_v54  ;;  %v277_v61 = vadd.f32 %v465_v59, %v601_v18  ;;  %v341_v62 = vadd.f32 %v481_v60, %v601_v18  ;;  %v268_v63 = vpop.f32.mrb[11].mxu0  ;;  %v332_v0 = vpop.f32.mrb[11].mxu1 }
  0xf1   :  { %369 = vst.msk [vmem:[%s766_s3 + $0x40] sm:$0xff] %vm360_vm1, %v266_v57  ;;  %385 = vst.msk [vmem:[%s766_s3 + $0xc0] sm:$0xff] %vm360_vm1, %v330_v58  ;;  %v269_v1 = vadd.f32 %v601_v18, %v268_v63  ;;  %v333_v2 = vadd.f32 %v601_v18, %v332_v0 }
  0xf2   :  { %372 = vst.msk [vmem:[%s766_s3 + $0x58] sm:$0xff] %vm360_vm1, %v277_v61  ;;  %388 = vst.msk [vmem:[%s766_s3 + $0xd8] sm:$0xff] %vm360_vm1, %v341_v62 }
  0xf3   :  { %370 = vst.msk [vmem:[%s766_s3 + $0x48] sm:$0xff] %vm360_vm1, %v269_v1  ;;  %386 = vst.msk [vmem:[%s766_s3 + $0xc8] sm:$0xff] %vm360_vm1, %v333_v2 }
  0xf5   :  { %v468_v3 = vpop.f32.mrb[12].mxu0  ;;  %v484_v4 = vpop.f32.mrb[12].mxu1 }
  0xf6   :  { %v290_v5 = vadd.f32 %v468_v3, %v601_v18  ;;  %v354_v6 = vadd.f32 %v484_v4, %v601_v18  ;;  %v281_v7 = vpop.f32.mrb[13].mxu0  ;;  %v345_v8 = vpop.f32.mrb[13].mxu1 }
  0xf7   :  { %v282_v9 = vadd.f32 %v601_v18, %v281_v7  ;;  %v346_v10 = vadd.f32 %v601_v18, %v345_v8  ;;  %v469_v11 = vpop.f32.mrb[14].mxu0  ;;  %v485_v12 = vpop.f32.mrb[14].mxu1 }
  0xf8   :  { %375 = vst.msk [vmem:[%s766_s3 + $0x70] sm:$0xff] %vm360_vm1, %v290_v5  ;;  %391 = vst.msk [vmem:[%s766_s3 + $0xf0] sm:$0xff] %vm360_vm1, %v354_v6  ;;  %v293_v13 = vadd.f32 %v469_v11, %v601_v18  ;;  %v357_v14 = vadd.f32 %v485_v12, %v601_v18  ;;  %v284_v15 = vpop.f32.mrb[15].mxu0  ;;  %v348_v16 = vpop.f32.mrb[15].mxu1 }
  0xf9   :  { %373 = vst.msk [vmem:[%s766_s3 + $0x60] sm:$0xff] %vm360_vm1, %v282_v9  ;;  %389 = vst.msk [vmem:[%s766_s3 + $0xe0] sm:$0xff] %vm360_vm1, %v346_v10  ;;  %v285_v17 = vadd.f32 %v601_v18, %v284_v15  ;;  %v349_v19 = vadd.f32 %v601_v18, %v348_v16 }
  0xfa   :  { %376 = vst.msk [vmem:[%s766_s3 + $0x78] sm:$0xff] %vm360_vm1, %v293_v13  ;;  %392 = vst.msk [vmem:[%s766_s3 + $0xf8] sm:$0xff] %vm360_vm1, %v357_v14 }
  0xfb   :  { %374 = vst.msk [vmem:[%s766_s3 + $0x68] sm:$0xff] %vm360_vm1, %v285_v17  ;;  %390 = vst.msk [vmem:[%s766_s3 + $0xe8] sm:$0xff] %vm360_vm1, %v349_v19 }

// kernel: precompute_targets.22
= control target key start
LH: loop header
LB: loop body
LE: loop exit
PB: predicated region body
PF: predicated region fallthrough
CT: control target
= control target key end

     0   :  { %s98_s0 = inlined_call_operand.vmem [shape: f32[4,2,4,256], index: 0, kind: input, shape index: {}]   ;;  %s99_s1 = inlined_call_operand.vmem [shape: f32[4,4,128], index: 1, kind: output, shape index: {}]  }
   0x1   :  { %v8_v0 = vld [vmem:[%s98_s0] sm:$0xff]  ;;  %v9_v1 = vld [vmem:[%s98_s0 + $0x8] sm:$0xff]  ;;  %v10_v2 = vld [vmem:[%s98_s0 + $0x10] sm:$0xff] }
   0x2   :  { %v16_v3 = vmax.f32 %v8_v0, 0.0  ;;  %v17_v4 = vmax.f32 %v9_v1, 0.0  ;;  %v11_v5 = vld [vmem:[%s98_s0 + $0x18] sm:$0xff]  ;;  %v18_v6 = vmax.f32 %v10_v2, 0.0  ;;  %v12_v7 = vld [vmem:[%s98_s0 + $0x20] sm:$0xff]  ;;  %v13_v8 = vld [vmem:[%s98_s0 + $0x28] sm:$0xff] }
   0x3   :  { %v19_v9 = vmax.f32 %v11_v5, 0.0  ;;  %v20_v10 = vmax.f32 %v12_v7, 0.0  ;;  %v21_v11 = vmax.f32 %v13_v8, 0.0  ;;  %v14_v12 = vld [vmem:[%s98_s0 + $0x30] sm:$0xff]  ;;  %v15_v13 = vld [vmem:[%s98_s0 + $0x38] sm:$0xff] }
   0x4   :  { %v24_v14 = vmax.f32 %v16_v3, %v17_v4  ;;  %v22_v15 = vmax.f32 %v14_v12, 0.0  ;;  %v23_v16 = vmax.f32 %v15_v13, 0.0 }
   0x5   :  { %v25_v17 = vmax.f32 %v18_v6, %v19_v9  ;;  %v26_v18 = vmax.f32 %v20_v10, %v21_v11 }
   0x6   :  { %v32_v19 = vrot.slane %v24_v14, 4  ;;  %v27_v20 = vmax.f32 %v22_v15, %v23_v16 }
   0x7   :  { %v33_v21 = vrot.slane %v25_v17, 4  ;;  %v34_v22 = vrot.slane %v26_v18, 4 }
   0x8   :  { %v40_v23 = vmax.f32 %v24_v14, %v32_v19  ;;  %v35_v24 = vrot.slane %v27_v20, 4 }
   0x9   :  { %v41_v25 = vmax.f32 %v25_v17, %v33_v21  ;;  %v42_v26 = vmax.f32 %v26_v18, %v34_v22 }
   0xa   :  { %44 = vst [vmem:[%s99_s1] sm:$0xf] %v40_v23  ;;  %v43_v27 = vmax.f32 %v27_v20, %v35_v24 }
   0xb   :  { %45 = vst [vmem:[%s99_s1 + $0x4] sm:$0xf] %v41_v25  ;;  %46 = vst [vmem:[%s99_s1 + $0x8] sm:$0xf] %v42_v26 }
   0xc   :  { %47 = vst [vmem:[%s99_s1 + $0xc] sm:$0xf] %v43_v27 }

// kernel: precompute_targets.21
= control target key start
LH: loop header
LB: loop body
LE: loop exit
PB: predicated region body
PF: predicated region fallthrough
CT: control target
= control target key end

     0   :  { %s1978_s1 = inlined_call_operand.vmem [shape: bf16[1152,128], index: 1, kind: input, shape index: {}]   ;;  %s1979_s0 = inlined_call_operand.vmem [shape: bf16[64,1152], index: 0, kind: input, shape index: {}]   ;;  %s1980_s2 = inlined_call_operand.vmem [shape: f32[1,128], index: 2, kind: input, shape index: {}]   ;;  %s1981_s3 = inlined_call_operand.vmem [shape: f32[64,128], index: 3, kind: output, shape index: {}]  }
   0x1   :  { %v1480_v0 = vld [vmem:[%s1978_s1 + $0x40] sm:$0xff]   ;;  %v1484_v4 = vld [vmem:[%s1978_s1 + $0x48] sm:$0xff]   ;;  %v1488_v8 = vld [vmem:[%s1978_s1 + $0x50] sm:$0xff]  }
   0x2   :  { %v1481_v1 = vld [vmem:[%s1978_s1 + $0xc0] sm:$0xff]   ;;  %1268 = vmatprep.subr.bf16.mxu0 %v1480_v0  ;;  %v1485_v5 = vld [vmem:[%s1978_s1 + $0xc8] sm:$0xff]   ;;  %v1489_v9 = vld [vmem:[%s1978_s1 + $0xd0] sm:$0xff]  }
   0x3   :  { %v1482_v2 = vld [vmem:[%s1978_s1] sm:$0xff]   ;;  %1308 = vmatprep.subr.bf16.mxu1 %v1481_v1  ;;  %v1486_v6 = vld [vmem:[%s1978_s1 + $0x8] sm:$0xff]   ;;  %v1490_v10 = vld [vmem:[%s1978_s1 + $0x10] sm:$0xff]  }
   0x4   :  { %v1483_v3 = vld [vmem:[%s1978_s1 + $0x80] sm:$0xff]   ;;  %1269 = vmatpush3.bf16.msra.mxu0 %v1482_v2  ;;  %v1487_v7 = vld [vmem:[%s1978_s1 + $0x88] sm:$0xff]   ;;  %v1491_v11 = vld [vmem:[%s1978_s1 + $0x90] sm:$0xff]  }
   0x5   :  { %1309 = vmatpush3.bf16.msra.mxu1 %v1483_v3  ;;  %1270 = vmatprep.subr.bf16.mxu0 %v1484_v4  ;;  %v1492_v12 = vld [vmem:[%s1978_s1 + $0x58] sm:$0xff]   ;;  %v1496_v16 = vld [vmem:[%s1978_s1 + $0x60] sm:$0xff]   ;;  %v1500_v20 = vld [vmem:[%s1978_s1 + $0x68] sm:$0xff]  }
   0x6   :  { %1310 = vmatprep.subr.bf16.mxu1 %v1485_v5  ;;  %v1493_v13 = vld [vmem:[%s1978_s1 + $0xd8] sm:$0xff]   ;;  %v1497_v17 = vld [vmem:[%s1978_s1 + $0xe0] sm:$0xff]   ;;  %v1501_v21 = vld [vmem:[%s1978_s1 + $0xe8] sm:$0xff]  }
   0x7   :  { %v1494_v14 = vld [vmem:[%s1978_s1 + $0x18] sm:$0xff]   ;;  %v1498_v18 = vld [vmem:[%s1978_s1 + $0x20] sm:$0xff]   ;;  %v1502_v22 = vld [vmem:[%s1978_s1 + $0x28] sm:$0xff]  }
   0x8   :  { %1271 = vmatpush3.bf16.msra.mxu0 %v1486_v6  ;;  %v1495_v15 = vld [vmem:[%s1978_s1 + $0x98] sm:$0xff]   ;;  %v1499_v19 = vld [vmem:[%s1978_s1 + $0xa0] sm:$0xff]   ;;  %v1503_v23 = vld [vmem:[%s1978_s1 + $0xa8] sm:$0xff]  }
   0x9   :  { %1311 = vmatpush3.bf16.msra.mxu1 %v1487_v7  ;;  %1272 = vmatprep.subr.bf16.mxu0 %v1488_v8  ;;  %v1504_v24 = vld [vmem:[%s1978_s1 + $0x70] sm:$0xff]   ;;  %v1508_v28 = vld [vmem:[%s1978_s1 + $0x78] sm:$0xff]   ;;  %v1512_v32 = vld [vmem:[%s1979_s0] ss:$36 sps:$4 sm:$0xff]  }
   0xa   :  { %1312 = vmatprep.subr.bf16.mxu1 %v1489_v9  ;;  %v1505_v25 = vld [vmem:[%s1978_s1 + $0xf0] sm:$0xff]   ;;  %v1509_v29 = vld [vmem:[%s1978_s1 + $0xf8] sm:$0xff]   ;;  %v1514_v33 = vld [vmem:[%s1979_s0 + $0x4] ss:$36 sps:$4 sm:$0xff]  }
   0xb   :  { %v1506_v26 = vld [vmem:[%s1978_s1 + $0x30] sm:$0xff]   ;;  %v1510_v30 = vld [vmem:[%s1978_s1 + $0x38] sm:$0xff]   ;;  %v1515_v34 = vld [vmem:[%s1979_s0 + $0x8] ss:$36 sps:$4 sm:$0xff]   ;;  %854 = vmatprep.mubr.bf16.mxu0 %v1514_v33 }
   0xc   :  { %1273 = vmatpush3.bf16.msra.mxu0 %v1490_v10  ;;  %v1507_v27 = vld [vmem:[%s1978_s1 + $0xb0] sm:$0xff]   ;;  %v1511_v31 = vld [vmem:[%s1978_s1 + $0xb8] sm:$0xff]   ;;  %v1518_v36 = vld [vmem:[%s1978_s1 + $0x140] sm:$0xff]  }
   0xd   :  { %1313 = vmatpush3.bf16.msra.mxu1 %v1491_v11  ;;  %1274 = vmatprep.subr.bf16.mxu0 %v1492_v12  ;;  %v1517_v35 = vld [vmem:[%s1979_s0 + $0xc] ss:$36 sps:$4 sm:$0xff]   ;;  %v1519_v37 = vld [vmem:[%s1978_s1 + $0x1c0] sm:$0xff]   ;;  %v1528_v45 = vld [vmem:[%s1979_s0 + $0x54] ss:$36 sps:$4 sm:$0xff]  }
   0xe   :  { %1314 = vmatprep.subr.bf16.mxu1 %v1493_v13  ;;  %919 = vmatprep.mubr.bf16.mxu1 %v1517_v35  ;;  %v1520_v38 = vld [vmem:[%s1978_s1 + $0x100] sm:$0xff]   ;;  %v1522_v40 = vld [vmem:[%s1978_s1 + $0x148] sm:$0xff]   ;;  %v1531_v47 = vld [vmem:[%s1979_s0 + $0x50] ss:$36 sps:$4 sm:$0xff]  }
   0xf   :  { %v1521_v39 = vld [vmem:[%s1978_s1 + $0x180] sm:$0xff]   ;;  %v1523_v41 = vld [vmem:[%s1978_s1 + $0x1c8] sm:$0xff]   ;;  %v1532_v48 = vld [vmem:[%s1978_s1 + $0x150] sm:$0xff]  }
  0x10   :  { %1275 = vmatpush3.bf16.msra.mxu0 %v1494_v14  ;;  %v1524_v42 = vld [vmem:[%s1978_s1 + $0x108] sm:$0xff]   ;;  %v1533_v49 = vld [vmem:[%s1978_s1 + $0x1d0] sm:$0xff]   ;;  %v1536_v52 = vld [vmem:[%s1978_s1 + $0x158] sm:$0xff]  }
  0x11   :  { %1315 = vmatpush3.bf16.msra.mxu1 %v1495_v15  ;;  %1276 = vmatprep.subr.bf16.mxu0 %v1496_v16  ;;  %v1525_v43 = vld [vmem:[%s1978_s1 + $0x188] sm:$0xff]   ;;  %v1534_v50 = vld [vmem:[%s1978_s1 + $0x110] sm:$0xff]   ;;  %v1537_v53 = vld [vmem:[%s1978_s1 + $0x1d8] sm:$0xff]  }
  0x12   :  { %1316 = vmatprep.subr.bf16.mxu1 %v1497_v17  ;;  %v1526_v44 = vld [vmem:[%s1979_s0 + $0x4c] ss:$36 sps:$4 sm:$0xff]   ;;  %v1538_v54 = vld [vmem:[%s1978_s1 + $0x118] sm:$0xff]   ;;  %v1546_v60 = vld [vmem:[%s1978_s1 + $0x160] sm:$0xff]  }
  0x13   :  { %v1530_v46 = vld [vmem:[%s1979_s0 + $0x48] ss:$36 sps:$4 sm:$0xff]   ;;  %v1535_v51 = vld [vmem:[%s1978_s1 + $0x190] sm:$0xff]   ;;  %v1539_v55 = vld [vmem:[%s1978_s1 + $0x198] sm:$0xff]  }
  0x14   :  { %1277 = vmatpush3.bf16.msra.mxu0 %v1498_v18  ;;  %v1540_v56 = vld [vmem:[%s1979_s0 + $0x94] ss:$36 sps:$4 sm:$0xff]   ;;  %v1542_v57 = vld [vmem:[%s1979_s0 + $0x9c] ss:$36 sps:$4 sm:$0xff]   ;;  %v1550_v0 = vld [vmem:[%s1978_s1 + $0x168] sm:$0xff]  }
  0x15   :  { %1317 = vmatpush3.bf16.msra.mxu1 %v1499_v19  ;;  %1278 = vmatprep.subr.bf16.mxu0 %v1500_v20  ;;  %v1544_v58 = vld [vmem:[%s1979_s0 + $0x90] ss:$36 sps:$4 sm:$0xff]   ;;  %v1545_v59 = vld [vmem:[%s1979_s0 + $0x98] ss:$36 sps:$4 sm:$0xff]   ;;  %v1547_v61 = vld [vmem:[%s1978_s1 + $0x1e0] sm:$0xff]  }
  0x16   :  { %1318 = vmatprep.subr.bf16.mxu1 %v1501_v21  ;;  %v1548_v62 = vld [vmem:[%s1978_s1 + $0x120] sm:$0xff]   ;;  %v1551_v1 = vld [vmem:[%s1978_s1 + $0x1e8] sm:$0xff]   ;;  %v1558_v6 = vld [vmem:[%s1979_s0 + $0xd8] ss:$36 sps:$4 sm:$0xff]  }
  0x17   :  { %v1549_v63 = vld [vmem:[%s1978_s1 + $0x1a0] sm:$0xff]   ;;  %v1552_v2 = vld [vmem:[%s1978_s1 + $0x128] sm:$0xff]   ;;  %v1560_v8 = vld [vmem:[%s1978_s1 + $0x170] sm:$0xff]  }
  0x18   :  { %1279 = vmatpush3.bf16.msra.mxu0 %v1502_v22  ;;  %v1553_v3 = vld [vmem:[%s1978_s1 + $0x1a8] sm:$0xff]   ;;  %v1554_v4 = vld [vmem:[%s1979_s0 + $0xdc] ss:$36 sps:$4 sm:$0xff]   ;;  %v1561_v9 = vld [vmem:[%s1978_s1 + $0x1f0] sm:$0xff]  }
  0x19   :  { %1319 = vmatpush3.bf16.msra.mxu1 %v1503_v23  ;;  %1280 = vmatprep.subr.bf16.mxu0 %v1504_v24  ;;  %v1556_v5 = vld [vmem:[%s1979_s0 + $0xe4] ss:$36 sps:$4 sm:$0xff]   ;;  %v1562_v10 = vld [vmem:[%s1978_s1 + $0x130] sm:$0xff]   ;;  %v1564_v12 = vld [vmem:[%s1978_s1 + $0x178] sm:$0xff]  }
  0x1a   :  { %1320 = vmatprep.subr.bf16.mxu1 %v1505_v25  ;;  %v1559_v7 = vld [vmem:[%s1979_s0 + $0xe0] ss:$36 sps:$4 sm:$0xff]   ;;  %v1563_v11 = vld [vmem:[%s1978_s1 + $0x1b0] sm:$0xff]   ;;  %v1565_v13 = vld [vmem:[%s1978_s1 + $0x1f8] sm:$0xff]  }
  0x1b   :  { %v1566_v14 = vld [vmem:[%s1978_s1 + $0x138] sm:$0xff]   ;;  %v1568_v16 = vld [vmem:[%s1979_s0 + $0x10] ss:$36 sps:$4 sm:$0xff]   ;;  %v1574_v20 = vld [vmem:[%s1978_s1 + $0x200] sm:$0xff]  }
  0x1c   :  { %1281 = vmatpush3.bf16.msra.mxu0 %v1506_v26  ;;  %v1567_v15 = vld [vmem:[%s1978_s1 + $0x1b8] sm:$0xff]   ;;  %v1575_v21 = vld [vmem:[%s1978_s1 + $0x208] sm:$0xff]   ;;  %v1581_v25 = vld [vmem:[%s1979_s0 + $0x60] ss:$36 sps:$4 sm:$0xff]  }
  0x1d   :  { %1321 = vmatpush3.bf16.msra.mxu1 %v1507_v27  ;;  %1282 = vmatprep.subr.bf16.mxu0 %v1508_v28  ;;  %v1570_v17 = vld [vmem:[%s1979_s0 + $0x14] ss:$36 sps:$4 sm:$0xff]   ;;  %v1573_v19 = vld [vmem:[%s1979_s0 + $0x1c] ss:$36 sps:$4 sm:$0xff]   ;;  %v1578_v23 = vld [vmem:[%s1979_s0 + $0x64] ss:$36 sps:$4 sm:$0xff]  }
  0x1e   :  { %1322 = vmatprep.subr.bf16.mxu1 %v1509_v29  ;;  %v1571_v18 = vld [vmem:[%s1979_s0 + $0x18] ss:$36 sps:$4 sm:$0xff]   ;;  %v1582_v26 = vld [vmem:[%s1978_s1 + $0x210] sm:$0xff]   ;;  %v1584_v27 = vld [vmem:[%s1979_s0 + $0xa4] ss:$36 sps:$4 sm:$0xff]  }
  0x1f   :  { %v1576_v22 = vld [vmem:[%s1979_s0 + $0x5c] ss:$36 sps:$4 sm:$0xff]   ;;  %v1586_v28 = vld [vmem:[%s1979_s0 + $0xac] ss:$36 sps:$4 sm:$0xff]  }
  0x20   :  { %1283 = vmatpush3.bf16.msra.mxu0 %v1510_v30  ;;  %v1580_v24 = vld [vmem:[%s1979_s0 + $0x58] ss:$36 sps:$4 sm:$0xff]   ;;  %v1588_v30 = vld [vmem:[%s1979_s0 + $0xa0] ss:$36 sps:$4 sm:$0xff]   ;;  %v1592_v33 = vld [vmem:[%s1979_s0 + $0xec] ss:$36 sps:$4 sm:$0xff]  }
  0x21   :  { %1323 = vmatpush3.bf16.msra.mxu1 %v1511_v31  ;;  %1348 = vmatprep.subr.bf16.mxu0 %v1518_v36  ;;  %v1583_v29 = vld [vmem:[%s1978_s1 + $0x218] sm:$0xff]   ;;  %v1589_v31 = vld [vmem:[%s1979_s0 + $0xa8] ss:$36 sps:$4 sm:$0xff]  }
  0x22   :  { %1388 = vmatprep.subr.bf16.mxu1 %v1519_v37  ;;  %v1591_v35 = vld [vmem:[%s1978_s1 + $0x228] sm:$0xff]   ;;  %v1598_v37 = vld [vmem:[%s1978_s1 + $0x230] sm:$0xff]  }
  0x23   :  { %855 = vmatmul.mubr.bf16.vlgmr.msra.gmra.mrb[0].mxu0 %v1512_v32  ;;  %v1590_v32 = vld [vmem:[%s1978_s1 + $0x220] sm:$0xff]   ;;  %v1596_v36 = vld [vmem:[%s1979_s0 + $0xe8] ss:$36 sps:$4 sm:$0xff]  }
  0x24   :  { %920 = vmatmul.mubr.bf16.vlgmr.msra.gmra.mrb[0].mxu1 %v1515_v34  ;;  %1349 = vmatpush3.bf16.msra.mxu0 %v1520_v38  ;;  %v1594_v34 = vld [vmem:[%s1979_s0 + $0xf4] ss:$36 sps:$4 sm:$0xff]  }
  0x25   :  { %1389 = vmatpush3.bf16.msra.mxu1 %v1521_v39  ;;  %1350 = vmatprep.subr.bf16.mxu0 %v1522_v40  ;;  %v1597_v38 = vld [vmem:[%s1979_s0 + $0xf0] ss:$36 sps:$4 sm:$0xff]   ;;  %v1600_v39 = vld [vmem:[%s1979_s0 + $0x20] ss:$36 sps:$4 sm:$0xff]  }
  0x26   :  { %1390 = vmatprep.subr.bf16.mxu1 %v1523_v41  ;;  %862 = vmatprep.mubr.bf16.mxu0 %v1526_v44  ;;  %v1601_v40 = vld [vmem:[%s1979_s0 + $0xb0] ss:$36 sps:$4 sm:$0xff]   ;;  %v1599_v41 = vld [vmem:[%s1978_s1 + $0x238] sm:$0xff]  }
  0x27   :  { %927 = vmatprep.mubr.bf16.mxu1 %v1528_v45 }
  0x28   :  { %1351 = vmatpush3.bf16.msra.mxu0 %v1524_v42  ;;  %v1602_v42 = vld [vmem:[%s1979_s0 + $0x68] ss:$36 sps:$4 sm:$0xff]  }
  0x29   :  { %1391 = vmatpush3.bf16.msra.mxu1 %v1525_v43  ;;  %1352 = vmatprep.subr.bf16.mxu0 %v1532_v48  ;;  %v1603_v43 = vld [vmem:[%s1979_s0 + $0xf8] ss:$36 sps:$4 sm:$0xff]  }
  0x2a   :  { %1392 = vmatprep.subr.bf16.mxu1 %v1533_v49 }
  0x2b   :  { %863 = vmatmul.mubr.bf16.gmra.mrb[4].mxu0 %v1530_v46  ;;  %v1159_v46 = vld [vmem:[%s1980_s2] ss:$0 sm:$0xff] }
  0x2c   :  { %928 = vmatmul.mubr.bf16.gmra.mrb[4].mxu1 %v1531_v47  ;;  %1353 = vmatpush3.bf16.msra.mxu0 %v1534_v50 }
  0x2d   :  { %1393 = vmatpush3.bf16.msra.mxu1 %v1535_v51  ;;  %1354 = vmatprep.subr.bf16.mxu0 %v1536_v52 }
  0x2e   :  { %1394 = vmatprep.subr.bf16.mxu1 %v1537_v53  ;;  %870 = vmatprep.mubr.bf16.mxu0 %v1540_v56 }
  0x2f   :  { %935 = vmatprep.mubr.bf16.mxu1 %v1542_v57 }
  0x30   :  { %1355 = vmatpush3.bf16.msra.mxu0 %v1538_v54 }
  0x31   :  { %1395 = vmatpush3.bf16.msra.mxu1 %v1539_v55  ;;  %1356 = vmatprep.subr.bf16.mxu0 %v1546_v60 }
  0x32   :  { %1396 = vmatprep.subr.bf16.mxu1 %v1547_v61 }
  0x33   :  { %871 = vmatmul.mubr.bf16.gmra.mrb[8].mxu0 %v1544_v58 }
  0x34   :  { %936 = vmatmul.mubr.bf16.gmra.mrb[8].mxu1 %v1545_v59  ;;  %1357 = vmatpush3.bf16.msra.mxu0 %v1548_v62 }
  0x35   :  { %1397 = vmatpush3.bf16.msra.mxu1 %v1549_v63  ;;  %1358 = vmatprep.subr.bf16.mxu0 %v1550_v0 }
  0x36   :  { %1398 = vmatprep.subr.bf16.mxu1 %v1551_v1  ;;  %878 = vmatprep.mubr.bf16.mxu0 %v1554_v4 }
  0x37   :  { %943 = vmatprep.mubr.bf16.mxu1 %v1556_v5 }
  0x38   :  { %1359 = vmatpush3.bf16.msra.mxu0 %v1552_v2 }
  0x39   :  { %1399 = vmatpush3.bf16.msra.mxu1 %v1553_v3  ;;  %1360 = vmatprep.subr.bf16.mxu0 %v1560_v8 }
  0x3a   :  { %1400 = vmatprep.subr.bf16.mxu1 %v1561_v9 }
  0x3b   :  { %879 = vmatmul.mubr.bf16.gmra.mrb[12].mxu0 %v1558_v6 }
  0x3c   :  { %944 = vmatmul.mubr.bf16.gmra.mrb[12].mxu1 %v1559_v7  ;;  %1361 = vmatpush3.bf16.msra.mxu0 %v1562_v10 }
  0x3d   :  { %1401 = vmatpush3.bf16.msra.mxu1 %v1563_v11  ;;  %1362 = vmatprep.subr.bf16.mxu0 %v1564_v12 }
  0x3e   :  { %1402 = vmatprep.subr.bf16.mxu1 %v1565_v13  ;;  %984 = vmatprep.mubr.bf16.mxu0 %v1570_v17 }
  0x3f   :  { %1049 = vmatprep.mubr.bf16.mxu1 %v1573_v19 }
  0x40   :  { %1363 = vmatpush3.bf16.msra.mxu0 %v1566_v14 }
  0x41   :  { %1403 = vmatpush3.bf16.msra.mxu1 %v1567_v15  ;;  %1440 = vmatprep.subr.bf16.mxu0 %v1574_v20 }
  0x42   :  { %1464 = vmatprep.subr.bf16.mxu1 %v1574_v20 }
  0x43   :  { %985 = vmatmul.mubr.bf16.vlgmr.msra.gmra.mrb[16].mxu0 %v1568_v16 }
  0x44   :  { %1050 = vmatmul.mubr.bf16.vlgmr.msra.gmra.mrb[16].mxu1 %v1571_v18  ;;  %1441 = vmatpush3.bf16.msra.mxu0 %v1574_v20 }
  0x45   :  { %1472 = vmatpush3.bf16.msra.mxu1 %v1574_v20  ;;  %1442 = vmatprep.subr.bf16.mxu0 %v1575_v21 }
  0x46   :  { %1465 = vmatprep.subr.bf16.mxu1 %v1575_v21  ;;  %992 = vmatprep.mubr.bf16.mxu0 %v1576_v22 }
  0x47   :  { %1057 = vmatprep.mubr.bf16.mxu1 %v1578_v23 }
  0x48   :  { %1443 = vmatpush3.bf16.msra.mxu0 %v1575_v21 }
  0x49   :  { %1473 = vmatpush3.bf16.msra.mxu1 %v1575_v21  ;;  %1444 = vmatprep.subr.bf16.mxu0 %v1582_v26 }
  0x4a   :  { %1466 = vmatprep.subr.bf16.mxu1 %v1582_v26 }
  0x4b   :  { %993 = vmatmul.mubr.bf16.gmra.mrb[20].mxu0 %v1580_v24 }
  0x4c   :  { %1058 = vmatmul.mubr.bf16.gmra.mrb[20].mxu1 %v1581_v25  ;;  %1000 = vmatprep.mubr.bf16.mxu0 %v1584_v27 }
  0x4d   :  { %1445 = vmatpush3.bf16.msra.mxu0 %v1582_v26  ;;  %1065 = vmatprep.mubr.bf16.mxu1 %v1586_v28 }
  0x4e   :  { %1474 = vmatpush3.bf16.msra.mxu1 %v1582_v26  ;;  %1446 = vmatprep.subr.bf16.mxu0 %v1583_v29 }
  0x4f   :  { %1467 = vmatprep.subr.bf16.mxu1 %v1583_v29 }
  0x51   :  { %1447 = vmatpush3.bf16.msra.mxu0 %v1583_v29 }
  0x52   :  { %1475 = vmatpush3.bf16.msra.mxu1 %v1583_v29  ;;  %1448 = vmatprep.subr.bf16.mxu0 %v1590_v32 }
  0x53   :  { %1001 = vmatmul.mubr.bf16.gmra.mrb[24].mxu0 %v1588_v30  ;;  %1468 = vmatprep.subr.bf16.mxu1 %v1590_v32 }
  0x54   :  { %1066 = vmatmul.mubr.bf16.gmra.mrb[24].mxu1 %v1589_v31  ;;  %1008 = vmatprep.mubr.bf16.mxu0 %v1592_v33 }
  0x55   :  { %1449 = vmatpush3.bf16.msra.mxu0 %v1590_v32  ;;  %1073 = vmatprep.mubr.bf16.mxu1 %v1594_v34 }
  0x56   :  { %1476 = vmatpush3.bf16.msra.mxu1 %v1590_v32  ;;  %1450 = vmatprep.subr.bf16.mxu0 %v1591_v35 }
  0x57   :  { %1469 = vmatprep.subr.bf16.mxu1 %v1591_v35 }
  0x59   :  { %1451 = vmatpush3.bf16.msra.mxu0 %v1591_v35 }
  0x5a   :  { %1477 = vmatpush3.bf16.msra.mxu1 %v1591_v35  ;;  %1452 = vmatprep.subr.bf16.mxu0 %v1598_v37 }
  0x5b   :  { %1009 = vmatmul.mubr.bf16.gmra.mrb[28].mxu0 %v1596_v36  ;;  %1470 = vmatprep.subr.bf16.mxu1 %v1598_v37 }
  0x5c   :  { %1074 = vmatmul.mubr.bf16.gmra.mrb[28].mxu1 %v1597_v38  ;;  %1456 = vmatprep.mubr.bf16.mxu0 %v1600_v39 }
  0x5d   :  { %1453 = vmatpush3.bf16.msra.mxu0 %v1598_v37  ;;  %1460 = vmatprep.mubr.bf16.mxu1 %v1601_v40 }
  0x5e   :  { %1478 = vmatpush3.bf16.msra.mxu1 %v1598_v37  ;;  %1454 = vmatprep.subr.bf16.mxu0 %v1599_v41 }
  0x5f   :  { %1471 = vmatprep.subr.bf16.mxu1 %v1599_v41 }
  0x61   :  { %1455 = vmatpush3.bf16.msra.mxu0 %v1599_v41 }
  0x62   :  { %1479 = vmatpush3.bf16.msra.mxu1 %v1599_v41 }
  0x64   :  { %1457 = vmatmul.mubr.bf16.vlgmr.msra.gmra.mrb[32].mxu0 %v1602_v42 }
  0x65   :  { %1461 = vmatmul.mubr.bf16.vlgmr.msra.gmra.mrb[32].mxu1 %v1603_v43 }
  0xf6   :  { %v1284_v44 = vpop.f32.mrb[0].mxu0 }
  0xf7   :  { %v1324_v45 = vpop.f32.mrb[0].mxu1  ;;  %v1285_v47 = vpop.f32.mrb[1].mxu0 }
  0xf8   :  { %v1286_v48 = vadd.f32 %v1285_v47, %v1284_v44  ;;  %v1325_v49 = vpop.f32.mrb[1].mxu1  ;;  %v1287_v50 = vpop.f32.mrb[2].mxu0 }
  0xf9   :  { %v1326_v51 = vadd.f32 %v1325_v49, %v1324_v45  ;;  %v1327_v52 = vpop.f32.mrb[2].mxu1  ;;  %v1288_v53 = vpop.f32.mrb[3].mxu0 }
  0xfa   :  { %v857_v54 = vadd.f32 %v1286_v48, %v1159_v46  ;;  %v1289_v55 = vadd.f32 %v1288_v53, %v1287_v50  ;;  %v1328_v56 = vpop.f32.mrb[3].mxu1 }
  0xfb   :  { %v1329_v57 = vadd.f32 %v1328_v56, %v1327_v52 }
  0xfc   :  { %v922_v58 = vadd.f32 %v1326_v51, %v857_v54  ;;  %v860_v59 = vadd.f32 %v1289_v55, %v1159_v46 }
  0xfe   :  { %v925_v60 = vadd.f32 %v1329_v57, %v860_v59  ;;  %v1290_v61 = vpop.f32.mrb[4].mxu0 }
  0xff   :  { %v1330_v62 = vpop.f32.mrb[4].mxu1  ;;  %v1291_v63 = vpop.f32.mrb[5].mxu0 }
 0x100   :  { %v1292_v0 = vadd.f32 %v1291_v63, %v1290_v61  ;;  %v1331_v1 = vpop.f32.mrb[5].mxu1  ;;  %v1293_v2 = vpop.f32.mrb[6].mxu0 }
 0x101   :  { %v1332_v3 = vadd.f32 %v1331_v1, %v1330_v62  ;;  %v1333_v4 = vpop.f32.mrb[6].mxu1  ;;  %v1294_v5 = vpop.f32.mrb[7].mxu0 }
 0x102   :  { %v865_v6 = vadd.f32 %v1292_v0, %v1159_v46  ;;  %v1295_v7 = vadd.f32 %v1294_v5, %v1293_v2  ;;  %v1334_v8 = vpop.f32.mrb[7].mxu1 }
 0x103   :  { %v1335_v9 = vadd.f32 %v1334_v8, %v1333_v4 }
 0x104   :  { %v930_v10 = vadd.f32 %v1332_v3, %v865_v6  ;;  %v868_v11 = vadd.f32 %v1295_v7, %v1159_v46 }
 0x106   :  { %v933_v12 = vadd.f32 %v1335_v9, %v868_v11  ;;  %v1296_v13 = vpop.f32.mrb[8].mxu0 }
 0x107   :  { %v1336_v14 = vpop.f32.mrb[8].mxu1  ;;  %v1297_v15 = vpop.f32.mrb[9].mxu0 }
 0x108   :  { %v1298_v16 = vadd.f32 %v1297_v15, %v1296_v13  ;;  %v1337_v17 = vpop.f32.mrb[9].mxu1  ;;  %v1299_v18 = vpop.f32.mrb[10].mxu0 }
 0x109   :  { %v1338_v19 = vadd.f32 %v1337_v17, %v1336_v14  ;;  %v1339_v20 = vpop.f32.mrb[10].mxu1  ;;  %v1300_v21 = vpop.f32.mrb[11].mxu0 }
 0x10a   :  { %v873_v22 = vadd.f32 %v1298_v16, %v1159_v46  ;;  %v1301_v23 = vadd.f32 %v1300_v21, %v1299_v18  ;;  %v1340_v24 = vpop.f32.mrb[11].mxu1 }
 0x10b   :  { %v1341_v25 = vadd.f32 %v1340_v24, %v1339_v20 }
 0x10c   :  { %v938_v26 = vadd.f32 %v1338_v19, %v873_v22  ;;  %v876_v27 = vadd.f32 %v1301_v23, %v1159_v46 }
 0x10e   :  { %v941_v28 = vadd.f32 %v1341_v25, %v876_v27  ;;  %v1302_v29 = vpop.f32.mrb[12].mxu0 }
 0x10f   :  { %v1342_v30 = vpop.f32.mrb[12].mxu1  ;;  %v1303_v31 = vpop.f32.mrb[13].mxu0 }
 0x110   :  { %v1343_v32 = vpop.f32.mrb[13].mxu1  ;;  %v1304_v33 = vadd.f32 %v1303_v31, %v1302_v29  ;;  %v1305_v35 = vpop.f32.mrb[14].mxu0 }
 0x111   :  { %v1344_v34 = vadd.f32 %v1343_v32, %v1342_v30  ;;  %v1345_v36 = vpop.f32.mrb[14].mxu1  ;;  %v1306_v37 = vpop.f32.mrb[15].mxu0 }
 0x112   :  { %v1346_v38 = vpop.f32.mrb[15].mxu1  ;;  %v881_v39 = vadd.f32 %v1304_v33, %v1159_v46  ;;  %v1307_v40 = vadd.f32 %v1306_v37, %v1305_v35 }
 0x113   :  { %v1347_v41 = vadd.f32 %v1346_v38, %v1345_v36 }
 0x114   :  { %v946_v42 = vadd.f32 %v1344_v34, %v881_v39  ;;  %v884_v43 = vadd.f32 %v1307_v40, %v1159_v46 }
 0x116   :  { %v949_v44 = vadd.f32 %v1347_v41, %v884_v43  ;;  %v1364_v45 = vpop.f32.mrb[16].mxu0 }
 0x117   :  { %v1365_v47 = vpop.f32.mrb[17].mxu0  ;;  %v1404_v48 = vpop.f32.mrb[16].mxu1 }
 0x118   :  { %v1366_v49 = vadd.f32 %v1365_v47, %v1364_v45  ;;  %v1367_v50 = vpop.f32.mrb[18].mxu0  ;;  %v1405_v51 = vpop.f32.mrb[17].mxu1 }
 0x119   :  { %v1368_v52 = vpop.f32.mrb[19].mxu0  ;;  %v1406_v54 = vadd.f32 %v1405_v51, %v1404_v48  ;;  %v1407_v55 = vpop.f32.mrb[18].mxu1 }
 0x11a   :  { %v987_v53 = vadd.f32 %v1366_v49, %v922_v58  ;;  %v1369_v56 = vadd.f32 %v1368_v52, %v1367_v50  ;;  %v1408_v57 = vpop.f32.mrb[19].mxu1 }
 0x11b   :  { %v1409_v61 = vadd.f32 %v1408_v57, %v1407_v55 }
 0x11c   :  { %v990_v59 = vadd.f32 %v1369_v56, %v925_v60  ;;  %v1052_v62 = vadd.f32 %v1406_v54, %v987_v53 }
 0x11e   :  { %v1370_v63 = vpop.f32.mrb[20].mxu0  ;;  %v1951_v0 = vadd.f32 %v1409_v61, %v990_v59 }
 0x11f   :  { %v1371_v46 = vpop.f32.mrb[21].mxu0  ;;  %v1410_v1 = vpop.f32.mrb[20].mxu1 }
 0x120   :  { %v1372_v2 = vadd.f32 %v1371_v46, %v1370_v63  ;;  %v1373_v3 = vpop.f32.mrb[22].mxu0  ;;  %v1411_v4 = vpop.f32.mrb[21].mxu1 }
 0x121   :  { %v1374_v5 = vpop.f32.mrb[23].mxu0  ;;  %v1412_v7 = vadd.f32 %v1411_v4, %v1410_v1  ;;  %v1413_v8 = vpop.f32.mrb[22].mxu1 }
 0x122   :  { %v995_v6 = vadd.f32 %v1372_v2, %v930_v10  ;;  %v1375_v58 = vadd.f32 %v1374_v5, %v1373_v3  ;;  %v1414_v9 = vpop.f32.mrb[23].mxu1 }
 0x123   :  { %v1415_v13 = vadd.f32 %v1414_v9, %v1413_v8 }
 0x124   :  { %v998_v11 = vadd.f32 %v1375_v58, %v933_v12  ;;  %v1060_v14 = vadd.f32 %v1412_v7, %v995_v6 }
 0x126   :  { %v1376_v60 = vpop.f32.mrb[24].mxu0  ;;  %v1063_v15 = vadd.f32 %v1415_v13, %v998_v11 }
 0x127   :  { %v1377_v16 = vpop.f32.mrb[25].mxu0  ;;  %v1416_v17 = vpop.f32.mrb[24].mxu1 }
 0x128   :  { %v1378_v18 = vadd.f32 %v1377_v16, %v1376_v60  ;;  %v1379_v19 = vpop.f32.mrb[26].mxu0  ;;  %v1417_v20 = vpop.f32.mrb[25].mxu1 }
 0x129   :  { %v1380_v21 = vpop.f32.mrb[27].mxu0  ;;  %v1418_v23 = vadd.f32 %v1417_v20, %v1416_v17  ;;  %v1419_v24 = vpop.f32.mrb[26].mxu1 }
 0x12a   :  { %v1003_v22 = vadd.f32 %v1378_v18, %v938_v26  ;;  %v1381_v25 = vadd.f32 %v1380_v21, %v1379_v19  ;;  %v1420_v10 = vpop.f32.mrb[27].mxu1 }
 0x12b   :  { %v1421_v29 = vadd.f32 %v1420_v10, %v1419_v24 }
 0x12c   :  { %v1006_v27 = vadd.f32 %v1381_v25, %v941_v28  ;;  %v1068_v30 = vadd.f32 %v1418_v23, %v1003_v22 }
 0x12e   :  { %v1382_v31 = vpop.f32.mrb[28].mxu0  ;;  %v1071_v12 = vadd.f32 %v1421_v29, %v1006_v27 }
 0x12f   :  { %v1383_v32 = vpop.f32.mrb[29].mxu0  ;;  %v1422_v33 = vpop.f32.mrb[28].mxu1 }
 0x130   :  { %v1384_v34 = vadd.f32 %v1383_v32, %v1382_v31  ;;  %v1385_v35 = vpop.f32.mrb[30].mxu0  ;;  %v1423_v36 = vpop.f32.mrb[29].mxu1 }
 0x131   :  { %v1386_v37 = vpop.f32.mrb[31].mxu0  ;;  %v1424_v39 = vadd.f32 %v1423_v36, %v1422_v33  ;;  %v1425_v40 = vpop.f32.mrb[30].mxu1 }
 0x132   :  { %v1011_v38 = vadd.f32 %v1384_v34, %v946_v42  ;;  %v1387_v41 = vadd.f32 %v1386_v37, %v1385_v35  ;;  %v1426_v26 = vpop.f32.mrb[31].mxu1 }
 0x133   :  { %v1427_v45 = vadd.f32 %v1426_v26, %v1425_v40 }
 0x134   :  { %v1014_v43 = vadd.f32 %v1387_v41, %v949_v44  ;;  %v1076_v47 = vadd.f32 %v1424_v39, %v1011_v38 }
 0x136   :  { %v1079_v48 = vadd.f32 %v1427_v45, %v1014_v43 }
 0x137   :  { %v1458_v28 = vpop.f32.mrb[32].mxu0 }
 0x138   :  { %v1125_v49 = vadd.f32 %v1458_v28, %v1060_v14  ;;  %v1462_v50 = vpop.f32.mrb[32].mxu1  ;;  %v1116_v51 = vpop.f32.mrb[33].mxu0 }
 0x139   :  { %v1141_v52 = vadd.f32 %v1462_v50, %v1076_v47  ;;  %v1117_v53 = vadd.f32 %v1116_v51, %v1052_v62  ;;  %v1132_v54 = vpop.f32.mrb[33].mxu1  ;;  %v1459_v55 = vpop.f32.mrb[34].mxu0 }
 0x13a   :  { %1149 = vst [vmem:[%s1981_s3 + $0x10] sm:$0xff] %v1125_v49  ;;  %v1133_v42 = vadd.f32 %v1132_v54, %v1068_v30  ;;  %v1128_v56 = vadd.f32 %v1459_v55, %v1063_v15  ;;  %v1463_v57 = vpop.f32.mrb[34].mxu1  ;;  %v1119_v59 = vpop.f32.mrb[35].mxu0 }
 0x13b   :  { %1153 = vst [vmem:[%s1981_s3 + $0x30] sm:$0xff] %v1141_v52  ;;  %1147 = vst [vmem:[%s1981_s3] sm:$0xff] %v1117_v53  ;;  %v1144_v44 = vadd.f32 %v1463_v57, %v1079_v48  ;;  %v1120_v61 = vadd.f32 %v1119_v59, %v1951_v0  ;;  %v1135_v62 = vpop.f32.mrb[35].mxu1 }
 0x13c   :  { %1151 = vst [vmem:[%s1981_s3 + $0x20] sm:$0xff] %v1133_v42  ;;  %1150 = vst [vmem:[%s1981_s3 + $0x18] sm:$0xff] %v1128_v56  ;;  %v1136_v63 = vadd.f32 %v1135_v62, %v1071_v12 }
 0x13d   :  { %1154 = vst [vmem:[%s1981_s3 + $0x38] sm:$0xff] %v1144_v44  ;;  %1148 = vst [vmem:[%s1981_s3 + $0x8] sm:$0xff] %v1120_v61 }
 0x13e   :  { %1152 = vst [vmem:[%s1981_s3 + $0x28] sm:$0xff] %v1136_v63 }

// kernel: precompute_targets.23
= control target key start
LH: loop header
LB: loop body
LE: loop exit
PB: predicated region body
PF: predicated region fallthrough
CT: control target
= control target key end

     0   :  { %s2068_s1 = inlined_call_operand.vmem [shape: bf16[1152,256], index: 1, kind: input, shape index: {}]   ;;  %s2069_s0 = inlined_call_operand.vmem [shape: bf16[16,1152], index: 0, kind: input, shape index: {}]   ;;  %s2070_s2 = inlined_call_operand.vmem [shape: f32[1,256], index: 2, kind: input, shape index: {}]   ;;  %s2071_s3 = inlined_call_operand.vmem [shape: f32[16,256], index: 3, kind: output, shape index: {}]  }
   0x1   :  { %v1344_v0 = vld [vmem:[%s2068_s1 + $0x4] ss:$8 sps:$4 sm:$0xff]   ;;  %v1348_v2 = vld [vmem:[%s2068_s1] ss:$8 sps:$4 sm:$0xff]   ;;  %v1350_v4 = vld [vmem:[%s2068_s1 + $0x14] ss:$8 sps:$4 sm:$0xff]  }
   0x2   :  { %v1346_v1 = vld [vmem:[%s2068_s1 + $0x204] ss:$8 sps:$4 sm:$0xff]   ;;  %947 = vmatprep.subr.bf16.mxu1 %v1344_v0  ;;  %v1349_v3 = vld [vmem:[%s2068_s1 + $0x200] ss:$8 sps:$4 sm:$0xff]   ;;  %v1352_v5 = vld [vmem:[%s2068_s1 + $0x214] ss:$8 sps:$4 sm:$0xff]  }
   0x3   :  { %1033 = vmatprep.subr.bf16.mxu0 %v1346_v1  ;;  %948 = vmatpush1.bf16.msra.mxu1 %v1348_v2  ;;  %v1354_v6 = vld [vmem:[%s2068_s1 + $0x10] ss:$8 sps:$4 sm:$0xff]   ;;  %v1356_v8 = vld [vmem:[%s2068_s1 + $0x24] ss:$8 sps:$4 sm:$0xff]   ;;  %v1360_v10 = vld [vmem:[%s2068_s1 + $0x20] ss:$8 sps:$4 sm:$0xff]  }
   0x4   :  { %1034 = vmatpush1.bf16.msra.mxu0 %v1349_v3  ;;  %949 = vmatprep.subr.bf16.mxu1 %v1350_v4  ;;  %v1355_v7 = vld [vmem:[%s2068_s1 + $0x210] ss:$8 sps:$4 sm:$0xff]   ;;  %v1358_v9 = vld [vmem:[%s2068_s1 + $0x224] ss:$8 sps:$4 sm:$0xff]   ;;  %v1361_v11 = vld [vmem:[%s2068_s1 + $0x220] ss:$8 sps:$4 sm:$0xff]  }
   0x5   :  { %1035 = vmatprep.subr.bf16.mxu0 %v1352_v5  ;;  %v1362_v12 = vld [vmem:[%s2068_s1 + $0x34] ss:$8 sps:$4 sm:$0xff]   ;;  %v1366_v14 = vld [vmem:[%s2068_s1 + $0x30] ss:$8 sps:$4 sm:$0xff]   ;;  %v1368_v16 = vld [vmem:[%s2068_s1 + $0x44] ss:$8 sps:$4 sm:$0xff]  }
   0x6   :  { %v1364_v13 = vld [vmem:[%s2068_s1 + $0x234] ss:$8 sps:$4 sm:$0xff]   ;;  %v1367_v15 = vld [vmem:[%s2068_s1 + $0x230] ss:$8 sps:$4 sm:$0xff]   ;;  %v1370_v17 = vld [vmem:[%s2068_s1 + $0x244] ss:$8 sps:$4 sm:$0xff]  }
   0x7   :  { %950 = vmatpush1.bf16.msra.mxu1 %v1354_v6  ;;  %v1372_v18 = vld [vmem:[%s2068_s1 + $0x40] ss:$8 sps:$4 sm:$0xff]   ;;  %v1374_v20 = vld [vmem:[%s2068_s1 + $0x54] ss:$8 sps:$4 sm:$0xff]   ;;  %v1378_v22 = vld [vmem:[%s2068_s1 + $0x50] ss:$8 sps:$4 sm:$0xff]  }
   0x8   :  { %1036 = vmatpush1.bf16.msra.mxu0 %v1355_v7  ;;  %951 = vmatprep.subr.bf16.mxu1 %v1356_v8  ;;  %v1373_v19 = vld [vmem:[%s2068_s1 + $0x240] ss:$8 sps:$4 sm:$0xff]   ;;  %v1376_v21 = vld [vmem:[%s2068_s1 + $0x254] ss:$8 sps:$4 sm:$0xff]   ;;  %v1379_v23 = vld [vmem:[%s2068_s1 + $0x250] ss:$8 sps:$4 sm:$0xff]  }
   0x9   :  { %1037 = vmatprep.subr.bf16.mxu0 %v1358_v9  ;;  %v1380_v24 = vld [vmem:[%s2068_s1 + $0x64] ss:$8 sps:$4 sm:$0xff]   ;;  %v1384_v26 = vld [vmem:[%s2068_s1 + $0x60] ss:$8 sps:$4 sm:$0xff]   ;;  %v1386_v28 = vld [vmem:[%s2068_s1 + $0x74] ss:$8 sps:$4 sm:$0xff]  }
   0xa   :  { %v1382_v25 = vld [vmem:[%s2068_s1 + $0x264] ss:$8 sps:$4 sm:$0xff]   ;;  %v1385_v27 = vld [vmem:[%s2068_s1 + $0x260] ss:$8 sps:$4 sm:$0xff]   ;;  %v1388_v29 = vld [vmem:[%s2068_s1 + $0x274] ss:$8 sps:$4 sm:$0xff]  }
   0xb   :  { %952 = vmatpush1.bf16.msra.mxu1 %v1360_v10  ;;  %v1390_v30 = vld [vmem:[%s2068_s1 + $0x70] ss:$8 sps:$4 sm:$0xff]   ;;  %v1392_v32 = vld [vmem:[%s2068_s1 + $0x84] ss:$8 sps:$4 sm:$0xff]   ;;  %v1396_v34 = vld [vmem:[%s2068_s1 + $0x80] ss:$8 sps:$4 sm:$0xff]  }
   0xc   :  { %1038 = vmatpush1.bf16.msra.mxu0 %v1361_v11  ;;  %953 = vmatprep.subr.bf16.mxu1 %v1362_v12  ;;  %v1391_v31 = vld [vmem:[%s2068_s1 + $0x270] ss:$8 sps:$4 sm:$0xff]   ;;  %v1394_v33 = vld [vmem:[%s2068_s1 + $0x284] ss:$8 sps:$4 sm:$0xff]   ;;  %v1397_v35 = vld [vmem:[%s2068_s1 + $0x280] ss:$8 sps:$4 sm:$0xff]  }
   0xd   :  { %1039 = vmatprep.subr.bf16.mxu0 %v1364_v13  ;;  %v1398_v36 = vld [vmem:[%s2068_s1 + $0x94] ss:$8 sps:$4 sm:$0xff]   ;;  %v1402_v38 = vld [vmem:[%s2068_s1 + $0x90] ss:$8 sps:$4 sm:$0xff]   ;;  %v1404_v40 = vld [vmem:[%s2068_s1 + $0xa4] ss:$8 sps:$4 sm:$0xff]  }
   0xe   :  { %v1400_v37 = vld [vmem:[%s2068_s1 + $0x294] ss:$8 sps:$4 sm:$0xff]   ;;  %v1403_v39 = vld [vmem:[%s2068_s1 + $0x290] ss:$8 sps:$4 sm:$0xff]   ;;  %v1406_v41 = vld [vmem:[%s2068_s1 + $0x2a4] ss:$8 sps:$4 sm:$0xff]  }
   0xf   :  { %954 = vmatpush1.bf16.msra.mxu1 %v1366_v14  ;;  %v1408_v42 = vld [vmem:[%s2068_s1 + $0xa0] ss:$8 sps:$4 sm:$0xff]   ;;  %v1410_v44 = vld [vmem:[%s2068_s1 + $0xb4] ss:$8 sps:$4 sm:$0xff]   ;;  %v1414_v46 = vld [vmem:[%s2068_s1 + $0xb0] ss:$8 sps:$4 sm:$0xff]  }
  0x10   :  { %1040 = vmatpush1.bf16.msra.mxu0 %v1367_v15  ;;  %955 = vmatprep.subr.bf16.mxu1 %v1368_v16  ;;  %v1409_v43 = vld [vmem:[%s2068_s1 + $0x2a0] ss:$8 sps:$4 sm:$0xff]   ;;  %v1412_v45 = vld [vmem:[%s2068_s1 + $0x2b4] ss:$8 sps:$4 sm:$0xff]   ;;  %v1415_v47 = vld [vmem:[%s2068_s1 + $0x2b0] ss:$8 sps:$4 sm:$0xff]  }
  0x11   :  { %1041 = vmatprep.subr.bf16.mxu0 %v1370_v17  ;;  %v1442_v48 = vld [vmem:[%s2069_s0 + $0x4] ss:$36 sps:$4 sm:$0xff]   ;;  %v1448_v51 = vld [vmem:[%s2069_s0 + $0x14] ss:$36 sps:$4 sm:$0xff]  }
  0x12   :  { %v1416_v49 = vld [vmem:[%s2068_s1 + $0xc4] ss:$8 sps:$4 sm:$0xff]   ;;  %979 = vmatprep.mubr.bf16.mxu1 %v1442_v48  ;;  %v1420_v52 = vld [vmem:[%s2068_s1 + $0xc0] ss:$8 sps:$4 sm:$0xff]   ;;  %v1422_v54 = vld [vmem:[%s2068_s1 + $0xd4] ss:$8 sps:$4 sm:$0xff]   ;;  %1065 = vmatprep.mubr.bf16.mxu0 %v1448_v51 }
  0x13   :  { %956 = vmatpush1.bf16.msra.mxu1 %v1372_v18  ;;  %v1418_v50 = vld [vmem:[%s2068_s1 + $0x2c4] ss:$8 sps:$4 sm:$0xff]   ;;  %v1421_v53 = vld [vmem:[%s2068_s1 + $0x2c0] ss:$8 sps:$4 sm:$0xff]   ;;  %v1424_v55 = vld [vmem:[%s2068_s1 + $0x2d4] ss:$8 sps:$4 sm:$0xff]  }
  0x14   :  { %1042 = vmatpush1.bf16.msra.mxu0 %v1373_v19  ;;  %957 = vmatprep.subr.bf16.mxu1 %v1374_v20  ;;  %v1426_v56 = vld [vmem:[%s2068_s1 + $0xd0] ss:$8 sps:$4 sm:$0xff]   ;;  %v1428_v58 = vld [vmem:[%s2068_s1 + $0xe4] ss:$8 sps:$4 sm:$0xff]   ;;  %v1432_v60 = vld [vmem:[%s2068_s1 + $0xe0] ss:$8 sps:$4 sm:$0xff]  }
  0x15   :  { %1043 = vmatprep.subr.bf16.mxu0 %v1376_v21  ;;  %v1427_v57 = vld [vmem:[%s2068_s1 + $0x2d0] ss:$8 sps:$4 sm:$0xff]   ;;  %v1430_v59 = vld [vmem:[%s2068_s1 + $0x2e4] ss:$8 sps:$4 sm:$0xff]   ;;  %v1433_v61 = vld [vmem:[%s2068_s1 + $0x2e0] ss:$8 sps:$4 sm:$0xff]  }
  0x16   :  { %v1434_v62 = vld [vmem:[%s2068_s1 + $0xf4] ss:$8 sps:$4 sm:$0xff]   ;;  %v1438_v0 = vld [vmem:[%s2068_s1 + $0xf0] ss:$8 sps:$4 sm:$0xff]   ;;  %v1445_v2 = vld [vmem:[%s2068_s1 + $0x104] ss:$8 sps:$4 sm:$0xff]  }
  0x17   :  { %958 = vmatpush1.bf16.msra.mxu1 %v1378_v22  ;;  %v1436_v63 = vld [vmem:[%s2068_s1 + $0x2f4] ss:$8 sps:$4 sm:$0xff]   ;;  %v1439_v1 = vld [vmem:[%s2068_s1 + $0x2f0] ss:$8 sps:$4 sm:$0xff]   ;;  %v1451_v3 = vld [vmem:[%s2068_s1 + $0x304] ss:$8 sps:$4 sm:$0xff]  }
  0x18   :  { %1044 = vmatpush1.bf16.msra.mxu0 %v1379_v23  ;;  %959 = vmatprep.subr.bf16.mxu1 %v1380_v24  ;;  %v1440_v4 = vld [vmem:[%s2069_s0] ss:$36 sps:$4 sm:$0xff]   ;;  %v1446_v6 = vld [vmem:[%s2069_s0 + $0x10] ss:$36 sps:$4 sm:$0xff]  }
  0x19   :  { %1045 = vmatprep.subr.bf16.mxu0 %v1382_v25  ;;  %v1443_v5 = vld [vmem:[%s2068_s1 + $0x100] ss:$8 sps:$4 sm:$0xff]   ;;  %v1454_v8 = vld [vmem:[%s2068_s1 + $0x114] ss:$8 sps:$4 sm:$0xff]   ;;  %v1452_v10 = vld [vmem:[%s2068_s1 + $0x110] ss:$8 sps:$4 sm:$0xff]  }
  0x1a   :  { %v1449_v7 = vld [vmem:[%s2068_s1 + $0x300] ss:$8 sps:$4 sm:$0xff]   ;;  %v1457_v9 = vld [vmem:[%s2068_s1 + $0x314] ss:$8 sps:$4 sm:$0xff]   ;;  %v1455_v11 = vld [vmem:[%s2068_s1 + $0x310] ss:$8 sps:$4 sm:$0xff]  }
  0x1b   :  { %960 = vmatpush1.bf16.msra.mxu1 %v1384_v26  ;;  %v1460_v12 = vld [vmem:[%s2068_s1 + $0x124] ss:$8 sps:$4 sm:$0xff]   ;;  %v1458_v14 = vld [vmem:[%s2068_s1 + $0x120] ss:$8 sps:$4 sm:$0xff]   ;;  %v1466_v16 = vld [vmem:[%s2068_s1 + $0x134] ss:$8 sps:$4 sm:$0xff]  }
  0x1c   :  { %1046 = vmatpush1.bf16.msra.mxu0 %v1385_v27  ;;  %961 = vmatprep.subr.bf16.mxu1 %v1386_v28  ;;  %v1463_v13 = vld [vmem:[%s2068_s1 + $0x324] ss:$8 sps:$4 sm:$0xff]   ;;  %v1461_v15 = vld [vmem:[%s2068_s1 + $0x320] ss:$8 sps:$4 sm:$0xff]   ;;  %v1469_v17 = vld [vmem:[%s2068_s1 + $0x334] ss:$8 sps:$4 sm:$0xff]  }
  0x1d   :  { %1047 = vmatprep.subr.bf16.mxu0 %v1388_v29  ;;  %v1464_v18 = vld [vmem:[%s2068_s1 + $0x130] ss:$8 sps:$4 sm:$0xff]   ;;  %v1472_v20 = vld [vmem:[%s2068_s1 + $0x144] ss:$8 sps:$4 sm:$0xff]   ;;  %v1470_v22 = vld [vmem:[%s2068_s1 + $0x140] ss:$8 sps:$4 sm:$0xff]  }
  0x1e   :  { %v1467_v19 = vld [vmem:[%s2068_s1 + $0x330] ss:$8 sps:$4 sm:$0xff]   ;;  %v1475_v21 = vld [vmem:[%s2068_s1 + $0x344] ss:$8 sps:$4 sm:$0xff]   ;;  %v1473_v23 = vld [vmem:[%s2068_s1 + $0x340] ss:$8 sps:$4 sm:$0xff]  }
  0x1f   :  { %962 = vmatpush1.bf16.msra.mxu1 %v1390_v30  ;;  %v1478_v24 = vld [vmem:[%s2068_s1 + $0x154] ss:$8 sps:$4 sm:$0xff]   ;;  %v1476_v26 = vld [vmem:[%s2068_s1 + $0x150] ss:$8 sps:$4 sm:$0xff]   ;;  %v1484_v28 = vld [vmem:[%s2068_s1 + $0x164] ss:$8 sps:$4 sm:$0xff]  }
  0x20   :  { %1048 = vmatpush1.bf16.msra.mxu0 %v1391_v31  ;;  %963 = vmatprep.subr.bf16.mxu1 %v1392_v32  ;;  %v1481_v25 = vld [vmem:[%s2068_s1 + $0x354] ss:$8 sps:$4 sm:$0xff]   ;;  %v1479_v27 = vld [vmem:[%s2068_s1 + $0x350] ss:$8 sps:$4 sm:$0xff]   ;;  %v1487_v29 = vld [vmem:[%s2068_s1 + $0x364] ss:$8 sps:$4 sm:$0xff]  }
  0x21   :  { %1049 = vmatprep.subr.bf16.mxu0 %v1394_v33  ;;  %v1482_v30 = vld [vmem:[%s2068_s1 + $0x160] ss:$8 sps:$4 sm:$0xff]   ;;  %v1490_v32 = vld [vmem:[%s2068_s1 + $0x174] ss:$8 sps:$4 sm:$0xff]  }
  0x22   :  { %v1485_v31 = vld [vmem:[%s2068_s1 + $0x360] ss:$8 sps:$4 sm:$0xff]   ;;  %v1493_v33 = vld [vmem:[%s2068_s1 + $0x374] ss:$8 sps:$4 sm:$0xff]  }
  0x23   :  { %964 = vmatpush1.bf16.msra.mxu1 %v1396_v34  ;;  %v1544_v34 = vld [vmem:[%s2069_s0 + $0xc] ss:$36 sps:$4 sm:$0xff]   ;;  %v1506_v48 = vld [vmem:[%s2068_s1 + $0x1a0] ss:$8 sps:$4 sm:$0xff]   ;;  %v1517_v51 = vld [vmem:[%s2068_s1 + $0x3b4] ss:$8 sps:$4 sm:$0xff]  }
  0x24   :  { %1050 = vmatpush1.bf16.msra.mxu0 %v1397_v35  ;;  %965 = vmatprep.subr.bf16.mxu1 %v1398_v36  ;;  %v1547_v35 = vld [vmem:[%s2069_s0 + $0x1c] ss:$36 sps:$4 sm:$0xff]   ;;  %v1488_v36 = vld [vmem:[%s2068_s1 + $0x170] ss:$8 sps:$4 sm:$0xff]  }
  0x25   :  { %1051 = vmatprep.subr.bf16.mxu0 %v1400_v37  ;;  %v1491_v37 = vld [vmem:[%s2068_s1 + $0x370] ss:$8 sps:$4 sm:$0xff]  }
  0x27   :  { %966 = vmatpush1.bf16.msra.mxu1 %v1402_v38  ;;  %v1496_v38 = vld [vmem:[%s2068_s1 + $0x184] ss:$8 sps:$4 sm:$0xff]  }
  0x28   :  { %1052 = vmatpush1.bf16.msra.mxu0 %v1403_v39  ;;  %967 = vmatprep.subr.bf16.mxu1 %v1404_v40  ;;  %v1499_v39 = vld [vmem:[%s2068_s1 + $0x384] ss:$8 sps:$4 sm:$0xff]   ;;  %v1494_v40 = vld [vmem:[%s2068_s1 + $0x180] ss:$8 sps:$4 sm:$0xff]  }
  0x29   :  { %1053 = vmatprep.subr.bf16.mxu0 %v1406_v41  ;;  %v1497_v41 = vld [vmem:[%s2068_s1 + $0x380] ss:$8 sps:$4 sm:$0xff]  }
  0x2b   :  { %968 = vmatpush1.bf16.msra.mxu1 %v1408_v42  ;;  %v1502_v42 = vld [vmem:[%s2068_s1 + $0x194] ss:$8 sps:$4 sm:$0xff]  }
  0x2c   :  { %1054 = vmatpush1.bf16.msra.mxu0 %v1409_v43  ;;  %969 = vmatprep.subr.bf16.mxu1 %v1410_v44  ;;  %v1505_v43 = vld [vmem:[%s2068_s1 + $0x394] ss:$8 sps:$4 sm:$0xff]   ;;  %v1500_v44 = vld [vmem:[%s2068_s1 + $0x190] ss:$8 sps:$4 sm:$0xff]  }
  0x2d   :  { %1055 = vmatprep.subr.bf16.mxu0 %v1412_v45  ;;  %v1503_v45 = vld [vmem:[%s2068_s1 + $0x390] ss:$8 sps:$4 sm:$0xff]  }
  0x2f   :  { %970 = vmatpush1.bf16.msra.mxu1 %v1414_v46  ;;  %v1508_v46 = vld [vmem:[%s2068_s1 + $0x1a4] ss:$8 sps:$4 sm:$0xff]  }
  0x30   :  { %1056 = vmatpush1.bf16.msra.mxu0 %v1415_v47  ;;  %971 = vmatprep.subr.bf16.mxu1 %v1416_v49  ;;  %v1511_v47 = vld [vmem:[%s2068_s1 + $0x3a4] ss:$8 sps:$4 sm:$0xff]   ;;  %v1509_v49 = vld [vmem:[%s2068_s1 + $0x3a0] ss:$8 sps:$4 sm:$0xff]  }
  0x31   :  { %1057 = vmatprep.subr.bf16.mxu0 %v1418_v50  ;;  %v1514_v50 = vld [vmem:[%s2068_s1 + $0x1b4] ss:$8 sps:$4 sm:$0xff]  }
  0x33   :  { %972 = vmatpush1.bf16.msra.mxu1 %v1420_v52  ;;  %v1512_v52 = vld [vmem:[%s2068_s1 + $0x1b0] ss:$8 sps:$4 sm:$0xff]  }
  0x34   :  { %1058 = vmatpush1.bf16.msra.mxu0 %v1421_v53  ;;  %973 = vmatprep.subr.bf16.mxu1 %v1422_v54  ;;  %v1515_v53 = vld [vmem:[%s2068_s1 + $0x3b0] ss:$8 sps:$4 sm:$0xff]   ;;  %v1520_v54 = vld [vmem:[%s2068_s1 + $0x1c4] ss:$8 sps:$4 sm:$0xff]  }
  0x35   :  { %1059 = vmatprep.subr.bf16.mxu0 %v1424_v55  ;;  %v1523_v55 = vld [vmem:[%s2068_s1 + $0x3c4] ss:$8 sps:$4 sm:$0xff]  }
  0x37   :  { %974 = vmatpush1.bf16.msra.mxu1 %v1426_v56  ;;  %v1518_v56 = vld [vmem:[%s2068_s1 + $0x1c0] ss:$8 sps:$4 sm:$0xff]  }
  0x38   :  { %1060 = vmatpush1.bf16.msra.mxu0 %v1427_v57  ;;  %975 = vmatprep.subr.bf16.mxu1 %v1428_v58  ;;  %v1521_v57 = vld [vmem:[%s2068_s1 + $0x3c0] ss:$8 sps:$4 sm:$0xff]   ;;  %v1526_v58 = vld [vmem:[%s2068_s1 + $0x1d4] ss:$8 sps:$4 sm:$0xff]  }
  0x39   :  { %1061 = vmatprep.subr.bf16.mxu0 %v1430_v59  ;;  %v1529_v59 = vld [vmem:[%s2068_s1 + $0x3d4] ss:$8 sps:$4 sm:$0xff]  }
  0x3b   :  { %976 = vmatpush1.bf16.msra.mxu1 %v1432_v60  ;;  %v1524_v60 = vld [vmem:[%s2068_s1 + $0x1d0] ss:$8 sps:$4 sm:$0xff]  }
  0x3c   :  { %1062 = vmatpush1.bf16.msra.mxu0 %v1433_v61  ;;  %977 = vmatprep.subr.bf16.mxu1 %v1434_v62  ;;  %v1527_v61 = vld [vmem:[%s2068_s1 + $0x3d0] ss:$8 sps:$4 sm:$0xff]   ;;  %v1532_v62 = vld [vmem:[%s2068_s1 + $0x1e4] ss:$8 sps:$4 sm:$0xff]  }
  0x3d   :  { %1063 = vmatprep.subr.bf16.mxu0 %v1436_v63  ;;  %v1535_v63 = vld [vmem:[%s2068_s1 + $0x3e4] ss:$8 sps:$4 sm:$0xff]  }
  0x3f   :  { %978 = vmatpush1.bf16.msra.mxu1 %v1438_v0  ;;  %v1530_v0 = vld [vmem:[%s2068_s1 + $0x1e0] ss:$8 sps:$4 sm:$0xff]  }
  0x40   :  { %1064 = vmatpush1.bf16.msra.mxu0 %v1439_v1  ;;  %990 = vmatprep.subr.bf16.mxu1 %v1445_v2  ;;  %v1533_v1 = vld [vmem:[%s2068_s1 + $0x3e0] ss:$8 sps:$4 sm:$0xff]   ;;  %v1538_v2 = vld [vmem:[%s2068_s1 + $0x1f4] ss:$8 sps:$4 sm:$0xff]  }
  0x41   :  { %1076 = vmatprep.subr.bf16.mxu0 %v1451_v3  ;;  %v1541_v3 = vld [vmem:[%s2068_s1 + $0x3f4] ss:$8 sps:$4 sm:$0xff]  }
  0x42   :  { %980 = vmatmul.mubr.bf16.vlgmr.msra.gmra.mrb[0].mxu1 %v1440_v4  ;;  %v1536_v4 = vld [vmem:[%s2068_s1 + $0x1f0] ss:$8 sps:$4 sm:$0xff]  }
  0x43   :  { %1066 = vmatmul.mubr.bf16.vlgmr.msra.gmra.mrb[0].mxu0 %v1446_v6  ;;  %991 = vmatpush1.bf16.msra.mxu1 %v1443_v5  ;;  %v1539_v5 = vld [vmem:[%s2068_s1 + $0x3f0] ss:$8 sps:$4 sm:$0xff]   ;;  %v1550_v6 = vld [vmem:[%s2068_s1 + $0x404] ss:$8 sps:$4 sm:$0xff]  }
  0x44   :  { %1077 = vmatpush1.bf16.msra.mxu0 %v1449_v7  ;;  %992 = vmatprep.subr.bf16.mxu1 %v1454_v8  ;;  %v1542_v7 = vld [vmem:[%s2069_s0 + $0x8] ss:$36 sps:$4 sm:$0xff]   ;;  %v1545_v8 = vld [vmem:[%s2069_s0 + $0x18] ss:$36 sps:$4 sm:$0xff]  }
  0x45   :  { %1078 = vmatprep.subr.bf16.mxu0 %v1457_v9  ;;  %1022 = vmatprep.mubr.bf16.mxu1 %v1544_v34  ;;  %v1548_v9 = vld [vmem:[%s2068_s1 + $0x400] ss:$8 sps:$4 sm:$0xff]  }
  0x46   :  { %1108 = vmatprep.mubr.bf16.mxu0 %v1547_v35 }
  0x47   :  { %993 = vmatpush1.bf16.msra.mxu1 %v1452_v10  ;;  %v1553_v10 = vld [vmem:[%s2068_s1 + $0x414] ss:$8 sps:$4 sm:$0xff]  }
  0x48   :  { %1079 = vmatpush1.bf16.msra.mxu0 %v1455_v11  ;;  %994 = vmatprep.subr.bf16.mxu1 %v1460_v12  ;;  %v1551_v11 = vld [vmem:[%s2068_s1 + $0x410] ss:$8 sps:$4 sm:$0xff]   ;;  %v1573_v12 = vmov 0  }
  0x49   :  { %1080 = vmatprep.subr.bf16.mxu0 %v1463_v13  ;;  %v1556_v13 = vld [vmem:[%s2068_s1 + $0x424] ss:$8 sps:$4 sm:$0xff]  }
  0x4b   :  { %995 = vmatpush1.bf16.msra.mxu1 %v1458_v14  ;;  %v1554_v14 = vld [vmem:[%s2068_s1 + $0x420] ss:$8 sps:$4 sm:$0xff]  }
  0x4c   :  { %1081 = vmatpush1.bf16.msra.mxu0 %v1461_v15  ;;  %996 = vmatprep.subr.bf16.mxu1 %v1466_v16  ;;  %v1559_v15 = vld [vmem:[%s2068_s1 + $0x434] ss:$8 sps:$4 sm:$0xff]   ;;  %v1557_v16 = vld [vmem:[%s2068_s1 + $0x430] ss:$8 sps:$4 sm:$0xff]  }
  0x4d   :  { %1082 = vmatprep.subr.bf16.mxu0 %v1469_v17  ;;  %v1562_v17 = vld [vmem:[%s2068_s1 + $0x444] ss:$8 sps:$4 sm:$0xff]  }
  0x4f   :  { %997 = vmatpush1.bf16.msra.mxu1 %v1464_v18  ;;  %v1560_v18 = vld [vmem:[%s2068_s1 + $0x440] ss:$8 sps:$4 sm:$0xff]  }
  0x50   :  { %1083 = vmatpush1.bf16.msra.mxu0 %v1467_v19  ;;  %998 = vmatprep.subr.bf16.mxu1 %v1472_v20  ;;  %v1565_v19 = vld [vmem:[%s2068_s1 + $0x454] ss:$8 sps:$4 sm:$0xff]   ;;  %v1563_v20 = vld [vmem:[%s2068_s1 + $0x450] ss:$8 sps:$4 sm:$0xff]  }
  0x51   :  { %1084 = vmatprep.subr.bf16.mxu0 %v1475_v21  ;;  %v1568_v21 = vld [vmem:[%s2068_s1 + $0x464] ss:$8 sps:$4 sm:$0xff]  }
  0x53   :  { %999 = vmatpush1.bf16.msra.mxu1 %v1470_v22  ;;  %v1566_v22 = vld [vmem:[%s2068_s1 + $0x460] ss:$8 sps:$4 sm:$0xff]  }
  0x54   :  { %1085 = vmatpush1.bf16.msra.mxu0 %v1473_v23  ;;  %1000 = vmatprep.subr.bf16.mxu1 %v1478_v24  ;;  %v1571_v23 = vld [vmem:[%s2068_s1 + $0x474] ss:$8 sps:$4 sm:$0xff]   ;;  %v1569_v24 = vld [vmem:[%s2068_s1 + $0x470] ss:$8 sps:$4 sm:$0xff]  }
  0x55   :  { %1086 = vmatprep.subr.bf16.mxu0 %v1481_v25  ;;  %v1572_v25 = vld [vmem:[%s2069_s0 + $0x20] ss:$36 sps:$4 sm:$0xff]  }
  0x57   :  { %1001 = vmatpush1.bf16.msra.mxu1 %v1476_v26 }
  0x58   :  { %1087 = vmatpush1.bf16.msra.mxu0 %v1479_v27  ;;  %1002 = vmatprep.subr.bf16.mxu1 %v1484_v28 }
  0x59   :  { %1088 = vmatprep.subr.bf16.mxu0 %v1487_v29 }
  0x5b   :  { %1003 = vmatpush1.bf16.msra.mxu1 %v1482_v30  ;;  %v171_v30 = vlaneseq }
  0x5c   :  { %1089 = vmatpush1.bf16.msra.mxu0 %v1485_v31  ;;  %1004 = vmatprep.subr.bf16.mxu1 %v1490_v32 }
  0x5d   :  { %1090 = vmatprep.subr.bf16.mxu0 %v1493_v33  ;;  %v172_v31 = vshrl.u32 %v171_v30, 7  ;;  %v169_v33 = vld [vmem:[%s2070_s2] sm:$0x3] }
  0x5f   :  { %1005 = vmatpush1.bf16.msra.mxu1 %v1488_v36  ;;  %v173_v32 = vsub.s32 0, %v172_v31  ;;  %v177_v34 = vsub.s32 1, %v172_v31 }
  0x60   :  { %1091 = vmatpush1.bf16.msra.mxu0 %v1491_v37  ;;  %1006 = vmatprep.subr.bf16.mxu1 %v1496_v38 }
  0x61   :  { %1092 = vmatprep.subr.bf16.mxu0 %v1499_v39  ;;  %v174_v35 = vrot.slane %v169_v33, %v173_v32  ;;  %v178_v36 = vrot.slane %v169_v33, %v177_v34 }
  0x63   :  { %1007 = vmatpush1.bf16.msra.mxu1 %v1494_v40 }
  0x64   :  { %1093 = vmatpush1.bf16.msra.mxu0 %v1497_v41  ;;  %1008 = vmatprep.subr.bf16.mxu1 %v1502_v42 }
  0x65   :  { %1094 = vmatprep.subr.bf16.mxu0 %v1505_v43 }
  0x67   :  { %1009 = vmatpush1.bf16.msra.mxu1 %v1500_v44 }
  0x68   :  { %1095 = vmatpush1.bf16.msra.mxu0 %v1503_v45  ;;  %1010 = vmatprep.subr.bf16.mxu1 %v1508_v46 }
  0x69   :  { %1096 = vmatprep.subr.bf16.mxu0 %v1511_v47 }
  0x6b   :  { %1011 = vmatpush1.bf16.msra.mxu1 %v1506_v48 }
  0x6c   :  { %1097 = vmatpush1.bf16.msra.mxu0 %v1509_v49  ;;  %1012 = vmatprep.subr.bf16.mxu1 %v1514_v50 }
  0x6d   :  { %1098 = vmatprep.subr.bf16.mxu0 %v1517_v51 }
  0x6f   :  { %1013 = vmatpush1.bf16.msra.mxu1 %v1512_v52 }
  0x70   :  { %1099 = vmatpush1.bf16.msra.mxu0 %v1515_v53  ;;  %1014 = vmatprep.subr.bf16.mxu1 %v1520_v54 }
  0x71   :  { %1100 = vmatprep.subr.bf16.mxu0 %v1523_v55 }
  0x73   :  { %1015 = vmatpush1.bf16.msra.mxu1 %v1518_v56 }
  0x74   :  { %1101 = vmatpush1.bf16.msra.mxu0 %v1521_v57  ;;  %1016 = vmatprep.subr.bf16.mxu1 %v1526_v58 }
  0x75   :  { %1102 = vmatprep.subr.bf16.mxu0 %v1529_v59 }
  0x77   :  { %1017 = vmatpush1.bf16.msra.mxu1 %v1524_v60 }
  0x78   :  { %1103 = vmatpush1.bf16.msra.mxu0 %v1527_v61  ;;  %1018 = vmatprep.subr.bf16.mxu1 %v1532_v62 }
  0x79   :  { %1104 = vmatprep.subr.bf16.mxu0 %v1535_v63 }
  0x7b   :  { %1019 = vmatpush1.bf16.msra.mxu1 %v1530_v0 }
  0x7c   :  { %1105 = vmatpush1.bf16.msra.mxu0 %v1533_v1  ;;  %1020 = vmatprep.subr.bf16.mxu1 %v1538_v2 }
  0x7d   :  { %1106 = vmatprep.subr.bf16.mxu0 %v1541_v3 }
  0x7f   :  { %1021 = vmatpush1.bf16.msra.mxu1 %v1536_v4 }
  0x80   :  { %1107 = vmatpush1.bf16.msra.mxu0 %v1539_v5 }
  0x81   :  { %1119 = vmatprep.subr.bf16.mxu0 %v1550_v6 }
  0x82   :  { %1023 = vmatmul.mubr.bf16.vlgmr.msra.gmra.mrb[0].mxu1 %v1542_v7 }
  0x83   :  { %1109 = vmatmul.mubr.bf16.vlgmr.msra.gmra.mrb[0].mxu0 %v1545_v8 }
  0x84   :  { %1120 = vmatpush1.bf16.msra.mxu0 %v1548_v9  ;;  %1151 = vmatprep.mubr.bf16.mxu0 %v1573_v12 }
  0x85   :  { %1121 = vmatprep.subr.bf16.mxu0 %v1553_v10 }
  0x88   :  { %1122 = vmatpush1.bf16.msra.mxu0 %v1551_v11 }
  0x89   :  { %1123 = vmatprep.subr.bf16.mxu0 %v1556_v13 }
  0x8c   :  { %1124 = vmatpush1.bf16.msra.mxu0 %v1554_v14 }
  0x8d   :  { %1125 = vmatprep.subr.bf16.mxu0 %v1559_v15 }
  0x90   :  { %1126 = vmatpush1.bf16.msra.mxu0 %v1557_v16 }
  0x91   :  { %1127 = vmatprep.subr.bf16.mxu0 %v1562_v17 }
  0x94   :  { %1128 = vmatpush1.bf16.msra.mxu0 %v1560_v18 }
  0x95   :  { %1129 = vmatprep.subr.bf16.mxu0 %v1565_v19 }
  0x98   :  { %1130 = vmatpush1.bf16.msra.mxu0 %v1563_v20 }
  0x99   :  { %1131 = vmatprep.subr.bf16.mxu0 %v1568_v21 }
  0x9c   :  { %1132 = vmatpush1.bf16.msra.mxu0 %v1566_v22 }
  0x9d   :  { %1133 = vmatprep.subr.bf16.mxu0 %v1571_v23 }
  0xa0   :  { %1134 = vmatpush1.bf16.msra.mxu0 %v1569_v24 }
  0xa3   :  { %1152 = vmatmul.mubr.bf16.vlgmr.msra.gmra.mrb[0].mxu0 %v1572_v25 }
 0x155   :  { %v1024_v26 = vpop.f32.mrb[0].mxu1 }
 0x156   :  { %v1026_v27 = vpop.f32.mrb[1].mxu1  ;;  %v1323_v37 = vadd.f32 %v1024_v26, %v174_v35 }
 0x157   :  { %v1028_v28 = vpop.f32.mrb[2].mxu1  ;;  %v1325_v38 = vadd.f32 %v1026_v27, %v178_v36 }
 0x158   :  { %v1030_v29 = vpop.f32.mrb[3].mxu1  ;;  %v1327_v40 = vadd.f32 %v1028_v28, %v174_v35 }
 0x159   :  { %v1329_v43 = vadd.f32 %v1030_v29, %v178_v36 }
 0x176   :  { %v1153_v39 = vpop.f32.mrb[0].mxu0 }
 0x177   :  { %v1324_v41 = vadd.f32 %v1323_v37, %v1153_v39  ;;  %v1155_v42 = vpop.f32.mrb[1].mxu0 }
 0x178   :  { %v1326_v44 = vadd.f32 %v1325_v38, %v1155_v42  ;;  %v1157_v45 = vpop.f32.mrb[2].mxu0 }
 0x179   :  { %1162 = vst [vmem:[%s2071_s3] sm:$0xff] %v1324_v41  ;;  %v1328_v46 = vadd.f32 %v1327_v40, %v1157_v45  ;;  %v1159_v47 = vpop.f32.mrb[3].mxu0 }
 0x17a   :  { %1163 = vst [vmem:[%s2071_s3 + $0x8] sm:$0xff] %v1326_v44  ;;  %v1330_v48 = vadd.f32 %v1329_v43, %v1159_v47 }
 0x17b   :  { %1164 = vst [vmem:[%s2071_s3 + $0x10] sm:$0xff] %v1328_v46 }
 0x17c   :  { %1165 = vst [vmem:[%s2071_s3 + $0x18] sm:$0xff] %v1330_v48 }

// kernel: precompute_targets.33
= control target key start
LH: loop header
LB: loop body
LE: loop exit
PB: predicated region body
PF: predicated region fallthrough
CT: control target
= control target key end

     0   :  { %s939_s0 = inlined_call_operand.vmem [shape: f32[16,256], index: 0, kind: input, shape index: {}]   ;;  %s940_s1 = inlined_call_operand.hbm [shape: f32[256,256], index: 1, kind: output, shape index: {}]  }
   0x1   :  { %v78_v0 = vld [vmem:[%s939_s0 + $0x8] sm:$0xff]  ;;  %v77_v1 = vld [vmem:[%s939_s0] sm:$0xff]  ;;  %v80_v2 = vld [vmem:[%s939_s0 + $0x18] sm:$0xff] }
   0x2   :  { %113 = vxpose.xlu1.b32.start [1/2] (short) %v78_v0, 128  ;;  %81 = vxpose.xlu0.b32.start [1/2] (short) %v77_v1, 128  ;;  %v79_v3 = vld [vmem:[%s939_s0 + $0x10] sm:$0xff]  ;;  %v803_v4 = vpack.c.bf16 %v80_v2, %v78_v0 }
   0x3   :  { %6 = vsyncpa [#allocation3], 0  ;;  %v805_v5 = vpack.c.bf16 %v79_v3, %v77_v1  ;;  %v837_v6 = vmov 0.0   ;;  %vm145_vm0 = vcmask 130048   ;;  %s838_s0 = smov [#allocation2]  }
   0x4   :  { %306 = vmatprep.mubr.f32.mxu0 %v837_v6  ;;  %402 = vmatprep.mubr.f32.mxu1 %v837_v6  ;;  %s760_s14 = sshll.u32 %s838_s0, 4  ;;  %s761_s14 = int_to_ptr.vmem [resolvable:$true] %s760_s14 }
   0x5   :  { %804 = vmatprep.subr.bf16.mxu0 %v803_v4  ;;  %807 = vmatprep.subr.bf16.mxu1 %v803_v4  ;;  %s813_s15 = scalar_lea.vmem %s761_s14, 8192  ;;  %p818_p1 = scmp.lt.s32.totalorder %s761_s14, %s761_s14 }
   0x6   :  { %806 = vmatpush1.bf16.msra.mxu0 %v805_v5  ;;  %808 = vmatpush1.bf16.msra.mxu1 %v805_v5  ;;  %p814_p0 = scmp.ne.s32.totalorder %s761_s14, %s813_s15  ;;  %p819_p2 = scmp.lt.s32.totalorder %s813_s15, %s813_s15 }
   0x7   :  { %114 = vxpose.xlu1.b32.end [2/2] (short) %v80_v2, 128  ;;  %82 = vxpose.xlu0.b32.end [2/2] (short) %v79_v3, 128 }
   0x8   :  { %p820_p3 = por %p819_p2, %p818_p1 }
   0xa   :  { %p821_p4 = pnand %p820_p3, %p814_p0 }
  0x83   :  { %v129_v7 = vpop.trf.xlu1  ;;  %v97_v8 = vpop.trf.xlu0 }
  0x84   :  { %771 = vmatmul.mubr.msk.f32.vlgmr.msra.gmra.mrb[0].mxu0 %vm145_vm0, %v97_v8  ;;  %787 = vmatmul.mubr.msk.f32.vlgmr.msra.gmra.mrb[0].mxu1 %vm145_vm0, %v129_v7 }
  0x85   :  { %312 = vmatprep.mubr.f32.mxu0 %v837_v6  ;;  %408 = vmatprep.mubr.f32.mxu1 %v837_v6 }
  0x87   :  { %v130_v9 = vpop.trf.xlu1  ;;  %v98_v10 = vpop.trf.xlu0 }
  0x88   :  { %772 = vmatmul.mubr.msk.f32.gmra.mrb[2].mxu0 %vm145_vm0, %v98_v10  ;;  %788 = vmatmul.mubr.msk.f32.gmra.mrb[2].mxu1 %vm145_vm0, %v130_v9 }
  0x89   :  { %318 = vmatprep.mubr.f32.mxu0 %v837_v6  ;;  %414 = vmatprep.mubr.f32.mxu1 %v837_v6 }
  0x8b   :  { %v131_v11 = vpop.trf.xlu1  ;;  %v99_v12 = vpop.trf.xlu0 }
  0x8c   :  { %773 = vmatmul.mubr.msk.f32.gmra.mrb[4].mxu0 %vm145_vm0, %v99_v12  ;;  %789 = vmatmul.mubr.msk.f32.gmra.mrb[4].mxu1 %vm145_vm0, %v131_v11 }
  0x8d   :  { %324 = vmatprep.mubr.f32.mxu0 %v837_v6  ;;  %420 = vmatprep.mubr.f32.mxu1 %v837_v6 }
  0x8f   :  { %v132_v13 = vpop.trf.xlu1  ;;  %v100_v14 = vpop.trf.xlu0 }
  0x90   :  { %774 = vmatmul.mubr.msk.f32.gmra.mrb[6].mxu0 %vm145_vm0, %v100_v14  ;;  %790 = vmatmul.mubr.msk.f32.gmra.mrb[6].mxu1 %vm145_vm0, %v132_v13 }
  0x91   :  { %330 = vmatprep.mubr.f32.mxu0 %v837_v6  ;;  %426 = vmatprep.mubr.f32.mxu1 %v837_v6 }
  0x93   :  { %v133_v15 = vpop.trf.xlu1  ;;  %v101_v16 = vpop.trf.xlu0 }
  0x94   :  { %775 = vmatmul.mubr.msk.f32.gmra.mrb[8].mxu0 %vm145_vm0, %v101_v16  ;;  %791 = vmatmul.mubr.msk.f32.gmra.mrb[8].mxu1 %vm145_vm0, %v133_v15 }
  0x95   :  { %336 = vmatprep.mubr.f32.mxu0 %v837_v6  ;;  %432 = vmatprep.mubr.f32.mxu1 %v837_v6 }
  0x97   :  { %v134_v17 = vpop.trf.xlu1  ;;  %v102_v18 = vpop.trf.xlu0 }
  0x98   :  { %776 = vmatmul.mubr.msk.f32.gmra.mrb[10].mxu0 %vm145_vm0, %v102_v18  ;;  %792 = vmatmul.mubr.msk.f32.gmra.mrb[10].mxu1 %vm145_vm0, %v134_v17 }
  0x99   :  { %342 = vmatprep.mubr.f32.mxu0 %v837_v6  ;;  %438 = vmatprep.mubr.f32.mxu1 %v837_v6 }
  0x9b   :  { %v135_v19 = vpop.trf.xlu1  ;;  %v103_v20 = vpop.trf.xlu0 }
  0x9c   :  { %777 = vmatmul.mubr.msk.f32.gmra.mrb[12].mxu0 %vm145_vm0, %v103_v20  ;;  %793 = vmatmul.mubr.msk.f32.gmra.mrb[12].mxu1 %vm145_vm0, %v135_v19 }
  0x9d   :  { %348 = vmatprep.mubr.f32.mxu0 %v837_v6  ;;  %444 = vmatprep.mubr.f32.mxu1 %v837_v6 }
  0x9f   :  { %v136_v21 = vpop.trf.xlu1  ;;  %v104_v22 = vpop.trf.xlu0 }
  0xa0   :  { %778 = vmatmul.mubr.msk.f32.gmra.mrb[14].mxu0 %vm145_vm0, %v104_v22  ;;  %794 = vmatmul.mubr.msk.f32.gmra.mrb[14].mxu1 %vm145_vm0, %v136_v21 }
  0xa1   :  { %354 = vmatprep.mubr.f32.mxu0 %v837_v6  ;;  %450 = vmatprep.mubr.f32.mxu1 %v837_v6 }
  0xa3   :  { %v137_v23 = vpop.trf.xlu1  ;;  %v105_v24 = vpop.trf.xlu0 }
  0xa4   :  { %779 = vmatmul.mubr.msk.f32.gmra.mrb[16].mxu0 %vm145_vm0, %v105_v24  ;;  %795 = vmatmul.mubr.msk.f32.gmra.mrb[16].mxu1 %vm145_vm0, %v137_v23 }
  0xa5   :  { %360 = vmatprep.mubr.f32.mxu0 %v837_v6  ;;  %456 = vmatprep.mubr.f32.mxu1 %v837_v6 }
  0xa7   :  { %v138_v25 = vpop.trf.xlu1  ;;  %v106_v26 = vpop.trf.xlu0 }
  0xa8   :  { %780 = vmatmul.mubr.msk.f32.gmra.mrb[18].mxu0 %vm145_vm0, %v106_v26  ;;  %796 = vmatmul.mubr.msk.f32.gmra.mrb[18].mxu1 %vm145_vm0, %v138_v25 }
  0xa9   :  { %366 = vmatprep.mubr.f32.mxu0 %v837_v6  ;;  %462 = vmatprep.mubr.f32.mxu1 %v837_v6 }
  0xab   :  { %v139_v27 = vpop.trf.xlu1  ;;  %v107_v28 = vpop.trf.xlu0 }
  0xac   :  { %781 = vmatmul.mubr.msk.f32.gmra.mrb[20].mxu0 %vm145_vm0, %v107_v28  ;;  %797 = vmatmul.mubr.msk.f32.gmra.mrb[20].mxu1 %vm145_vm0, %v139_v27 }
  0xad   :  { %372 = vmatprep.mubr.f32.mxu0 %v837_v6  ;;  %468 = vmatprep.mubr.f32.mxu1 %v837_v6 }
  0xaf   :  { %v140_v29 = vpop.trf.xlu1  ;;  %v108_v30 = vpop.trf.xlu0 }
  0xb0   :  { %782 = vmatmul.mubr.msk.f32.gmra.mrb[22].mxu0 %vm145_vm0, %v108_v30  ;;  %798 = vmatmul.mubr.msk.f32.gmra.mrb[22].mxu1 %vm145_vm0, %v140_v29 }
  0xb1   :  { %378 = vmatprep.mubr.f32.mxu0 %v837_v6  ;;  %474 = vmatprep.mubr.f32.mxu1 %v837_v6 }
  0xb3   :  { %v141_v31 = vpop.trf.xlu1  ;;  %v109_v32 = vpop.trf.xlu0 }
  0xb4   :  { %783 = vmatmul.mubr.msk.f32.gmra.mrb[24].mxu0 %vm145_vm0, %v109_v32  ;;  %799 = vmatmul.mubr.msk.f32.gmra.mrb[24].mxu1 %vm145_vm0, %v141_v31 }
  0xb5   :  { %384 = vmatprep.mubr.f32.mxu0 %v837_v6  ;;  %480 = vmatprep.mubr.f32.mxu1 %v837_v6 }
  0xb7   :  { %v142_v33 = vpop.trf.xlu1  ;;  %v110_v34 = vpop.trf.xlu0 }
  0xb8   :  { %784 = vmatmul.mubr.msk.f32.gmra.mrb[26].mxu0 %vm145_vm0, %v110_v34  ;;  %800 = vmatmul.mubr.msk.f32.gmra.mrb[26].mxu1 %vm145_vm0, %v142_v33 }
  0xb9   :  { %390 = vmatprep.mubr.f32.mxu0 %v837_v6  ;;  %486 = vmatprep.mubr.f32.mxu1 %v837_v6 }
  0xbb   :  { %v143_v35 = vpop.trf.xlu1  ;;  %v111_v36 = vpop.trf.xlu0 }
  0xbc   :  { %785 = vmatmul.mubr.msk.f32.gmra.mrb[28].mxu0 %vm145_vm0, %v111_v36  ;;  %801 = vmatmul.mubr.msk.f32.gmra.mrb[28].mxu1 %vm145_vm0, %v143_v35 }
  0xbd   :  { %396 = vmatprep.mubr.f32.mxu0 %v837_v6  ;;  %492 = vmatprep.mubr.f32.mxu1 %v837_v6 }
  0xbf   :  { %v144_v37 = vpop.trf.xlu1  ;;  %v112_v38 = vpop.trf.xlu0 }
  0xc0   :  { %786 = vmatmul.mubr.msk.f32.gmra.mrb[30].mxu0 %vm145_vm0, %v112_v38  ;;  %802 = vmatmul.mubr.msk.f32.gmra.mrb[30].mxu1 %vm145_vm0, %v144_v37 }
 0x157   :  { %v308_v39 = vpop.f32.mrb[0].mxu0  ;;  %v404_v40 = vpop.f32.mrb[0].mxu1 }
 0x158   :  { %v563_v41 = vmul.f32 0.00024414063, %v308_v39  ;;  %v595_v42 = vmul.f32 0.00024414063, %v404_v40  ;;  %v310_v43 = vpop.f32.mrb[1].mxu0  ;;  %v406_v44 = vpop.f32.mrb[1].mxu1 }
 0x159   :  { %v564_v45 = vmul.f32 0.00024414063, %v310_v43  ;;  %v596_v46 = vmul.f32 0.00024414063, %v406_v44 }
 0x15a   :  { %691 = vst [vmem:[#allocation2] sm:$0xff] %v563_v41  ;;  %723 = vst [vmem:[#allocation2 + $0x100] sm:$0xff] %v595_v42 }
 0x15b   :  { %v314_v47 = vpop.f32.mrb[2].mxu0  ;;  %v410_v48 = vpop.f32.mrb[2].mxu1  ;;  %692 = vst [vmem:[#allocation2 + $0x8] sm:$0xff] %v564_v45  ;;  %724 = vst [vmem:[#allocation2 + $0x108] sm:$0xff] %v596_v46 }
 0x15c   :  { %v565_v49 = vmul.f32 0.00024414063, %v314_v47  ;;  %v597_v50 = vmul.f32 0.00024414063, %v410_v48  ;;  %v316_v51 = vpop.f32.mrb[3].mxu0  ;;  %v412_v52 = vpop.f32.mrb[3].mxu1 }
 0x15d   :  { %v566_v53 = vmul.f32 0.00024414063, %v316_v51  ;;  %v598_v54 = vmul.f32 0.00024414063, %v412_v52 }
 0x15e   :  { %693 = vst [vmem:[#allocation2 + $0x10] sm:$0xff] %v565_v49  ;;  %725 = vst [vmem:[#allocation2 + $0x110] sm:$0xff] %v597_v50 }
 0x15f   :  { %v320_v55 = vpop.f32.mrb[4].mxu0  ;;  %v416_v56 = vpop.f32.mrb[4].mxu1  ;;  %694 = vst [vmem:[#allocation2 + $0x18] sm:$0xff] %v566_v53  ;;  %726 = vst [vmem:[#allocation2 + $0x118] sm:$0xff] %v598_v54 }
 0x160   :  { %v567_v57 = vmul.f32 0.00024414063, %v320_v55  ;;  %v599_v58 = vmul.f32 0.00024414063, %v416_v56  ;;  %v322_v59 = vpop.f32.mrb[5].mxu0  ;;  %v418_v60 = vpop.f32.mrb[5].mxu1 }
 0x161   :  { %v568_v61 = vmul.f32 0.00024414063, %v322_v59  ;;  %v600_v62 = vmul.f32 0.00024414063, %v418_v60 }
 0x162   :  { %695 = vst [vmem:[#allocation2 + $0x20] sm:$0xff] %v567_v57  ;;  %727 = vst [vmem:[#allocation2 + $0x120] sm:$0xff] %v599_v58 }
 0x163   :  { %v326_v63 = vpop.f32.mrb[6].mxu0  ;;  %v422_v0 = vpop.f32.mrb[6].mxu1  ;;  %696 = vst [vmem:[#allocation2 + $0x28] sm:$0xff] %v568_v61  ;;  %728 = vst [vmem:[#allocation2 + $0x128] sm:$0xff] %v600_v62 }
 0x164   :  { %v569_v1 = vmul.f32 0.00024414063, %v326_v63  ;;  %v601_v2 = vmul.f32 0.00024414063, %v422_v0  ;;  %v328_v3 = vpop.f32.mrb[7].mxu0  ;;  %v424_v4 = vpop.f32.mrb[7].mxu1 }
 0x165   :  { %v570_v5 = vmul.f32 0.00024414063, %v328_v3  ;;  %v602_v6 = vmul.f32 0.00024414063, %v424_v4 }
 0x166   :  { %697 = vst [vmem:[#allocation2 + $0x30] sm:$0xff] %v569_v1  ;;  %729 = vst [vmem:[#allocation2 + $0x130] sm:$0xff] %v601_v2 }
 0x167   :  { %v332_v7 = vpop.f32.mrb[8].mxu0  ;;  %v428_v8 = vpop.f32.mrb[8].mxu1  ;;  %698 = vst [vmem:[#allocation2 + $0x38] sm:$0xff] %v570_v5  ;;  %730 = vst [vmem:[#allocation2 + $0x138] sm:$0xff] %v602_v6 }
 0x168   :  { %v571_v9 = vmul.f32 0.00024414063, %v332_v7  ;;  %v603_v10 = vmul.f32 0.00024414063, %v428_v8  ;;  %v334_v11 = vpop.f32.mrb[9].mxu0  ;;  %v430_v12 = vpop.f32.mrb[9].mxu1 }
 0x169   :  { %v572_v13 = vmul.f32 0.00024414063, %v334_v11  ;;  %v604_v14 = vmul.f32 0.00024414063, %v430_v12 }
 0x16a   :  { %699 = vst [vmem:[#allocation2 + $0x40] sm:$0xff] %v571_v9  ;;  %731 = vst [vmem:[#allocation2 + $0x140] sm:$0xff] %v603_v10 }
 0x16b   :  { %v338_v15 = vpop.f32.mrb[10].mxu0  ;;  %v434_v16 = vpop.f32.mrb[10].mxu1  ;;  %700 = vst [vmem:[#allocation2 + $0x48] sm:$0xff] %v572_v13  ;;  %732 = vst [vmem:[#allocation2 + $0x148] sm:$0xff] %v604_v14 }
 0x16c   :  { %v573_v17 = vmul.f32 0.00024414063, %v338_v15  ;;  %v605_v18 = vmul.f32 0.00024414063, %v434_v16  ;;  %v340_v19 = vpop.f32.mrb[11].mxu0  ;;  %v436_v20 = vpop.f32.mrb[11].mxu1 }
 0x16d   :  { %v574_v21 = vmul.f32 0.00024414063, %v340_v19  ;;  %v606_v22 = vmul.f32 0.00024414063, %v436_v20 }
 0x16e   :  { %701 = vst [vmem:[#allocation2 + $0x50] sm:$0xff] %v573_v17  ;;  %733 = vst [vmem:[#allocation2 + $0x150] sm:$0xff] %v605_v18 }
 0x16f   :  { %v344_v23 = vpop.f32.mrb[12].mxu0  ;;  %v440_v24 = vpop.f32.mrb[12].mxu1  ;;  %702 = vst [vmem:[#allocation2 + $0x58] sm:$0xff] %v574_v21  ;;  %734 = vst [vmem:[#allocation2 + $0x158] sm:$0xff] %v606_v22 }
 0x170   :  { %v575_v25 = vmul.f32 0.00024414063, %v344_v23  ;;  %v607_v26 = vmul.f32 0.00024414063, %v440_v24  ;;  %v346_v27 = vpop.f32.mrb[13].mxu0  ;;  %v442_v28 = vpop.f32.mrb[13].mxu1 }
 0x171   :  { %v576_v29 = vmul.f32 0.00024414063, %v346_v27  ;;  %v608_v30 = vmul.f32 0.00024414063, %v442_v28 }
 0x172   :  { %703 = vst [vmem:[#allocation2 + $0x60] sm:$0xff] %v575_v25  ;;  %735 = vst [vmem:[#allocation2 + $0x160] sm:$0xff] %v607_v26 }
 0x173   :  { %v350_v31 = vpop.f32.mrb[14].mxu0  ;;  %v446_v32 = vpop.f32.mrb[14].mxu1  ;;  %704 = vst [vmem:[#allocation2 + $0x68] sm:$0xff] %v576_v29  ;;  %736 = vst [vmem:[#allocation2 + $0x168] sm:$0xff] %v608_v30 }
 0x174   :  { %v577_v33 = vmul.f32 0.00024414063, %v350_v31  ;;  %v609_v34 = vmul.f32 0.00024414063, %v446_v32  ;;  %v352_v35 = vpop.f32.mrb[15].mxu0  ;;  %v448_v36 = vpop.f32.mrb[15].mxu1 }
 0x175   :  { %v578_v37 = vmul.f32 0.00024414063, %v352_v35  ;;  %v610_v38 = vmul.f32 0.00024414063, %v448_v36 }
 0x176   :  { %705 = vst [vmem:[#allocation2 + $0x70] sm:$0xff] %v577_v33  ;;  %737 = vst [vmem:[#allocation2 + $0x170] sm:$0xff] %v609_v34 }
 0x177   :  { %v356_v39 = vpop.f32.mrb[16].mxu0  ;;  %v452_v40 = vpop.f32.mrb[16].mxu1  ;;  %706 = vst [vmem:[#allocation2 + $0x78] sm:$0xff] %v578_v37  ;;  %738 = vst [vmem:[#allocation2 + $0x178] sm:$0xff] %v610_v38 }
 0x178   :  { %v579_v41 = vmul.f32 0.00024414063, %v356_v39  ;;  %v611_v42 = vmul.f32 0.00024414063, %v452_v40  ;;  %v358_v43 = vpop.f32.mrb[17].mxu0  ;;  %v454_v44 = vpop.f32.mrb[17].mxu1 }
 0x179   :  { %v580_v45 = vmul.f32 0.00024414063, %v358_v43  ;;  %v612_v46 = vmul.f32 0.00024414063, %v454_v44 }
 0x17a   :  { %707 = vst [vmem:[#allocation2 + $0x80] sm:$0xff] %v579_v41  ;;  %739 = vst [vmem:[#allocation2 + $0x180] sm:$0xff] %v611_v42 }
 0x17b   :  { %v362_v47 = vpop.f32.mrb[18].mxu0  ;;  %v458_v48 = vpop.f32.mrb[18].mxu1  ;;  %708 = vst [vmem:[#allocation2 + $0x88] sm:$0xff] %v580_v45  ;;  %740 = vst [vmem:[#allocation2 + $0x188] sm:$0xff] %v612_v46 }
 0x17c   :  { %v581_v49 = vmul.f32 0.00024414063, %v362_v47  ;;  %v613_v50 = vmul.f32 0.00024414063, %v458_v48  ;;  %v364_v51 = vpop.f32.mrb[19].mxu0  ;;  %v460_v52 = vpop.f32.mrb[19].mxu1 }
 0x17d   :  { %v582_v53 = vmul.f32 0.00024414063, %v364_v51  ;;  %v614_v54 = vmul.f32 0.00024414063, %v460_v52 }
 0x17e   :  { %709 = vst [vmem:[#allocation2 + $0x90] sm:$0xff] %v581_v49  ;;  %741 = vst [vmem:[#allocation2 + $0x190] sm:$0xff] %v613_v50 }
 0x17f   :  { %v368_v55 = vpop.f32.mrb[20].mxu0  ;;  %v464_v56 = vpop.f32.mrb[20].mxu1  ;;  %710 = vst [vmem:[#allocation2 + $0x98] sm:$0xff] %v582_v53  ;;  %742 = vst [vmem:[#allocation2 + $0x198] sm:$0xff] %v614_v54 }
 0x180   :  { %v583_v57 = vmul.f32 0.00024414063, %v368_v55  ;;  %v615_v58 = vmul.f32 0.00024414063, %v464_v56  ;;  %v370_v59 = vpop.f32.mrb[21].mxu0  ;;  %v466_v60 = vpop.f32.mrb[21].mxu1 }
 0x181   :  { %v584_v61 = vmul.f32 0.00024414063, %v370_v59  ;;  %v616_v62 = vmul.f32 0.00024414063, %v466_v60 }
 0x182   :  { %711 = vst [vmem:[#allocation2 + $0xa0] sm:$0xff] %v583_v57  ;;  %743 = vst [vmem:[#allocation2 + $0x1a0] sm:$0xff] %v615_v58 }
 0x183   :  { %v374_v63 = vpop.f32.mrb[22].mxu0  ;;  %v470_v0 = vpop.f32.mrb[22].mxu1  ;;  %712 = vst [vmem:[#allocation2 + $0xa8] sm:$0xff] %v584_v61  ;;  %744 = vst [vmem:[#allocation2 + $0x1a8] sm:$0xff] %v616_v62 }
 0x184   :  { %v585_v1 = vmul.f32 0.00024414063, %v374_v63  ;;  %v617_v2 = vmul.f32 0.00024414063, %v470_v0  ;;  %v376_v3 = vpop.f32.mrb[23].mxu0  ;;  %v472_v4 = vpop.f32.mrb[23].mxu1 }
 0x185   :  { %v586_v5 = vmul.f32 0.00024414063, %v376_v3  ;;  %v618_v6 = vmul.f32 0.00024414063, %v472_v4 }
 0x186   :  { %713 = vst [vmem:[#allocation2 + $0xb0] sm:$0xff] %v585_v1  ;;  %745 = vst [vmem:[#allocation2 + $0x1b0] sm:$0xff] %v617_v2 }
 0x187   :  { %v380_v7 = vpop.f32.mrb[24].mxu0  ;;  %v476_v8 = vpop.f32.mrb[24].mxu1  ;;  %714 = vst [vmem:[#allocation2 + $0xb8] sm:$0xff] %v586_v5  ;;  %746 = vst [vmem:[#allocation2 + $0x1b8] sm:$0xff] %v618_v6 }
 0x188   :  { %v587_v9 = vmul.f32 0.00024414063, %v380_v7  ;;  %v619_v10 = vmul.f32 0.00024414063, %v476_v8  ;;  %v382_v11 = vpop.f32.mrb[25].mxu0  ;;  %v478_v12 = vpop.f32.mrb[25].mxu1 }
 0x189   :  { %v588_v13 = vmul.f32 0.00024414063, %v382_v11  ;;  %v620_v14 = vmul.f32 0.00024414063, %v478_v12 }
 0x18a   :  { %715 = vst [vmem:[#allocation2 + $0xc0] sm:$0xff] %v587_v9  ;;  %747 = vst [vmem:[#allocation2 + $0x1c0] sm:$0xff] %v619_v10 }
 0x18b   :  { %v386_v15 = vpop.f32.mrb[26].mxu0  ;;  %v482_v16 = vpop.f32.mrb[26].mxu1  ;;  %716 = vst [vmem:[#allocation2 + $0xc8] sm:$0xff] %v588_v13  ;;  %748 = vst [vmem:[#allocation2 + $0x1c8] sm:$0xff] %v620_v14 }
 0x18c   :  { %v589_v17 = vmul.f32 0.00024414063, %v386_v15  ;;  %v621_v18 = vmul.f32 0.00024414063, %v482_v16  ;;  %v388_v19 = vpop.f32.mrb[27].mxu0  ;;  %v484_v20 = vpop.f32.mrb[27].mxu1 }
 0x18d   :  { %v590_v21 = vmul.f32 0.00024414063, %v388_v19  ;;  %v622_v22 = vmul.f32 0.00024414063, %v484_v20 }
 0x18e   :  { %717 = vst [vmem:[#allocation2 + $0xd0] sm:$0xff] %v589_v17  ;;  %749 = vst [vmem:[#allocation2 + $0x1d0] sm:$0xff] %v621_v18 }
 0x18f   :  { %v392_v23 = vpop.f32.mrb[28].mxu0  ;;  %v488_v24 = vpop.f32.mrb[28].mxu1  ;;  %718 = vst [vmem:[#allocation2 + $0xd8] sm:$0xff] %v590_v21  ;;  %750 = vst [vmem:[#allocation2 + $0x1d8] sm:$0xff] %v622_v22 }
 0x190   :  { %v591_v25 = vmul.f32 0.00024414063, %v392_v23  ;;  %v623_v26 = vmul.f32 0.00024414063, %v488_v24  ;;  %v394_v27 = vpop.f32.mrb[29].mxu0  ;;  %v490_v28 = vpop.f32.mrb[29].mxu1 }
 0x191   :  { %v592_v29 = vmul.f32 0.00024414063, %v394_v27  ;;  %v624_v30 = vmul.f32 0.00024414063, %v490_v28 }
 0x192   :  { %719 = vst [vmem:[#allocation2 + $0xe0] sm:$0xff] %v591_v25  ;;  %751 = vst [vmem:[#allocation2 + $0x1e0] sm:$0xff] %v623_v26 }
 0x193   :  { %v398_v31 = vpop.f32.mrb[30].mxu0  ;;  %v494_v32 = vpop.f32.mrb[30].mxu1  ;;  %720 = vst [vmem:[#allocation2 + $0xe8] sm:$0xff] %v592_v29  ;;  %752 = vst [vmem:[#allocation2 + $0x1e8] sm:$0xff] %v624_v30 }
 0x194   :  { %v593_v33 = vmul.f32 0.00024414063, %v398_v31  ;;  %v625_v34 = vmul.f32 0.00024414063, %v494_v32  ;;  %v400_v35 = vpop.f32.mrb[31].mxu0  ;;  %v496_v36 = vpop.f32.mrb[31].mxu1 }
 0x195   :  { %v594_v37 = vmul.f32 0.00024414063, %v400_v35  ;;  %v626_v38 = vmul.f32 0.00024414063, %v496_v36 }
 0x196   :  { %721 = vst [vmem:[#allocation2 + $0xf0] sm:$0xff] %v593_v33  ;;  %753 = vst [vmem:[#allocation2 + $0x1f0] sm:$0xff] %v625_v34 }
 0x197   :  { %722 = vst [vmem:[#allocation2 + $0xf8] sm:$0xff] %v594_v37  ;;  %754 = vst [vmem:[#allocation2 + $0x1f8] sm:$0xff] %v626_v38 }
 0x198   :  { %824 = shalt.err (!%p821_p4)
}
 0x199   :  { %s825_s18 = scalar_lea.hbm %s940_s1, 8192 }
 0x19a   :  { %p826_p5 = scmp.ne.s32.totalorder %s940_s1, %s825_s18  ;;  %p829_p6 = scmp.lt.u32.totalorder %s825_s18, %s940_s1 }
 0x19c   :  { %p831_p7 = pnand %p829_p6, %p826_p5 }
 0x19e   :  { %834 = shalt.err (!%p831_p7)
}
 0x19f   :  { %s839_s23 = smov 256   ;;  %s840_s24 = smov 16  }
 0x1a0   :  { %766 = dma.vmem_to_hbm [thread:$0]  %s761_s14, 8192, %s940_s1, [#allocation3], %s839_s23, %s839_s23, %s840_s24  }
 0x1a1   :  { %835 = dma.done.wait [#allocation3], 8192  }
 0x1a2   :  { %836 = vsyncadd [#allocation3], 4294959104 }
 0x1a3   :  { %770 = vsyncpa [#allocation3], 1 }

// kernel: precompute_targets.32
= control target key start
LH: loop header
LB: loop body
LE: loop exit
PB: predicated region body
PF: predicated region fallthrough
CT: control target
= control target key end

     0   :  { %s540_s0 = inlined_call_operand.vmem [shape: f32[64,128], index: 0, kind: input, shape index: {}]   ;;  %s541_s1 = inlined_call_operand.hbm [shape: f32[128,128], index: 1, kind: output, shape index: {}]  }
   0x1   :  { %v29_v0 = vld [vmem:[%s540_s0] sm:$0xff]  ;;  %v30_v1 = vld [vmem:[%s540_s0 + $0x8] sm:$0xff]  ;;  %v31_v3 = vld [vmem:[%s540_s0 + $0x10] sm:$0xff] }
   0x2   :  { %37 = vxpose.xlu0.b32.start [1/8] (short) %v29_v0, 128  ;;  %v423_v2 = vpack.c.bf16 %v30_v1, %v29_v0  ;;  %v32_v4 = vld [vmem:[%s540_s0 + $0x18] sm:$0xff] }
   0x3   :  { %v427_v5 = vpack.c.bf16 %v32_v4, %v31_v3 }
   0x4   :  { %6 = vsyncpa [#allocation3], 0  ;;  %424 = vmatprep.subr.bf16.mxu0 %v423_v2  ;;  %439 = vmatprep.subr.bf16.mxu1 %v423_v2  ;;  %v33_v6 = vld [vmem:[%s540_s0 + $0x20] sm:$0xff]  ;;  %v34_v7 = vld [vmem:[%s540_s0 + $0x28] sm:$0xff]  ;;  %vm69_vm0 = vcmask 523264  }
   0x5   :  { %426 = vmatpush3.bf16.msra.mxu0 %v423_v2  ;;  %443 = vmatpush3.bf16.msra.mxu1 %v423_v2  ;;  %v431_v8 = vpack.c.bf16 %v34_v7, %v33_v6  ;;  %v35_v9 = vld [vmem:[%s540_s0 + $0x30] sm:$0xff]  ;;  %v36_v10 = vld [vmem:[%s540_s0 + $0x38] sm:$0xff]  ;;  %s475_s0 = smov [#allocation2]  }
   0x6   :  { %38 = vxpose.xlu0.b32.cont [2/8] (short) %v30_v1, 128  ;;  %428 = vmatprep.subr.bf16.mxu0 %v427_v5  ;;  %v435_v11 = vpack.c.bf16 %v36_v10, %v35_v9  ;;  %s332_s22 = sshll.u32 %s475_s0, 4  ;;  %s333_s22 = int_to_ptr.vmem [resolvable:$true] %s332_s22 }
   0x7   :  { %440 = vmatprep.subr.bf16.mxu1 %v427_v5  ;;  %s451_s23 = scalar_lea.vmem %s333_s22, 2048  ;;  %p456_p1 = scmp.lt.s32.totalorder %s333_s22, %s333_s22 }
   0x8   :  { %p452_p0 = scmp.ne.s32.totalorder %s333_s22, %s451_s23  ;;  %p457_p2 = scmp.lt.s32.totalorder %s451_s23, %s451_s23 }
   0x9   :  { %430 = vmatpush3.bf16.msra.mxu0 %v427_v5  ;;  %444 = vmatpush3.bf16.msra.mxu1 %v427_v5 }
   0xa   :  { %39 = vxpose.xlu0.b32.cont [3/8] (short) %v31_v3, 128  ;;  %432 = vmatprep.subr.bf16.mxu0 %v431_v8  ;;  %p458_p3 = por %p457_p2, %p456_p1 }
   0xb   :  { %441 = vmatprep.subr.bf16.mxu1 %v431_v8 }
   0xc   :  { %p459_p4 = pnand %p458_p3, %p452_p0 }
   0xd   :  { %434 = vmatpush3.bf16.msra.mxu0 %v431_v8  ;;  %445 = vmatpush3.bf16.msra.mxu1 %v431_v8 }
   0xe   :  { %40 = vxpose.xlu0.b32.cont [4/8] (short) %v32_v4, 128  ;;  %436 = vmatprep.subr.bf16.mxu0 %v435_v11 }
   0xf   :  { %442 = vmatprep.subr.bf16.mxu1 %v435_v11 }
  0x11   :  { %438 = vmatpush3.bf16.msra.mxu0 %v435_v11  ;;  %446 = vmatpush3.bf16.msra.mxu1 %v435_v11 }
  0x12   :  { %41 = vxpose.xlu0.b32.cont [5/8] (short) %v33_v6, 128 }
  0x16   :  { %42 = vxpose.xlu0.b32.cont [6/8] (short) %v34_v7, 128 }
  0x1a   :  { %43 = vxpose.xlu0.b32.cont [7/8] (short) %v35_v9, 128 }
  0x1e   :  { %44 = vxpose.xlu0.b32.end [8/8] (short) %v36_v10, 128 }
  0x82   :  { %v53_v12 = vpop.trf.xlu0 }
  0x83   :  { %399 = vmatprep.mubr.msk.f32.mxu0 %vm69_vm0, %v53_v12 }
  0x86   :  { %v54_v13 = vpop.trf.xlu0 }
  0x87   :  { %400 = vmatmul.mubr.msk.f32.vlgmr.msra.gmra.mrb[0].mxu0 %vm69_vm0, %v54_v13 }
  0x8a   :  { %v55_v14 = vpop.trf.xlu0 }
  0x8b   :  { %402 = vmatprep.mubr.msk.f32.mxu0 %vm69_vm0, %v55_v14 }
  0x8e   :  { %v56_v15 = vpop.trf.xlu0 }
  0x8f   :  { %403 = vmatmul.mubr.msk.f32.gmra.mrb[2].mxu0 %vm69_vm0, %v56_v15 }
  0x92   :  { %v57_v16 = vpop.trf.xlu0 }
  0x93   :  { %405 = vmatprep.mubr.msk.f32.mxu0 %vm69_vm0, %v57_v16 }
  0x96   :  { %v58_v17 = vpop.trf.xlu0 }
  0x97   :  { %406 = vmatmul.mubr.msk.f32.gmra.mrb[4].mxu0 %vm69_vm0, %v58_v17 }
  0x9a   :  { %v59_v18 = vpop.trf.xlu0 }
  0x9b   :  { %408 = vmatprep.mubr.msk.f32.mxu0 %vm69_vm0, %v59_v18 }
  0x9e   :  { %v60_v19 = vpop.trf.xlu0 }
  0x9f   :  { %409 = vmatmul.mubr.msk.f32.gmra.mrb[6].mxu0 %vm69_vm0, %v60_v19 }
  0xa2   :  { %v61_v20 = vpop.trf.xlu0 }
  0xa3   :  { %411 = vmatprep.mubr.msk.f32.mxu1 %vm69_vm0, %v61_v20 }
  0xa6   :  { %v62_v21 = vpop.trf.xlu0 }
  0xa7   :  { %412 = vmatmul.mubr.msk.f32.vlgmr.msra.gmra.mrb[0].mxu1 %vm69_vm0, %v62_v21 }
  0xaa   :  { %v63_v22 = vpop.trf.xlu0 }
  0xab   :  { %414 = vmatprep.mubr.msk.f32.mxu1 %vm69_vm0, %v63_v22 }
  0xae   :  { %v64_v23 = vpop.trf.xlu0 }
  0xaf   :  { %415 = vmatmul.mubr.msk.f32.gmra.mrb[2].mxu1 %vm69_vm0, %v64_v23 }
  0xb2   :  { %v65_v24 = vpop.trf.xlu0 }
  0xb3   :  { %417 = vmatprep.mubr.msk.f32.mxu1 %vm69_vm0, %v65_v24 }
  0xb6   :  { %v66_v25 = vpop.trf.xlu0 }
  0xb7   :  { %418 = vmatmul.mubr.msk.f32.gmra.mrb[4].mxu1 %vm69_vm0, %v66_v25 }
  0xba   :  { %v67_v26 = vpop.trf.xlu0 }
  0xbb   :  { %420 = vmatprep.mubr.msk.f32.mxu1 %vm69_vm0, %v67_v26 }
  0xbe   :  { %v68_v27 = vpop.trf.xlu0 }
  0xbf   :  { %421 = vmatmul.mubr.msk.f32.gmra.mrb[6].mxu1 %vm69_vm0, %v68_v27 }
 0x15a   :  { %v401_v28 = vpop.f32.mrb[0].mxu0 }
 0x15b   :  { %v280_v29 = vmul.f32 0.00012207031, %v401_v28  ;;  %v184_v30 = vpop.f32.mrb[1].mxu0 }
 0x15c   :  { %v279_v31 = vmul.f32 0.00012207031, %v184_v30 }
 0x15d   :  { %312 = vst [vmem:[#allocation2 + $0x8] sm:$0xff] %v280_v29 }
 0x15e   :  { %311 = vst [vmem:[#allocation2] sm:$0xff] %v279_v31 }
 0x162   :  { %v404_v32 = vpop.f32.mrb[2].mxu0 }
 0x163   :  { %v282_v33 = vmul.f32 0.00012207031, %v404_v32  ;;  %v194_v34 = vpop.f32.mrb[3].mxu0 }
 0x164   :  { %v281_v35 = vmul.f32 0.00012207031, %v194_v34 }
 0x165   :  { %314 = vst [vmem:[#allocation2 + $0x18] sm:$0xff] %v282_v33 }
 0x166   :  { %313 = vst [vmem:[#allocation2 + $0x10] sm:$0xff] %v281_v35 }
 0x16a   :  { %v407_v36 = vpop.f32.mrb[4].mxu0 }
 0x16b   :  { %v284_v37 = vmul.f32 0.00012207031, %v407_v36  ;;  %v204_v38 = vpop.f32.mrb[5].mxu0 }
 0x16c   :  { %v283_v39 = vmul.f32 0.00012207031, %v204_v38 }
 0x16d   :  { %316 = vst [vmem:[#allocation2 + $0x28] sm:$0xff] %v284_v37 }
 0x16e   :  { %315 = vst [vmem:[#allocation2 + $0x20] sm:$0xff] %v283_v39 }
 0x172   :  { %v410_v40 = vpop.f32.mrb[6].mxu0 }
 0x173   :  { %v286_v41 = vmul.f32 0.00012207031, %v410_v40  ;;  %v214_v42 = vpop.f32.mrb[7].mxu0 }
 0x174   :  { %v285_v43 = vmul.f32 0.00012207031, %v214_v42 }
 0x175   :  { %318 = vst [vmem:[#allocation2 + $0x38] sm:$0xff] %v286_v41 }
 0x176   :  { %317 = vst [vmem:[#allocation2 + $0x30] sm:$0xff] %v285_v43 }
 0x17a   :  { %v413_v44 = vpop.f32.mrb[0].mxu1 }
 0x17b   :  { %v288_v45 = vmul.f32 0.00012207031, %v413_v44  ;;  %v224_v46 = vpop.f32.mrb[1].mxu1 }
 0x17c   :  { %v287_v47 = vmul.f32 0.00012207031, %v224_v46 }
 0x17d   :  { %320 = vst [vmem:[#allocation2 + $0x48] sm:$0xff] %v288_v45 }
 0x17e   :  { %319 = vst [vmem:[#allocation2 + $0x40] sm:$0xff] %v287_v47 }
 0x182   :  { %v416_v48 = vpop.f32.mrb[2].mxu1 }
 0x183   :  { %v290_v49 = vmul.f32 0.00012207031, %v416_v48  ;;  %v234_v50 = vpop.f32.mrb[3].mxu1 }
 0x184   :  { %v289_v51 = vmul.f32 0.00012207031, %v234_v50 }
 0x185   :  { %322 = vst [vmem:[#allocation2 + $0x58] sm:$0xff] %v290_v49 }
 0x186   :  { %321 = vst [vmem:[#allocation2 + $0x50] sm:$0xff] %v289_v51 }
 0x18a   :  { %v419_v52 = vpop.f32.mrb[4].mxu1 }
 0x18b   :  { %v292_v53 = vmul.f32 0.00012207031, %v419_v52  ;;  %v244_v54 = vpop.f32.mrb[5].mxu1 }
 0x18c   :  { %v291_v55 = vmul.f32 0.00012207031, %v244_v54 }
 0x18d   :  { %324 = vst [vmem:[#allocation2 + $0x68] sm:$0xff] %v292_v53 }
 0x18e   :  { %323 = vst [vmem:[#allocation2 + $0x60] sm:$0xff] %v291_v55 }
 0x192   :  { %v422_v56 = vpop.f32.mrb[6].mxu1 }
 0x193   :  { %v294_v57 = vmul.f32 0.00012207031, %v422_v56  ;;  %v254_v58 = vpop.f32.mrb[7].mxu1 }
 0x194   :  { %v293_v59 = vmul.f32 0.00012207031, %v254_v58 }
 0x195   :  { %326 = vst [vmem:[#allocation2 + $0x78] sm:$0xff] %v294_v57 }
 0x196   :  { %325 = vst [vmem:[#allocation2 + $0x70] sm:$0xff] %v293_v59 }
 0x197   :  { %462 = shalt.err (!%p459_p4)
}
 0x198   :  { %s463_s26 = scalar_lea.hbm %s541_s1, 2048 }
 0x199   :  { %p464_p5 = scmp.ne.s32.totalorder %s541_s1, %s463_s26  ;;  %p467_p6 = scmp.lt.u32.totalorder %s463_s26, %s541_s1 }
 0x19b   :  { %p469_p7 = pnand %p467_p6, %p464_p5 }
 0x19d   :  { %472 = shalt.err (!%p469_p7)
}
 0x19e   :  { %s476_s2 = smov 128   ;;  %s477_s3 = smov 8  }
 0x19f   :  { %338 = dma.vmem_to_hbm [thread:$0]  %s333_s22, 2048, %s541_s1, [#allocation3], %s476_s2, %s476_s2, %s477_s3  }
 0x1a0   :  { %473 = dma.done.wait [#allocation3], 2048  }
 0x1a1   :  { %474 = vsyncadd [#allocation3], 4294965248 }
 0x1a2   :  { %342 = vsyncpa [#allocation3], 1 }

// kernel: precompute_targets.30
= control target key start
LH: loop header
LB: loop body
LE: loop exit
PB: predicated region body
PF: predicated region fallthrough
CT: control target
= control target key end

     0   :  { %s618_s0 = inlined_call_operand.vmem [shape: f32[256,64], index: 0, kind: input, shape index: {}]   ;;  %s619_s1 = inlined_call_operand.hbm [shape: f32[64,64], index: 1, kind: output, shape index: {}]  }
   0x1   :  { %v22_v0 = vld [vmem:[%s618_s0] sm:$0xff]  ;;  %v23_v2 = vld [vmem:[%s618_s0 + $0x8] sm:$0xff]  ;;  %v40_v6 = vld [vmem:[%s618_s0 + $0x90] sm:$0xff] }
   0x2   :  { %v38_v1 = vld [vmem:[%s618_s0 + $0x80] sm:$0xff]  ;;  %v39_v4 = vld [vmem:[%s618_s0 + $0x88] sm:$0xff]  ;;  %v330_v5 = vpack.c.bf16 %v23_v2, %v22_v0  ;;  %v41_v7 = vld [vmem:[%s618_s0 + $0x98] sm:$0xff] }
   0x3   :  { %v380_v3 = vpack.i.bf16 %v22_v0, %v38_v1  ;;  %v328_v8 = vpack.c.bf16 %v39_v4, %v38_v1  ;;  %v382_v9 = vpack.i.bf16 %v23_v2, %v39_v4  ;;  %v332_v10 = vpack.c.bf16 %v41_v7, %v40_v6  ;;  %v24_v11 = vld [vmem:[%s618_s0 + $0x10] sm:$0xff]  ;;  %v25_v12 = vld [vmem:[%s618_s0 + $0x18] sm:$0xff]  ;;  %v42_v14 = vld [vmem:[%s618_s0 + $0xa0] sm:$0xff] }
   0x4   :  { %v334_v13 = vpack.c.bf16 %v25_v12, %v24_v11  ;;  %v43_v15 = vld [vmem:[%s618_s0 + $0xa8] sm:$0xff]  ;;  %v384_v17 = vpack.i.bf16 %v24_v11, %v40_v6  ;;  %v26_v18 = vld [vmem:[%s618_s0 + $0x20] sm:$0xff]  ;;  %v44_v21 = vld [vmem:[%s618_s0 + $0xb0] sm:$0xff] }
   0x5   :  { %381 = vxpose.xlu0.b32.start [1/16] (narrow) %v380_v3, 64  ;;  %329 = vmatprep.subr.bf16.mxu0 %v328_v8  ;;  %v336_v16 = vpack.c.bf16 %v43_v15, %v42_v14  ;;  %v27_v19 = vld [vmem:[%s618_s0 + $0x28] sm:$0xff]  ;;  %v532_v22 = vld [vmem:[%s618_s0 + $0xb8] sm:$0xff] }
   0x6   :  { %331 = vmatpush3.bf16.msra.mxu0 %v330_v5  ;;  %360 = vmatprep.subr.bf16.mxu1 %v328_v8  ;;  %v338_v20 = vpack.c.bf16 %v27_v19, %v26_v18  ;;  %v340_v23 = vpack.c.bf16 %v532_v22, %v44_v21 }
   0x7   :  { %333 = vmatprep.subr.bf16.mxu0 %v332_v10  ;;  %368 = vmatpush3.bf16.msra.mxu1 %v330_v5 }
   0x8   :  { %361 = vmatprep.subr.bf16.mxu1 %v332_v10 }
   0x9   :  { %383 = vxpose.xlu0.b32.cont [2/16] (narrow) %v382_v9, 64 }
   0xa   :  { %335 = vmatpush3.bf16.msra.mxu0 %v334_v13 }
   0xb   :  { %337 = vmatprep.subr.bf16.mxu0 %v336_v16  ;;  %369 = vmatpush3.bf16.msra.mxu1 %v334_v13 }
   0xc   :  { %6 = vsyncpa [#allocation3], 0  ;;  %v386_v24 = vpack.i.bf16 %v25_v12, %v41_v7  ;;  %362 = vmatprep.subr.bf16.mxu1 %v336_v16  ;;  %v28_v25 = vld [vmem:[%s618_s0 + $0x30] sm:$0xff]  ;;  %v29_v26 = vld [vmem:[%s618_s0 + $0x38] sm:$0xff]  ;;  %v388_v31 = vpack.i.bf16 %v26_v18, %v42_v14  ;;  %v390_v38 = vpack.i.bf16 %v27_v19, %v43_v15  ;;  %vm13_vm0 = vcmask 523264  }
   0xd   :  { %385 = vxpose.xlu0.b32.cont [3/16] (narrow) %v384_v17, 64  ;;  %v342_v27 = vpack.c.bf16 %v29_v26, %v28_v25  ;;  %v46_v28 = vld [vmem:[%s618_s0 + $0xc0] sm:$0xff]  ;;  %v47_v29 = vld [vmem:[%s618_s0 + $0xc8] sm:$0xff]  ;;  %v48_v35 = vld [vmem:[%s618_s0 + $0xd0] sm:$0xff]  ;;  %v392_v45 = vpack.i.bf16 %v28_v25, %v44_v21  ;;  %v394_v52 = vpack.i.bf16 %v29_v26, %v532_v22 }
   0xe   :  { %339 = vmatpush3.bf16.msra.mxu0 %v338_v20  ;;  %v344_v30 = vpack.c.bf16 %v47_v29, %v46_v28  ;;  %v30_v32 = vld [vmem:[%s618_s0 + $0x40] sm:$0xff]  ;;  %v31_v33 = vld [vmem:[%s618_s0 + $0x48] sm:$0xff]  ;;  %v49_v36 = vld [vmem:[%s618_s0 + $0xd8] sm:$0xff] }
   0xf   :  { %341 = vmatprep.subr.bf16.mxu0 %v340_v23  ;;  %370 = vmatpush3.bf16.msra.mxu1 %v338_v20  ;;  %v346_v34 = vpack.c.bf16 %v31_v33, %v30_v32  ;;  %v348_v37 = vpack.c.bf16 %v49_v36, %v48_v35  ;;  %v32_v39 = vld [vmem:[%s618_s0 + $0x50] sm:$0xff]  ;;  %v33_v40 = vld [vmem:[%s618_s0 + $0x58] sm:$0xff]  ;;  %v50_v42 = vld [vmem:[%s618_s0 + $0xe0] sm:$0xff]  ;;  %v396_v56 = vpack.i.bf16 %v30_v32, %v46_v28 }
  0x10   :  { %363 = vmatprep.subr.bf16.mxu1 %v340_v23  ;;  %v350_v41 = vpack.c.bf16 %v33_v40, %v32_v39  ;;  %v51_v43 = vld [vmem:[%s618_s0 + $0xe8] sm:$0xff]  ;;  %v34_v46 = vld [vmem:[%s618_s0 + $0x60] sm:$0xff]  ;;  %v52_v49 = vld [vmem:[%s618_s0 + $0xf0] sm:$0xff]  ;;  %v398_v57 = vpack.i.bf16 %v31_v33, %v47_v29  ;;  %v400_v58 = vpack.i.bf16 %v32_v39, %v48_v35  ;;  %v402_v59 = vpack.i.bf16 %v33_v40, %v49_v36 }
  0x11   :  { %387 = vxpose.xlu0.b32.cont [4/16] (narrow) %v386_v24, 64  ;;  %v352_v44 = vpack.c.bf16 %v51_v43, %v50_v42  ;;  %v35_v47 = vld [vmem:[%s618_s0 + $0x68] sm:$0xff]  ;;  %v53_v50 = vld [vmem:[%s618_s0 + $0xf8] sm:$0xff]  ;;  %v36_v53 = vld [vmem:[%s618_s0 + $0x70] sm:$0xff]  ;;  %v404_v60 = vpack.i.bf16 %v34_v46, %v50_v42  ;;  %v476_v24 = vmov 0.0  }
  0x12   :  { %343 = vmatpush3.bf16.msra.mxu0 %v342_v27  ;;  %v354_v48 = vpack.c.bf16 %v35_v47, %v34_v46  ;;  %v356_v51 = vpack.c.bf16 %v53_v50, %v52_v49  ;;  %v37_v54 = vld [vmem:[%s618_s0 + $0x78] sm:$0xff]  ;;  %v406_v61 = vpack.i.bf16 %v35_v47, %v51_v43  ;;  %v408_v62 = vpack.i.bf16 %v36_v53, %v52_v49  ;;  %s477_s0 = smov [#allocation2]  }
  0x13   :  { %345 = vmatprep.subr.bf16.mxu0 %v344_v30  ;;  %371 = vmatpush3.bf16.msra.mxu1 %v342_v27  ;;  %v358_v55 = vpack.c.bf16 %v37_v54, %v36_v53  ;;  %v410_v63 = vpack.i.bf16 %v37_v54, %v53_v50  ;;  %14 = vst.msk [vmem:[#allocation2] sm:$0xff] %vm13_vm0, %v476_v24  ;;  %15 = vst.msk [vmem:[#allocation2 + $0x8] sm:$0xff] %vm13_vm0, %v476_v24  ;;  %s261_s12 = sshll.u32 %s477_s0, 4  ;;  %s262_s12 = int_to_ptr.vmem [resolvable:$true] %s261_s12 }
  0x14   :  { %364 = vmatprep.subr.bf16.mxu1 %v344_v30  ;;  %16 = vst.msk [vmem:[#allocation2 + $0x10] sm:$0xff] %vm13_vm0, %v476_v24  ;;  %17 = vst.msk [vmem:[#allocation2 + $0x18] sm:$0xff] %vm13_vm0, %v476_v24  ;;  %s452_s13 = scalar_lea.vmem %s262_s12, 1024  ;;  %p457_p1 = scmp.lt.s32.totalorder %s262_s12, %s262_s12 }
  0x15   :  { %389 = vxpose.xlu0.b32.cont [5/16] (narrow) %v388_v31, 64  ;;  %18 = vst.msk [vmem:[#allocation2 + $0x20] sm:$0xff] %vm13_vm0, %v476_v24  ;;  %19 = vst.msk [vmem:[#allocation2 + $0x28] sm:$0xff] %vm13_vm0, %v476_v24  ;;  %p453_p0 = scmp.ne.s32.totalorder %s262_s12, %s452_s13  ;;  %p458_p2 = scmp.lt.s32.totalorder %s452_s13, %s452_s13 }
  0x16   :  { %347 = vmatpush3.bf16.msra.mxu0 %v346_v34  ;;  %20 = vst.msk [vmem:[#allocation2 + $0x30] sm:$0xff] %vm13_vm0, %v476_v24  ;;  %21 = vst.msk [vmem:[#allocation2 + $0x38] sm:$0xff] %vm13_vm0, %v476_v24 }
  0x17   :  { %349 = vmatprep.subr.bf16.mxu0 %v348_v37  ;;  %372 = vmatpush3.bf16.msra.mxu1 %v346_v34  ;;  %p459_p3 = por %p458_p2, %p457_p1 }
  0x18   :  { %365 = vmatprep.subr.bf16.mxu1 %v348_v37 }
  0x19   :  { %391 = vxpose.xlu0.b32.cont [6/16] (narrow) %v390_v38, 64  ;;  %p460_p4 = pnand %p459_p3, %p453_p0 }
  0x1a   :  { %351 = vmatpush3.bf16.msra.mxu0 %v350_v41  ;;  %v223_v28 = vld [vmem:[#allocation2] sm:$0xff]  ;;  %v224_v34 = vld [vmem:[#allocation2 + $0x8] sm:$0xff] }
  0x1b   :  { %353 = vmatprep.subr.bf16.mxu0 %v352_v44  ;;  %373 = vmatpush3.bf16.msra.mxu1 %v350_v41  ;;  %v225_v40 = vld [vmem:[#allocation2 + $0x10] sm:$0xff]  ;;  %v226_v46 = vld [vmem:[#allocation2 + $0x18] sm:$0xff] }
  0x1c   :  { %366 = vmatprep.subr.bf16.mxu1 %v352_v44 }
  0x1d   :  { %393 = vxpose.xlu0.b32.cont [7/16] (narrow) %v392_v45, 64 }
  0x1e   :  { %355 = vmatpush3.bf16.msra.mxu0 %v354_v48 }
  0x1f   :  { %357 = vmatprep.subr.bf16.mxu0 %v356_v51  ;;  %374 = vmatpush3.bf16.msra.mxu1 %v354_v48 }
  0x20   :  { %367 = vmatprep.subr.bf16.mxu1 %v356_v51 }
  0x21   :  { %395 = vxpose.xlu0.b32.cont [8/16] (narrow) %v394_v52, 64  ;;  %v227_v52 = vld [vmem:[#allocation2 + $0x20] sm:$0xff] }
  0x22   :  { %359 = vmatpush3.bf16.msra.mxu0 %v358_v55 }
  0x23   :  { %375 = vmatpush3.bf16.msra.mxu1 %v358_v55 }
  0x25   :  { %397 = vxpose.xlu0.b32.cont [9/16] (narrow) %v396_v56, 64 }
  0x29   :  { %399 = vxpose.xlu0.b32.cont [10/16] (narrow) %v398_v57, 64 }
  0x2d   :  { %401 = vxpose.xlu0.b32.cont [11/16] (narrow) %v400_v58, 64  ;;  %v228_v58 = vld [vmem:[#allocation2 + $0x28] sm:$0xff] }
  0x31   :  { %403 = vxpose.xlu0.b32.cont [12/16] (narrow) %v402_v59, 64 }
  0x35   :  { %405 = vxpose.xlu0.b32.cont [13/16] (narrow) %v404_v60, 64 }
  0x39   :  { %407 = vxpose.xlu0.b32.cont [14/16] (narrow) %v406_v61, 64 }
  0x3d   :  { %409 = vxpose.xlu0.b32.cont [15/16] (narrow) %v408_v62, 64 }
  0x41   :  { %411 = vxpose.xlu0.b32.end [16/16] (narrow) %v410_v63, 64 }
  0x85   :  { %v412_v0 = vpop.trf.xlu0 }
  0x86   :  { %v413_v1 = vunpack.i.l.bf16 %v412_v0  ;;  %v416_v2 = vunpack.i.h.bf16 %v412_v0  ;;  %v229_v0 = vld [vmem:[#allocation2 + $0x30] sm:$0xff] }
  0x88   :  { %182 = vmatprep.mubr.f32.mxu0 %v413_v1 }
  0x89   :  { %v417_v3 = vpop.trf.xlu0  ;;  %183 = vmatmul.mubr.f32.vlgmr.msra.gmra.mrb[0].mxu0 %v416_v2 }
  0x8a   :  { %v418_v4 = vunpack.i.l.bf16 %v417_v3  ;;  %v421_v5 = vunpack.i.h.bf16 %v417_v3 }
  0x8c   :  { %187 = vmatprep.mubr.f32.mxu0 %v418_v4 }
  0x8d   :  { %v422_v6 = vpop.trf.xlu0  ;;  %188 = vmatmul.mubr.f32.gmra.mrb[2].mxu0 %v421_v5 }
  0x8e   :  { %v423_v7 = vunpack.i.l.bf16 %v422_v6  ;;  %v426_v8 = vunpack.i.h.bf16 %v422_v6  ;;  %v230_v6 = vld [vmem:[#allocation2 + $0x38] sm:$0xff] }
  0x90   :  { %192 = vmatprep.mubr.f32.mxu0 %v423_v7 }
  0x91   :  { %v427_v9 = vpop.trf.xlu0  ;;  %193 = vmatmul.mubr.f32.gmra.mrb[4].mxu0 %v426_v8 }
  0x92   :  { %v428_v10 = vunpack.i.l.bf16 %v427_v9  ;;  %v431_v11 = vunpack.i.h.bf16 %v427_v9 }
  0x94   :  { %197 = vmatprep.mubr.f32.mxu0 %v428_v10 }
  0x95   :  { %v432_v12 = vpop.trf.xlu0  ;;  %198 = vmatmul.mubr.f32.gmra.mrb[6].mxu0 %v431_v11 }
  0x96   :  { %v433_v13 = vunpack.i.l.bf16 %v432_v12  ;;  %v436_v14 = vunpack.i.h.bf16 %v432_v12 }
  0x98   :  { %202 = vmatprep.mubr.f32.mxu1 %v433_v13 }
  0x99   :  { %v437_v15 = vpop.trf.xlu0  ;;  %203 = vmatmul.mubr.f32.vlgmr.msra.gmra.mrb[0].mxu1 %v436_v14 }
  0x9a   :  { %v438_v16 = vunpack.i.l.bf16 %v437_v15  ;;  %v441_v17 = vunpack.i.h.bf16 %v437_v15 }
  0x9c   :  { %207 = vmatprep.mubr.f32.mxu1 %v438_v16 }
  0x9d   :  { %v442_v18 = vpop.trf.xlu0  ;;  %208 = vmatmul.mubr.f32.gmra.mrb[2].mxu1 %v441_v17 }
  0x9e   :  { %v443_v19 = vunpack.i.l.bf16 %v442_v18  ;;  %v446_v20 = vunpack.i.h.bf16 %v442_v18 }
  0xa0   :  { %212 = vmatprep.mubr.f32.mxu1 %v443_v19 }
  0xa1   :  { %v447_v21 = vpop.trf.xlu0  ;;  %213 = vmatmul.mubr.f32.gmra.mrb[4].mxu1 %v446_v20 }
  0xa2   :  { %v451_v22 = vunpack.i.h.bf16 %v447_v21  ;;  %v448_v23 = vunpack.i.l.bf16 %v447_v21 }
  0xa4   :  { %217 = vmatprep.mubr.f32.mxu1 %v448_v23 }
  0xa5   :  { %218 = vmatmul.mubr.f32.gmra.mrb[6].mxu1 %v451_v22 }
 0x15c   :  { %v304_v25 = vpop.f32.mrb[0].mxu0 }
 0x15d   :  { %v305_v26 = vpop.f32.mrb[1].mxu0 }
 0x15e   :  { %v306_v27 = vadd.f32 %v305_v26, %v304_v25 }
 0x160   :  { %v231_v29 = vmul.f32 6.1035156e-05, %v306_v27  ;;  %v307_v30 = vpop.f32.mrb[2].mxu0 }
 0x161   :  { %v308_v31 = vpop.f32.mrb[3].mxu0 }
 0x162   :  { %v239_v32 = vadd.f32 %v231_v29, %v223_v28  ;;  %v309_v33 = vadd.f32 %v308_v31, %v307_v30 }
 0x164   :  { %248 = vst.msk [vmem:[#allocation2] sm:$0xff] %vm13_vm0, %v239_v32  ;;  %v232_v35 = vmul.f32 6.1035156e-05, %v309_v33  ;;  %v310_v36 = vpop.f32.mrb[4].mxu0 }
 0x165   :  { %v311_v37 = vpop.f32.mrb[5].mxu0 }
 0x166   :  { %v240_v38 = vadd.f32 %v232_v35, %v224_v34  ;;  %v312_v39 = vadd.f32 %v311_v37, %v310_v36 }
 0x168   :  { %249 = vst.msk [vmem:[#allocation2 + $0x8] sm:$0xff] %vm13_vm0, %v240_v38  ;;  %v233_v41 = vmul.f32 6.1035156e-05, %v312_v39  ;;  %v313_v42 = vpop.f32.mrb[6].mxu0 }
 0x169   :  { %v314_v43 = vpop.f32.mrb[7].mxu0 }
 0x16a   :  { %v241_v44 = vadd.f32 %v233_v41, %v225_v40  ;;  %v315_v45 = vadd.f32 %v314_v43, %v313_v42 }
 0x16c   :  { %250 = vst.msk [vmem:[#allocation2 + $0x10] sm:$0xff] %vm13_vm0, %v241_v44  ;;  %v234_v47 = vmul.f32 6.1035156e-05, %v315_v45  ;;  %v316_v48 = vpop.f32.mrb[0].mxu1 }
 0x16d   :  { %v317_v49 = vpop.f32.mrb[1].mxu1 }
 0x16e   :  { %v242_v50 = vadd.f32 %v234_v47, %v226_v46  ;;  %v318_v51 = vadd.f32 %v317_v49, %v316_v48 }
 0x170   :  { %251 = vst.msk [vmem:[#allocation2 + $0x18] sm:$0xff] %vm13_vm0, %v242_v50  ;;  %v235_v53 = vmul.f32 6.1035156e-05, %v318_v51  ;;  %v319_v54 = vpop.f32.mrb[2].mxu1 }
 0x171   :  { %v320_v55 = vpop.f32.mrb[3].mxu1 }
 0x172   :  { %v243_v56 = vadd.f32 %v235_v53, %v227_v52  ;;  %v321_v57 = vadd.f32 %v320_v55, %v319_v54 }
 0x174   :  { %252 = vst.msk [vmem:[#allocation2 + $0x20] sm:$0xff] %vm13_vm0, %v243_v56  ;;  %v236_v59 = vmul.f32 6.1035156e-05, %v321_v57  ;;  %v322_v60 = vpop.f32.mrb[4].mxu1 }
 0x175   :  { %v323_v61 = vpop.f32.mrb[5].mxu1 }
 0x176   :  { %v244_v62 = vadd.f32 %v236_v59, %v228_v58  ;;  %v324_v63 = vadd.f32 %v323_v61, %v322_v60 }
 0x178   :  { %253 = vst.msk [vmem:[#allocation2 + $0x28] sm:$0xff] %vm13_vm0, %v244_v62  ;;  %v237_v1 = vmul.f32 6.1035156e-05, %v324_v63  ;;  %v325_v2 = vpop.f32.mrb[6].mxu1 }
 0x179   :  { %v326_v3 = vpop.f32.mrb[7].mxu1 }
 0x17a   :  { %v245_v4 = vadd.f32 %v237_v1, %v229_v0  ;;  %v327_v5 = vadd.f32 %v326_v3, %v325_v2 }
 0x17c   :  { %254 = vst.msk [vmem:[#allocation2 + $0x30] sm:$0xff] %vm13_vm0, %v245_v4  ;;  %v238_v7 = vmul.f32 6.1035156e-05, %v327_v5 }
 0x17e   :  { %v246_v8 = vadd.f32 %v238_v7, %v230_v6 }
 0x180   :  { %255 = vst.msk [vmem:[#allocation2 + $0x38] sm:$0xff] %vm13_vm0, %v246_v8 }
 0x181   :  { %463 = shalt.err (!%p460_p4)
}
 0x182   :  { %s464_s16 = scalar_lea.hbm %s619_s1, 1024 }
 0x183   :  { %p465_p5 = scmp.ne.s32.totalorder %s619_s1, %s464_s16  ;;  %p468_p6 = scmp.lt.u32.totalorder %s464_s16, %s619_s1 }
 0x185   :  { %p470_p7 = pnand %p468_p6, %p465_p5 }
 0x187   :  { %473 = shalt.err (!%p470_p7)
}
 0x188   :  { %s478_s21 = smov 128   ;;  %s479_s22 = smov 8  }
 0x189   :  { %267 = dma.vmem_to_hbm [thread:$0]  %s262_s12, 1024, %s619_s1, [#allocation3], %s478_s21, %s478_s21, %s479_s22  }
 0x18a   :  { %474 = dma.done.wait [#allocation3], 1024  }
 0x18b   :  { %475 = vsyncadd [#allocation3], 4294966272 }
 0x18c   :  { %271 = vsyncpa [#allocation3], 1 }

</bundles_post_ra>
